<compile_context>
chip_gen: v7x
topology: tpu7x:2x2x1
jax: 0.10.0
libtpu: 0.0.40
codegen_flags: <defaults>
</compile_context>

<pallas_src>
import math

import jax
import jax.numpy as jnp
from jax.experimental import pallas as pl
from jax.experimental.pallas import tpu as pltpu

D = 300        # LSTM input / hidden size hard-coded in the module
WIDTH = 300    # module `width`; must be 300 so (width,300)+(300,300) broadcasts
GPAD = 384     # per-gate lane padding (multiple of 128) inside the fused gate matrix


def fused_kernel(ha0_ref, wigo_ref, bigo_ref, whs_ref, wq_ref, bias_ref, oq_ref,
                 a_ref, stack_ref):
    B = ha0_ref.shape[0]
    x = ha0_ref[...]                                                   # (B, 300)

    # --- single LSTM step at t=0 with zero initial state (PyTorch gate order i,f,g,o;
    #     f dropped because f*c0 == 0, W_hh dropped because h0 == 0).
    #     One fused MXU pass over [i | g | o]; each gate padded to 384 lanes so the
    #     static slices below start at 128-aligned offsets.
    z = jnp.dot(x, wigo_ref[...], preferred_element_type=jnp.float32) + bigo_ref[...]
    i_g = jax.nn.sigmoid(z[:, 0:D])
    g_g = jnp.tanh(z[:, GPAD:GPAD + D])
    o_g = jax.nn.sigmoid(z[:, 2 * GPAD:2 * GPAD + D])
    s0 = o_g * jnp.tanh(i_g * g_g)                                     # (B, 300) == s[0]

    # --- answer + s_hidden as ONE matmul: [W_h | W_s] @ [x ; s0]
    stack_ref[pl.ds(0, B), :] = x
    stack_ref[pl.ds(B, B), :] = s0
    ans_sh = jnp.dot(whs_ref[...], stack_ref[...],
                     preferred_element_type=jnp.float32)               # (RB, 300)

    # --- question*o_q + bias as a single (1,300) row, one broadcast add
    o_q = oq_ref[0, 0]                                                 # scalar mean(H_q)
    row = wq_ref[...] * o_q + bias_ref[...]                            # (1, 300)

    e = jnp.tanh(ans_sh + row)
    # softmax over dim=1 (rows are independent, so the row-split grid is safe)
    e_max = jnp.max(e, axis=1, keepdims=True)
    p = jnp.exp(e - e_max)
    l = jnp.sum(p, axis=1, keepdims=True)
    a_ref[...] = p * pl.reciprocal(l, approx=False)
    # TODO(synk): the reference's H_t = (a @ H_a[0].T).sum(dim=1) is dead code
    # (never returned) and is intentionally omitted.


def prepare_params(params, batch):
    """One-time (per params/batch) weight prep, hoisted out of the per-call path."""
    w_ih = params["w_ih"]                                  # (1200, 300), gates i,f,g,o
    b = params["b_ih"] + params["b_hh"]                    # (1200,)

    def gate_w(g):
        w_t = w_ih[g * D:(g + 1) * D, :].T                 # (300_in, 300_out)
        return jnp.pad(w_t, ((0, 0), (0, GPAD - D)))       # (300, 384)

    def gate_b(g):
        return jnp.pad(b[g * D:(g + 1) * D], (0, GPAD - D)).reshape(1, GPAD)

    # forget gate (index 1) dropped: f * c0 == 0
    w_igo = jnp.concatenate([gate_w(0), gate_w(2), gate_w(3)], axis=1)   # (300, 1152)
    b_igo = jnp.concatenate([gate_b(0), gate_b(2), gate_b(3)], axis=1)   # (1, 1152)

    # torch `.repeat(1,B).view(width,B)`: row i = chunk [i*B:(i+1)*B] of the tiled vec.
    W_h_mat = jnp.tile(params["W_h"], batch).reshape(WIDTH, batch)       # (300, B)
    W_s_mat = jnp.tile(params["W_s"], batch).reshape(D, batch)           # (300, B)
    w_hs = jnp.concatenate([W_h_mat, W_s_mat], axis=1)                   # (300, 2B)

    # torch `.repeat(1,300).view(width,300)` of a (300,) vector is an exact per-row
    # broadcast -> keep as (1,300) rows and broadcast in-kernel (free VPU work).
    wq_row = params["W_q"].reshape(1, D)
    bias_row = params["bias"].reshape(1, D)

    return dict(w_igo=w_igo, b_igo=b_igo, w_hs=w_hs, wq=wq_row, bias=bias_row)


def _num_row_blocks():
    # v7x has 2 TensorCores per chip -> split the 300-row output stage across them;
    # v5e / v6e have 1 TC -> keep grid=(1,) to avoid per-step grid overhead.
    try:
        kind = jax.devices()[0].device_kind.lower()
    except Exception:
        return 1
    return 2 if "7" in kind else 1


@jax.jit
def seq2seq_forward(prepped, H_a, H_q):
    B = H_a.shape[1]
    H_a0 = H_a[0]                                          # only H_a[0] is consumed
    o_q = jnp.mean(H_q).reshape(1, 1)                      # scalar mean(H_q) -> SMEM

    n_blk = _num_row_blocks()                              # static (trace-time)
    rb = WIDTH if n_blk == 1 else 152                      # 152 = 8-aligned ceil(300/2)

    def full(shape):
        return pl.BlockSpec(shape, lambda i, _n=len(shape): (0,) * _n)

    def row_blocked(cols):
        return pl.BlockSpec((rb, cols), lambda i: (i, 0))

    return pl.pallas_call(
        fused_kernel,
        out_shape=jax.ShapeDtypeStruct((WIDTH, D), jnp.float32),
        grid_spec=pltpu.PrefetchScalarGridSpec(
            num_scalar_prefetch=0,
            grid=(n_blk,),
            in_specs=[
                full((B, D)),                       # H_a[0]
                full((D, 3 * GPAD)),                # fused [i|g|o] gate weights (300,1152)
                full((1, 3 * GPAD)),                # fused gate biases (1,1152)
                row_blocked(2 * B),                 # [W_h_mat | W_s_mat] (row-blocked)
                full((1, D)),                       # W_q row
                full((1, D)),                       # bias row
                pl.BlockSpec(memory_space=pltpu.MemorySpace.SMEM),   # o_q scalar
            ],
            out_specs=row_blocked(D),
            scratch_shapes=[pltpu.VMEM((2 * B, D), jnp.float32)],    # [x ; s0] stack
        ),
        compiler_params=pltpu.CompilerParams(
            dimension_semantics=("parallel",)),
    )(H_a0, prepped["w_igo"], prepped["b_igo"], prepped["w_hs"],
      prepped["wq"], prepped["bias"], o_q)


if __name__ == "__main__":
    key = jax.random.PRNGKey(0)
    k = jax.random.split(key, 10)
    stdv = 1.0 / math.sqrt(WIDTH)

    def u(kk, shape):
        return jax.random.uniform(kk, shape, jnp.float32, -stdv, stdv)

    # All parameters (including the LSTM's) are re-initialized uniform(-stdv, stdv)
    # in the reference module's initialize_weights().
    params = dict(
        W_h=u(k[0], (WIDTH,)),
        W_s=u(k[1], (D,)),
        W_q=u(k[2], (WIDTH,)),
        bias=u(k[3], (WIDTH,)),
        w_ih=u(k[4], (4 * D, D)),
        w_hh=u(k[5], (4 * D, D)),   # present for module parity; unused (h0 == 0)
        b_ih=u(k[6], (4 * D,)),
        b_hh=u(k[7], (4 * D,)),
    )

    T, B, Tq = 6, 8, 5   # small seq / batch; feature dim 300 is fixed by the module
    H_a = jax.random.normal(k[8], (T, B, D), jnp.float32)
    H_q = jax.random.normal(k[9], (Tq, B, D), jnp.float32)

    prepped = prepare_params(params, B)          # one-time prep, hoisted off hot path
    a = seq2seq_forward(prepped, H_a, H_q)
    a = jax.block_until_ready(a)

    assert a.shape == (WIDTH, D)
    assert bool(jnp.all(jnp.isfinite(a)))
    row_sums = jnp.sum(a, axis=1)
    assert bool(jnp.all(jnp.abs(row_sums - 1.0) < 1e-3))   # softmax rows sum to 1
    print("KERNEL_OK")
</pallas_src>

<mosaic_0001>
module attributes {stable_mosaic.version = 11 : i64} {
  func.func @fused_kernel(%arg0: i32, %arg1: memref<8x300xf32, #tpu.memory_space<vmem>>, %arg2: memref<300x1152xf32, #tpu.memory_space<vmem>>, %arg3: memref<1x1152xf32, #tpu.memory_space<vmem>>, %arg4: memref<300x16xf32, #tpu.memory_space<vmem>>, %arg5: memref<1x300xf32, #tpu.memory_space<vmem>>, %arg6: memref<1x300xf32, #tpu.memory_space<vmem>>, %arg7: memref<1x1xf32, #tpu.memory_space<smem>>, %arg8: memref<300x300xf32, #tpu.memory_space<vmem>>, %arg9: memref<16x300xf32, #tpu.memory_space<vmem>>) attributes {dimension_semantics = [#tpu.dimension_semantics<parallel>], iteration_bounds = array<i64: 1>, scalar_prefetch = 0 : i64, scratch_operands = 1 : i64, tpu.core_type = #tpu.core_type<tc>, window_params = [{pipeline_mode = #tpu.pipeline_mode<synchronous>, transform_indices = @transform_0, window_bounds = array<i64: 8, 300>}, {pipeline_mode = #tpu.pipeline_mode<synchronous>, transform_indices = @transform_1, window_bounds = array<i64: 300, 1152>}, {pipeline_mode = #tpu.pipeline_mode<synchronous>, transform_indices = @transform_2, window_bounds = array<i64: 1, 1152>}, {transform_indices = @transform_3, window_bounds = array<i64: 300, 16>}, {pipeline_mode = #tpu.pipeline_mode<synchronous>, transform_indices = @transform_4, window_bounds = array<i64: 1, 300>}, {pipeline_mode = #tpu.pipeline_mode<synchronous>, transform_indices = @transform_5, window_bounds = array<i64: 1, 300>}, {transform_indices = @transform_6, window_bounds = array<i64: 1, 1>}, {transform_indices = @transform_7, window_bounds = array<i64: 300, 300>}]} {
    %c0 = arith.constant 0 : index
    %c0_0 = arith.constant 0 : index
    %0 = vector.load %arg1[%c0, %c0_0] : memref<8x300xf32, #tpu.memory_space<vmem>>, vector<8x300xf32>
    %c0_1 = arith.constant 0 : index
    %c0_2 = arith.constant 0 : index
    %1 = vector.load %arg2[%c0_1, %c0_2] : memref<300x1152xf32, #tpu.memory_space<vmem>>, vector<300x1152xf32>
    %cst = arith.constant dense<0.000000e+00> : vector<8x1152xf32>
    %2 = tpu.matmul %0, %1, %cst {dimension_numbers = #tpu.dot_dimension_numbers<[1], [0], [0], [1], [0, 0, 1, 1], [], []>} : vector<8x300xf32>, vector<300x1152xf32>, vector<8x1152xf32> -> vector<8x1152xf32>
    %c0_3 = arith.constant 0 : index
    %c0_4 = arith.constant 0 : index
    %3 = vector.load %arg3[%c0_3, %c0_4] : memref<1x1152xf32, #tpu.memory_space<vmem>>, vector<1x1152xf32>
    %4 = vector.broadcast %3 : vector<1x1152xf32> to vector<8x1152xf32>
    %5 = arith.addf %2, %4 : vector<8x1152xf32>
    %6 = vector.extract_strided_slice %5 {offsets = [0, 0], sizes = [8, 300], strides = [1, 1]} : vector<8x1152xf32> to vector<8x300xf32>
    %7 = arith.negf %6 : vector<8x300xf32>
    %8 = math.exp %7 : vector<8x300xf32>
    %cst_5 = arith.constant 1.000000e+00 : f32
    %9 = vector.broadcast %cst_5 : f32 to vector<8x300xf32>
    %10 = arith.addf %9, %8 : vector<8x300xf32>
    %11 = arith.divf %9, %10 : vector<8x300xf32>
    %12 = vector.extract_strided_slice %5 {offsets = [0, 384], sizes = [8, 300], strides = [1, 1]} : vector<8x1152xf32> to vector<8x300xf32>
    %13 = math.tanh %12 : vector<8x300xf32>
    %14 = vector.extract_strided_slice %5 {offsets = [0, 768], sizes = [8, 300], strides = [1, 1]} : vector<8x1152xf32> to vector<8x300xf32>
    %15 = arith.negf %14 : vector<8x300xf32>
    %16 = math.exp %15 : vector<8x300xf32>
    %cst_6 = arith.constant 1.000000e+00 : f32
    %17 = vector.broadcast %cst_6 : f32 to vector<8x300xf32>
    %18 = arith.addf %17, %16 : vector<8x300xf32>
    %19 = arith.divf %17, %18 : vector<8x300xf32>
    %20 = arith.mulf %11, %13 : vector<8x300xf32>
    %21 = math.tanh %20 : vector<8x300xf32>
    %22 = arith.mulf %19, %21 : vector<8x300xf32>
    %c0_7 = arith.constant 0 : index
    %c0_8 = arith.constant 0 : index
    %23 = vector.load %arg9[%c0_7, %c0_8] : memref<16x300xf32, #tpu.memory_space<vmem>>, vector<8x300xf32>
    tpu.vector_store %arg9[%c0_7, %c0_8], %0 {strides = array<i32>} : memref<16x300xf32, #tpu.memory_space<vmem>>, vector<8x300xf32>,
    %c8 = arith.constant 8 : index
    %c0_9 = arith.constant 0 : index
    %24 = vector.load %arg9[%c8, %c0_9] : memref<16x300xf32, #tpu.memory_space<vmem>>, vector<8x300xf32>
    tpu.vector_store %arg9[%c8, %c0_9], %22 {strides = array<i32>} : memref<16x300xf32, #tpu.memory_space<vmem>>, vector<8x300xf32>,
    %c0_10 = arith.constant 0 : index
    %c0_11 = arith.constant 0 : index
    %25 = vector.load %arg4[%c0_10, %c0_11] : memref<300x16xf32, #tpu.memory_space<vmem>>, vector<300x16xf32>
    %c0_12 = arith.constant 0 : index
    %c0_13 = arith.constant 0 : index
    %26 = vector.load %arg9[%c0_12, %c0_13] : memref<16x300xf32, #tpu.memory_space<vmem>>, vector<16x300xf32>
    %cst_14 = arith.constant dense<0.000000e+00> : vector<300x300xf32>
    %27 = tpu.matmul %25, %26, %cst_14 {dimension_numbers = #tpu.dot_dimension_numbers<[1], [0], [0], [1], [0, 0, 1, 1], [], []>} : vector<300x16xf32>, vector<16x300xf32>, vector<300x300xf32> -> vector<300x300xf32>
    %c0_15 = arith.constant 0 : index
    %c0_16 = arith.constant 0 : index
    %28 = memref.load %arg7[%c0_15, %c0_16] : memref<1x1xf32, #tpu.memory_space<smem>>
    %c0_17 = arith.constant 0 : index
    %c0_18 = arith.constant 0 : index
    %29 = vector.load %arg5[%c0_17, %c0_18] : memref<1x300xf32, #tpu.memory_space<vmem>>, vector<1x300xf32>
    %30 = vector.broadcast %28 : f32 to vector<1x300xf32>
    %31 = arith.mulf %29, %30 : vector<1x300xf32>
    %c0_19 = arith.constant 0 : index
    %c0_20 = arith.constant 0 : index
    %32 = vector.load %arg6[%c0_19, %c0_20] : memref<1x300xf32, #tpu.memory_space<vmem>>, vector<1x300xf32>
    %33 = arith.addf %31, %32 : vector<1x300xf32>
    %34 = vector.broadcast %33 : vector<1x300xf32> to vector<300x300xf32>
    %35 = arith.addf %27, %34 : vector<300x300xf32>
    %36 = math.tanh %35 : vector<300x300xf32>
    %cst_21 = arith.constant dense<0xFF800000> : vector<300xf32>
    %37 = vector.multi_reduction <maximumf>, %36, %cst_21 [1] : vector<300x300xf32> to vector<300xf32>
    %38 = vector.shape_cast %37 : vector<300xf32> to vector<300x1xf32>
    %39 = vector.broadcast %38 : vector<300x1xf32> to vector<300x300xf32>
    %40 = arith.subf %36, %39 : vector<300x300xf32>
    %41 = math.exp %40 : vector<300x300xf32>
    %cst_22 = arith.constant dense<0.000000e+00> : vector<300xf32>
    %42 = vector.multi_reduction <add>, %41, %cst_22 [1] : vector<300x300xf32> to vector<300xf32>
    %43 = vector.shape_cast %42 : vector<300xf32> to vector<300x1xf32>
    %44 = tpu.reciprocal %43 : vector<300x1xf32> -> vector<300x1xf32>
    %45 = vector.broadcast %44 : vector<300x1xf32> to vector<300x300xf32>
    %46 = arith.mulf %41, %45 : vector<300x300xf32>
    %c0_23 = arith.constant 0 : index
    %c0_24 = arith.constant 0 : index
    %47 = vector.load %arg8[%c0_23, %c0_24] : memref<300x300xf32, #tpu.memory_space<vmem>>, vector<300x300xf32>
    tpu.vector_store %arg8[%c0_23, %c0_24], %46 {strides = array<i32>} : memref<300x300xf32, #tpu.memory_space<vmem>>, vector<300x300xf32>,
    return
  }
  func.func @transform_0(%arg0: i32) -> (i32, i32) {
    %c0_i32 = arith.constant 0 : i32
    %c0_i32_0 = arith.constant 0 : i32
    %c0_i32_1 = arith.constant 0 : i32
    return %c0_i32, %c0_i32_0 : i32, i32
  }
  func.func @transform_1(%arg0: i32) -> (i32, i32) {
    %c0_i32 = arith.constant 0 : i32
    %c0_i32_0 = arith.constant 0 : i32
    %c0_i32_1 = arith.constant 0 : i32
    return %c0_i32, %c0_i32_0 : i32, i32
  }
  func.func @transform_2(%arg0: i32) -> (i32, i32) {
    %c0_i32 = arith.constant 0 : i32
    %c0_i32_0 = arith.constant 0 : i32
    %c0_i32_1 = arith.constant 0 : i32
    return %c0_i32, %c0_i32_0 : i32, i32
  }
  func.func @transform_3(%arg0: i32) -> (i32, i32) {
    %c0_i32 = arith.constant 0 : i32
    %c0_i32_0 = arith.constant 0 : i32
    return %arg0, %c0_i32 : i32, i32
  }
  func.func @transform_4(%arg0: i32) -> (i32, i32) {
    %c0_i32 = arith.constant 0 : i32
    %c0_i32_0 = arith.constant 0 : i32
    %c0_i32_1 = arith.constant 0 : i32
    return %c0_i32, %c0_i32_0 : i32, i32
  }
  func.func @transform_5(%arg0: i32) -> (i32, i32) {
    %c0_i32 = arith.constant 0 : i32
    %c0_i32_0 = arith.constant 0 : i32
    %c0_i32_1 = arith.constant 0 : i32
    return %c0_i32, %c0_i32_0 : i32, i32
  }
  func.func @transform_6(%arg0: i32) -> (i32, i32) {
    %c0_i32 = arith.constant 0 : i32
    %c0_i32_0 = arith.constant 0 : i32
    %c0_i32_1 = arith.constant 0 : i32
    return %c0_i32, %c0_i32_0 : i32, i32
  }
  func.func @transform_7(%arg0: i32) -> (i32, i32) {
    %c0_i32 = arith.constant 0 : i32
    %c0_i32_0 = arith.constant 0 : i32
    return %arg0, %c0_i32 : i32, i32
  }
}

</mosaic_0001>

<bundles_post_ra>
// kernel: seq2seq_forward.1
= control target key start
LH: loop header
LB: loop body
LE: loop exit
PB: predicated region body
PF: predicated region fallthrough
CT: control target
= control target key end

     0   :  { %13 = vsyncpa [#allocation5], 0  ;;  %s6105_s0 = inlined_call_operand.vmem [shape: f32[8,300], index: 0, kind: input, shape index: {}]   ;;  %s6106_s1 = inlined_call_operand.hbm [shape: f32[300,1152], index: 1, kind: input, shape index: {}]   ;;  %s6107_s2 = inlined_call_operand.hbm [shape: f32[1,1152], index: 2, kind: input, shape index: {}]   ;;  %s6108_s3 = inlined_call_operand.vmem [shape: f32[300,16], index: 3, kind: input, shape index: {}]   ;;  %s6109_s4 = inlined_call_operand.hbm [shape: f32[1,300], index: 4, kind: input, shape index: {}]   ;;  %s6110_s5 = inlined_call_operand.hbm [shape: f32[1,300], index: 5, kind: input, shape index: {}]   ;;  %s6111_s6 = inlined_call_operand.<no memory space> [shape: f32[1,1], index: 6, kind: input, shape index: {}]   ;;  %s6112_s7 = inlined_call_operand.hbm [shape: f32[300,300], index: 7, kind: output, shape index: {}]  }
   0x1   :  { %14 = vsyncpa [#allocation8], 0 }
   0x2   :  { %15 = vsyncpa [#allocation11], 0 }
   0x3   :  { %16 = vsyncpa [#allocation6], 0  ;;  %s4455_s24 = smov [#allocation7]   ;;  %s4456_s26 = smov [#allocation4]  }
   0x4   :  { %s37_s25 = sshll.u32 %s4455_s24, 4  ;;  %s24_s27 = sshll.u32 %s4456_s26, 4  ;;  %s38_s25 = int_to_ptr.vmem [resolvable:$true] %s37_s25  ;;  %s4508_s27 = int_to_ptr.vmem [resolvable:$true] %s24_s27 }
   0x5   :  { %s4337_s30 = scalar_lea.hbm %s6107_s2, 144 }
   0x6   :  { %p4338_p0 = scmp.ne.s32.totalorder %s6107_s2, %s4337_s30  ;;  %p4341_p1 = scmp.lt.u32.totalorder %s4337_s30, %s6107_s2 }
   0x8   :  { %p4343_p2 = pnand %p4341_p1, %p4338_p0 }
   0xa   :  { %4346 = shalt.err (!%p4343_p2)
}
   0xb   :  { %s4347_s12 = scalar_lea.vmem %s38_s25, 144  ;;  %s4351_s13 = scalar_lea.vmem %s38_s25, 160 }
   0xc   :  { %p4348_p3 = scmp.ne.s32.totalorder %s38_s25, %s4347_s12  ;;  %p4352_p4 = scmp.lt.s32.totalorder %s38_s25, %s38_s25 }
   0xd   :  { %p4353_p5 = scmp.lt.s32.totalorder %s4351_s13, %s4347_s12 }
   0xf   :  { %p4354_p6 = por %p4353_p5, %p4352_p4 }
  0x11   :  { %p4355_p7 = pnand %p4354_p6, %p4348_p3 }
  0x13   :  { %4358 = shalt.err (!%p4355_p7)
}
  0x14   :  { %40 = dma.hbm_to_vmem [thread:$0]  %s6107_s2, 144, %s38_s25, [#allocation8]  }
  0x15   :  { %s4359_s18 = scalar_lea.hbm %s6106_s1, 43776 }
  0x16   :  { %p4360_p8 = scmp.ne.s32.totalorder %s6106_s1, %s4359_s18  ;;  %p4363_p9 = scmp.lt.u32.totalorder %s4359_s18, %s6106_s1 }
  0x18   :  { %p4365_p10 = pnand %p4363_p9, %p4360_p8 }
  0x1a   :  { %4368 = shalt.err (!%p4365_p10)
}
  0x1b   :  { %s4369_s23 = scalar_lea.vmem %s4508_s27, 43776  ;;  %p4374_p12 = scmp.lt.s32.totalorder %s4508_s27, %s4508_s27 }
  0x1c   :  { %p4370_p11 = scmp.ne.s32.totalorder %s4508_s27, %s4369_s23  ;;  %p4375_p13 = scmp.lt.s32.totalorder %s4369_s23, %s4369_s23 }
  0x1e   :  { %p4376_p0 = por %p4375_p13, %p4374_p12 }
  0x20   :  { %p4377_p1 = pnand %p4376_p0, %p4370_p11 }
  0x22   :  { %4380 = shalt.err (!%p4377_p1)
}
  0x23   :  { %s4457_s2 = smov 1152   ;;  %s4458_s24 = smov 72  }
  0x24   :  { %30 = dma.hbm_to_vmem [thread:$0]  %s6106_s1, 43776, %s4508_s27, [#allocation5], %s4457_s2, %s4457_s2, %s4458_s24  }
  0x25   :  { %s4459_s28 = smov [#allocation9]   ;;  %s4460_s30 = smov [#allocation10]  }
  0x26   :  { %s49_s29 = sshll.u32 %s4459_s28, 4  ;;  %s59_s8 = sshll.u32 %s4460_s30, 4  ;;  %s50_s29 = int_to_ptr.vmem [resolvable:$true] %s49_s29  ;;  %s60_s8 = int_to_ptr.vmem [resolvable:$true] %s59_s8 }
  0x27   :  { %s4381_s11 = scalar_lea.hbm %s6109_s4, 48 }
  0x28   :  { %p4382_p2 = scmp.ne.s32.totalorder %s6109_s4, %s4381_s11  ;;  %p4385_p3 = scmp.lt.u32.totalorder %s4381_s11, %s6109_s4 }
  0x2a   :  { %p4387_p4 = pnand %p4385_p3, %p4382_p2 }
  0x2c   :  { %4390 = shalt.err (!%p4387_p4)
}
  0x2d   :  { %s4391_s1 = scalar_lea.vmem %s50_s29, 48  ;;  %s4395_s27 = scalar_lea.vmem %s50_s29, 64 }
  0x2e   :  { %p4392_p5 = scmp.ne.s32.totalorder %s50_s29, %s4391_s1  ;;  %p4396_p6 = scmp.lt.s32.totalorder %s50_s29, %s50_s29 }
  0x2f   :  { %p4397_p7 = scmp.lt.s32.totalorder %s4395_s27, %s4391_s1 }
  0x31   :  { %p4398_p8 = por %p4397_p7, %p4396_p6 }
  0x33   :  { %p4399_p9 = pnand %p4398_p8, %p4392_p5 }
  0x35   :  { %4402 = shalt.err (!%p4399_p9)
}
  0x36   :  { %52 = dma.hbm_to_vmem [thread:$0]  %s6109_s4, 48, %s50_s29, [#allocation8]  }
  0x37   :  { %s4403_s20 = scalar_lea.hbm %s6110_s5, 48 }
  0x38   :  { %p4404_p10 = scmp.ne.s32.totalorder %s6110_s5, %s4403_s20  ;;  %p4407_p11 = scmp.lt.u32.totalorder %s4403_s20, %s6110_s5 }
  0x3a   :  { %p4409_p12 = pnand %p4407_p11, %p4404_p10 }
  0x3c   :  { %4412 = shalt.err (!%p4409_p12)
}
  0x3d   :  { %s4413_s24 = scalar_lea.vmem %s60_s8, 48  ;;  %s4417_s25 = scalar_lea.vmem %s60_s8, 64 }
  0x3e   :  { %p4414_p13 = scmp.ne.s32.totalorder %s60_s8, %s4413_s24  ;;  %p4418_p0 = scmp.lt.s32.totalorder %s60_s8, %s60_s8 }
  0x3f   :  { %p4419_p1 = scmp.lt.s32.totalorder %s4417_s25, %s4413_s24 }
  0x41   :  { %p4420_p2 = por %p4419_p1, %p4418_p0 }
  0x43   :  { %p4421_p3 = pnand %p4420_p2, %p4414_p13 }
  0x45   :  { %4424 = shalt.err (!%p4421_p3)
}
  0x46   :  { %62 = dma.hbm_to_vmem [thread:$0]  %s6110_s5, 48, %s60_s8, [#allocation11]  }
  0x47   :  { %4447 = dma.done.wait [#allocation5], 43776  }
  0x48   :  { %4448 = vsyncadd [#allocation5], 4294923520 }
  0x49   :  { %4449 = dma.done.wait [#allocation8], 192  }
  0x4a   :  { %4450 = vsyncadd [#allocation8], 4294967104 }
  0x4b   :  { %4451 = dma.done.wait [#allocation11], 48  }
  0x4c   :  { %4452 = vsyncadd [#allocation11], 4294967248  ;;  %v81_v0 = vld [vmem:[#allocation4 + $0x8] sm:$0xff]  ;;  %v90_v1 = vld [vmem:[#allocation4 + $0x50] sm:$0xff]  ;;  %vm471_vm0 = vcmask 359424   ;;  %vm475_vm1 = vcmask 1043456  }
  0x4d   :  { %v83_v2 = vld [vmem:[#allocation4 + $0x18] sm:$0xff]  ;;  %v3375_v3 = vpack.c.bf16 %v90_v1, %v81_v0  ;;  %v92_v4 = vld [vmem:[#allocation4 + $0x60] sm:$0xff]  ;;  %v89_v6 = vld [vmem:[#allocation4 + $0x48] sm:$0xff]  ;;  %vm4461_vm2 = vmmov 1   ;;  %vm4464_vm4 = vmmov 0   ;;  %vm1331_vm5 = vcmask 130048  }
  0x4e   :  { %v80_v5 = vld [vmem:[#allocation4] sm:$0xff]  ;;  %v3453_v7 = vpack.c.bf16 %v92_v4, %v83_v2  ;;  %v82_v9 = vld [vmem:[#allocation4 + $0x10] sm:$0xff]  ;;  %v91_v10 = vld [vmem:[#allocation4 + $0x58] sm:$0xff]  ;;  %vm2296_vm6 = vcmask 355328  }
  0x4f   :  { %v3377_v8 = vpack.c.bf16 %v89_v6, %v80_v5  ;;  %v99_v11 = vld [vmem:[#allocation4 + $0x98] sm:$0xff]  ;;  %3376 = vmatprep.subr.bf16.mxu0 %v3375_v3  ;;  %v3455_v12 = vpack.c.bf16 %v91_v10, %v82_v9  ;;  %v108_v13 = vld [vmem:[#allocation4 + $0xe0] sm:$0xff]  ;;  %v101_v14 = vld [vmem:[#allocation4 + $0xa8] sm:$0xff] }
  0x50   :  { %v110_v15 = vld [vmem:[#allocation4 + $0xf0] sm:$0xff]  ;;  %3454 = vmatprep.subr.bf16.mxu1 %v3453_v7  ;;  %v3379_v16 = vpack.c.bf16 %v108_v13, %v99_v11  ;;  %v107_v19 = vld [vmem:[#allocation4 + $0xd8] sm:$0xff]  ;;  %v100_v20 = vld [vmem:[#allocation4 + $0xa0] sm:$0xff] }
  0x51   :  { %3378 = vmatpush1.bf16.msra.mxu0 %v3377_v8  ;;  %v3457_v17 = vpack.c.bf16 %v110_v15, %v101_v14  ;;  %v98_v18 = vld [vmem:[#allocation4 + $0x90] sm:$0xff]  ;;  %3456 = vmatpush1.bf16.msra.mxu1 %v3455_v12  ;;  %v109_v22 = vld [vmem:[#allocation4 + $0xe8] sm:$0xff]  ;;  %v119_v27 = vld [vmem:[#allocation4 + $0x138] sm:$0xff] }
  0x52   :  { %v3381_v21 = vpack.c.bf16 %v107_v19, %v98_v18  ;;  %v117_v23 = vld [vmem:[#allocation4 + $0x128] sm:$0xff]  ;;  %v126_v24 = vld [vmem:[#allocation4 + $0x170] sm:$0xff]  ;;  %3380 = vmatprep.subr.bf16.mxu0 %v3379_v16  ;;  %v3459_v25 = vpack.c.bf16 %v109_v22, %v100_v20  ;;  %v128_v28 = vld [vmem:[#allocation4 + $0x180] sm:$0xff] }
  0x53   :  { %3458 = vmatprep.subr.bf16.mxu1 %v3457_v17  ;;  %v3383_v26 = vpack.c.bf16 %v126_v24, %v117_v23  ;;  %v116_v29 = vld [vmem:[#allocation4 + $0x120] sm:$0xff]  ;;  %v3461_v30 = vpack.c.bf16 %v128_v28, %v119_v27  ;;  %v125_v31 = vld [vmem:[#allocation4 + $0x168] sm:$0xff]  ;;  %v118_v32 = vld [vmem:[#allocation4 + $0x130] sm:$0xff] }
  0x54   :  { %v127_v33 = vld [vmem:[#allocation4 + $0x178] sm:$0xff]  ;;  %v3385_v34 = vpack.c.bf16 %v125_v31, %v116_v29  ;;  %v144_v36 = vld [vmem:[#allocation4 + $0x200] sm:$0xff]  ;;  %v137_v37 = vld [vmem:[#allocation4 + $0x1c8] sm:$0xff] }
  0x55   :  { %3382 = vmatpush1.bf16.msra.mxu0 %v3381_v21  ;;  %v135_v35 = vld [vmem:[#allocation4 + $0x1b8] sm:$0xff]  ;;  %3460 = vmatpush1.bf16.msra.mxu1 %v3459_v25  ;;  %v3463_v38 = vpack.c.bf16 %v127_v33, %v118_v32  ;;  %v146_v40 = vld [vmem:[#allocation4 + $0x210] sm:$0xff]  ;;  %v136_v44 = vld [vmem:[#allocation4 + $0x1c0] sm:$0xff] }
  0x56   :  { %3384 = vmatprep.subr.bf16.mxu0 %v3383_v26  ;;  %v3387_v39 = vpack.c.bf16 %v144_v36, %v135_v35  ;;  %v134_v41 = vld [vmem:[#allocation4 + $0x1b0] sm:$0xff]  ;;  %v143_v42 = vld [vmem:[#allocation4 + $0x1f8] sm:$0xff]  ;;  %3462 = vmatprep.subr.bf16.mxu1 %v3461_v30  ;;  %v3465_v43 = vpack.c.bf16 %v146_v40, %v137_v37  ;;  %v145_v45 = vld [vmem:[#allocation4 + $0x208] sm:$0xff] }
  0x57   :  { %v153_v46 = vld [vmem:[#allocation4 + $0x248] sm:$0xff]  ;;  %v162_v47 = vld [vmem:[#allocation4 + $0x290] sm:$0xff]  ;;  %v155_v48 = vld [vmem:[#allocation4 + $0x258] sm:$0xff]  ;;  %v3389_v50 = vpack.c.bf16 %v143_v42, %v134_v41  ;;  %v3467_v51 = vpack.c.bf16 %v145_v45, %v136_v44 }
  0x58   :  { %v164_v49 = vld [vmem:[#allocation4 + $0x2a0] sm:$0xff]  ;;  %v3391_v52 = vpack.c.bf16 %v162_v47, %v153_v46  ;;  %v161_v54 = vld [vmem:[#allocation4 + $0x288] sm:$0xff]  ;;  %v154_v55 = vld [vmem:[#allocation4 + $0x250] sm:$0xff] }
  0x59   :  { %3386 = vmatpush1.bf16.msra.mxu0 %v3385_v34  ;;  %3464 = vmatpush1.bf16.msra.mxu1 %v3463_v38  ;;  %v152_v53 = vld [vmem:[#allocation4 + $0x240] sm:$0xff]  ;;  %v3469_v56 = vpack.c.bf16 %v164_v49, %v155_v48  ;;  %v163_v57 = vld [vmem:[#allocation4 + $0x298] sm:$0xff]  ;;  %v173_v60 = vld [vmem:[#allocation4 + $0x2e8] sm:$0xff] }
  0x5a   :  { %3388 = vmatprep.subr.bf16.mxu0 %v3387_v39  ;;  %3466 = vmatprep.subr.bf16.mxu1 %v3465_v43  ;;  %v171_v58 = vld [vmem:[#allocation4 + $0x2d8] sm:$0xff]  ;;  %v180_v59 = vld [vmem:[#allocation4 + $0x320] sm:$0xff]  ;;  %v182_v61 = vld [vmem:[#allocation4 + $0x330] sm:$0xff]  ;;  %v3393_v62 = vpack.c.bf16 %v161_v54, %v152_v53  ;;  %v3471_v63 = vpack.c.bf16 %v163_v57, %v154_v55 }
  0x5b   :  { %v3395_v0 = vpack.c.bf16 %v180_v59, %v171_v58  ;;  %v170_v1 = vld [vmem:[#allocation4 + $0x2d0] sm:$0xff]  ;;  %v179_v2 = vld [vmem:[#allocation4 + $0x318] sm:$0xff]  ;;  %v172_v3 = vld [vmem:[#allocation4 + $0x2e0] sm:$0xff]  ;;  %v3473_v4 = vpack.c.bf16 %v182_v61, %v173_v60 }
  0x5c   :  { %v181_v5 = vld [vmem:[#allocation4 + $0x328] sm:$0xff]  ;;  %v198_v7 = vld [vmem:[#allocation4 + $0x3b0] sm:$0xff]  ;;  %v191_v8 = vld [vmem:[#allocation4 + $0x378] sm:$0xff]  ;;  %v3397_v10 = vpack.c.bf16 %v179_v2, %v170_v1 }
  0x5d   :  { %3390 = vmatpush1.bf16.msra.mxu0 %v3389_v50  ;;  %3468 = vmatpush1.bf16.msra.mxu1 %v3467_v51  ;;  %v189_v6 = vld [vmem:[#allocation4 + $0x368] sm:$0xff]  ;;  %v200_v9 = vld [vmem:[#allocation4 + $0x3c0] sm:$0xff]  ;;  %v3475_v11 = vpack.c.bf16 %v181_v5, %v172_v3  ;;  %v190_v15 = vld [vmem:[#allocation4 + $0x370] sm:$0xff] }
  0x5e   :  { %3392 = vmatprep.subr.bf16.mxu0 %v3391_v52  ;;  %3470 = vmatprep.subr.bf16.mxu1 %v3469_v56  ;;  %v3399_v12 = vpack.c.bf16 %v198_v7, %v189_v6  ;;  %v188_v13 = vld [vmem:[#allocation4 + $0x360] sm:$0xff]  ;;  %v197_v14 = vld [vmem:[#allocation4 + $0x3a8] sm:$0xff]  ;;  %v3477_v16 = vpack.c.bf16 %v200_v9, %v191_v8  ;;  %v199_v17 = vld [vmem:[#allocation4 + $0x3b8] sm:$0xff] }
  0x5f   :  { %v207_v18 = vld [vmem:[#allocation4 + $0x3f8] sm:$0xff]  ;;  %v216_v19 = vld [vmem:[#allocation4 + $0x440] sm:$0xff]  ;;  %v209_v20 = vld [vmem:[#allocation4 + $0x408] sm:$0xff]  ;;  %v3401_v22 = vpack.c.bf16 %v197_v14, %v188_v13  ;;  %v3479_v23 = vpack.c.bf16 %v199_v17, %v190_v15 }
  0x60   :  { %v218_v21 = vld [vmem:[#allocation4 + $0x450] sm:$0xff]  ;;  %v3403_v24 = vpack.c.bf16 %v216_v19, %v207_v18  ;;  %v215_v26 = vld [vmem:[#allocation4 + $0x438] sm:$0xff]  ;;  %v208_v27 = vld [vmem:[#allocation4 + $0x400] sm:$0xff] }
  0x61   :  { %3394 = vmatpush1.bf16.msra.mxu0 %v3393_v62  ;;  %3472 = vmatpush1.bf16.msra.mxu1 %v3471_v63  ;;  %v206_v25 = vld [vmem:[#allocation4 + $0x3f0] sm:$0xff]  ;;  %v3481_v28 = vpack.c.bf16 %v218_v21, %v209_v20  ;;  %v217_v29 = vld [vmem:[#allocation4 + $0x448] sm:$0xff]  ;;  %v227_v32 = vld [vmem:[#allocation4 + $0x498] sm:$0xff] }
  0x62   :  { %3396 = vmatprep.subr.bf16.mxu0 %v3395_v0  ;;  %3474 = vmatprep.subr.bf16.mxu1 %v3473_v4  ;;  %v225_v30 = vld [vmem:[#allocation4 + $0x488] sm:$0xff]  ;;  %v234_v31 = vld [vmem:[#allocation4 + $0x4d0] sm:$0xff]  ;;  %v236_v33 = vld [vmem:[#allocation4 + $0x4e0] sm:$0xff]  ;;  %v3405_v34 = vpack.c.bf16 %v215_v26, %v206_v25  ;;  %v3483_v35 = vpack.c.bf16 %v217_v29, %v208_v27 }
  0x63   :  { %v3407_v36 = vpack.c.bf16 %v234_v31, %v225_v30  ;;  %v224_v37 = vld [vmem:[#allocation4 + $0x480] sm:$0xff]  ;;  %v233_v38 = vld [vmem:[#allocation4 + $0x4c8] sm:$0xff]  ;;  %v226_v39 = vld [vmem:[#allocation4 + $0x490] sm:$0xff]  ;;  %v3485_v40 = vpack.c.bf16 %v236_v33, %v227_v32 }
  0x64   :  { %v235_v41 = vld [vmem:[#allocation4 + $0x4d8] sm:$0xff]  ;;  %v252_v43 = vld [vmem:[#allocation4 + $0x560] sm:$0xff]  ;;  %v245_v44 = vld [vmem:[#allocation4 + $0x528] sm:$0xff]  ;;  %v3409_v46 = vpack.c.bf16 %v233_v38, %v224_v37 }
  0x65   :  { %3398 = vmatpush1.bf16.msra.mxu0 %v3397_v10  ;;  %3476 = vmatpush1.bf16.msra.mxu1 %v3475_v11  ;;  %v243_v42 = vld [vmem:[#allocation4 + $0x518] sm:$0xff]  ;;  %v254_v45 = vld [vmem:[#allocation4 + $0x570] sm:$0xff]  ;;  %v3487_v47 = vpack.c.bf16 %v235_v41, %v226_v39  ;;  %v244_v51 = vld [vmem:[#allocation4 + $0x520] sm:$0xff] }
  0x66   :  { %3400 = vmatprep.subr.bf16.mxu0 %v3399_v12  ;;  %3478 = vmatprep.subr.bf16.mxu1 %v3477_v16  ;;  %v3411_v48 = vpack.c.bf16 %v252_v43, %v243_v42  ;;  %v242_v49 = vld [vmem:[#allocation4 + $0x510] sm:$0xff]  ;;  %v251_v50 = vld [vmem:[#allocation4 + $0x558] sm:$0xff]  ;;  %v3489_v52 = vpack.c.bf16 %v254_v45, %v245_v44  ;;  %v253_v53 = vld [vmem:[#allocation4 + $0x568] sm:$0xff] }
  0x67   :  { %v261_v54 = vld [vmem:[#allocation4 + $0x5a8] sm:$0xff]  ;;  %v270_v55 = vld [vmem:[#allocation4 + $0x5f0] sm:$0xff]  ;;  %v263_v56 = vld [vmem:[#allocation4 + $0x5b8] sm:$0xff]  ;;  %v3413_v58 = vpack.c.bf16 %v251_v50, %v242_v49  ;;  %v3491_v59 = vpack.c.bf16 %v253_v53, %v244_v51 }
  0x68   :  { %v272_v57 = vld [vmem:[#allocation4 + $0x600] sm:$0xff]  ;;  %v3415_v60 = vpack.c.bf16 %v270_v55, %v261_v54  ;;  %v269_v62 = vld [vmem:[#allocation4 + $0x5e8] sm:$0xff]  ;;  %v262_v63 = vld [vmem:[#allocation4 + $0x5b0] sm:$0xff] }
  0x69   :  { %3402 = vmatpush1.bf16.msra.mxu0 %v3401_v22  ;;  %3480 = vmatpush1.bf16.msra.mxu1 %v3479_v23  ;;  %v260_v61 = vld [vmem:[#allocation4 + $0x5a0] sm:$0xff]  ;;  %v3493_v0 = vpack.c.bf16 %v272_v57, %v263_v56  ;;  %v271_v1 = vld [vmem:[#allocation4 + $0x5f8] sm:$0xff]  ;;  %v281_v4 = vld [vmem:[#allocation4 + $0x648] sm:$0xff] }
  0x6a   :  { %3404 = vmatprep.subr.bf16.mxu0 %v3403_v24  ;;  %3482 = vmatprep.subr.bf16.mxu1 %v3481_v28  ;;  %v279_v2 = vld [vmem:[#allocation4 + $0x638] sm:$0xff]  ;;  %v288_v3 = vld [vmem:[#allocation4 + $0x680] sm:$0xff]  ;;  %v290_v5 = vld [vmem:[#allocation4 + $0x690] sm:$0xff]  ;;  %v3417_v6 = vpack.c.bf16 %v269_v62, %v260_v61  ;;  %v3495_v8 = vpack.c.bf16 %v271_v1, %v262_v63 }
  0x6b   :  { %v278_v7 = vld [vmem:[#allocation4 + $0x630] sm:$0xff]  ;;  %v3419_v9 = vpack.c.bf16 %v288_v3, %v279_v2  ;;  %v287_v10 = vld [vmem:[#allocation4 + $0x678] sm:$0xff]  ;;  %v280_v11 = vld [vmem:[#allocation4 + $0x640] sm:$0xff]  ;;  %v3497_v13 = vpack.c.bf16 %v290_v5, %v281_v4 }
  0x6c   :  { %v289_v12 = vld [vmem:[#allocation4 + $0x688] sm:$0xff]  ;;  %v306_v15 = vld [vmem:[#allocation4 + $0x710] sm:$0xff]  ;;  %v4566_v16 = vld [vmem:[%s6105_s0 + $0x8] sm:$0xff]  ;;  %v3421_v19 = vpack.c.bf16 %v287_v10, %v278_v7 }
  0x6d   :  { %3406 = vmatpush1.bf16.msra.mxu0 %v3405_v34  ;;  %3484 = vmatpush1.bf16.msra.mxu1 %v3483_v35  ;;  %v297_v14 = vld [vmem:[#allocation4 + $0x6c8] sm:$0xff]  ;;  %v299_v17 = vld [vmem:[#allocation4 + $0x6d8] sm:$0xff]  ;;  %v308_v18 = vld [vmem:[#allocation4 + $0x720] sm:$0xff]  ;;  %1260 = vst [vmem:[#allocation2 + $0x8] sm:$0xff] %v4566_v16  ;;  %v3499_v21 = vpack.c.bf16 %v289_v12, %v280_v11 }
  0x6e   :  { %3408 = vmatprep.subr.bf16.mxu0 %v3407_v36  ;;  %3486 = vmatprep.subr.bf16.mxu1 %v3485_v40  ;;  %v4574_v20 = vld [vmem:[%s6105_s0] sm:$0xff]  ;;  %v3423_v22 = vpack.c.bf16 %v306_v15, %v297_v14  ;;  %v296_v23 = vld [vmem:[#allocation4 + $0x6c0] sm:$0xff]  ;;  %v305_v24 = vld [vmem:[#allocation4 + $0x708] sm:$0xff]  ;;  %v3501_v26 = vpack.c.bf16 %v308_v18, %v299_v17 }
  0x6f   :  { %567 = vmatprep.mubr.f32.mxu0 %v4566_v16  ;;  %709 = vmatprep.mubr.f32.mxu1 %v4566_v16  ;;  %v298_v25 = vld [vmem:[#allocation4 + $0x6d0] sm:$0xff]  ;;  %1259 = vst [vmem:[#allocation2] sm:$0xff] %v4574_v20  ;;  %v307_v27 = vld [vmem:[#allocation4 + $0x718] sm:$0xff]  ;;  %v324_v29 = vld [vmem:[#allocation4 + $0x7a0] sm:$0xff]  ;;  %v3425_v32 = vpack.c.bf16 %v305_v24, %v296_v23 }
  0x70   :  { %v315_v28 = vld [vmem:[#allocation4 + $0x758] sm:$0xff]  ;;  %v317_v30 = vld [vmem:[#allocation4 + $0x768] sm:$0xff]  ;;  %v326_v31 = vld [vmem:[#allocation4 + $0x7b0] sm:$0xff]  ;;  %v3503_v33 = vpack.c.bf16 %v307_v27, %v298_v25 }
  0x71   :  { %3410 = vmatpush1.bf16.msra.mxu0 %v3409_v46  ;;  %3488 = vmatpush1.bf16.msra.mxu1 %v3487_v47  ;;  %v3427_v34 = vpack.c.bf16 %v324_v29, %v315_v28  ;;  %v314_v35 = vld [vmem:[#allocation4 + $0x750] sm:$0xff]  ;;  %v323_v36 = vld [vmem:[#allocation4 + $0x798] sm:$0xff]  ;;  %v316_v37 = vld [vmem:[#allocation4 + $0x760] sm:$0xff]  ;;  %v3505_v38 = vpack.c.bf16 %v326_v31, %v317_v30 }
  0x72   :  { %3412 = vmatprep.subr.bf16.mxu0 %v3411_v48  ;;  %3490 = vmatprep.subr.bf16.mxu1 %v3489_v52  ;;  %v325_v39 = vld [vmem:[#allocation4 + $0x7a8] sm:$0xff]  ;;  %v342_v41 = vld [vmem:[#allocation4 + $0x830] sm:$0xff]  ;;  %v335_v42 = vld [vmem:[#allocation4 + $0x7f8] sm:$0xff]  ;;  %v3429_v45 = vpack.c.bf16 %v323_v36, %v314_v35 }
  0x73   :  { %v333_v40 = vld [vmem:[#allocation4 + $0x7e8] sm:$0xff]  ;;  %v344_v43 = vld [vmem:[#allocation4 + $0x840] sm:$0xff]  ;;  %v3507_v46 = vpack.c.bf16 %v325_v39, %v316_v37  ;;  %v334_v50 = vld [vmem:[#allocation4 + $0x7f0] sm:$0xff] }
  0x74   :  { %v4580_v44 = vld [vmem:[%s6105_s0 + $0x10] sm:$0xff]  ;;  %v3431_v47 = vpack.c.bf16 %v342_v41, %v333_v40  ;;  %v341_v49 = vld [vmem:[#allocation4 + $0x828] sm:$0xff]  ;;  %v3509_v51 = vpack.c.bf16 %v344_v43, %v335_v42  ;;  %v343_v52 = vld [vmem:[#allocation4 + $0x838] sm:$0xff]  ;;  %v4462_v40 = vmov 0.0  }
  0x75   :  { %3414 = vmatpush1.bf16.msra.mxu0 %v3413_v58  ;;  %3492 = vmatpush1.bf16.msra.mxu1 %v3491_v59  ;;  %1261 = vst.msk [vmem:[#allocation2 + $0x10] sm:$0xff] %vm471_vm0, %v4580_v44  ;;  %v332_v48 = vld [vmem:[#allocation4 + $0x7e0] sm:$0xff]  ;;  %v351_v53 = vld [vmem:[#allocation4 + $0x878] sm:$0xff]  ;;  %v353_v55 = vld [vmem:[#allocation4 + $0x888] sm:$0xff]  ;;  %v3511_v58 = vpack.c.bf16 %v343_v52, %v334_v50 }
  0x76   :  { %3416 = vmatprep.subr.bf16.mxu0 %v3415_v60  ;;  %3494 = vmatprep.subr.bf16.mxu1 %v3493_v0  ;;  %v360_v54 = vld [vmem:[#allocation4 + $0x8c0] sm:$0xff]  ;;  %v362_v56 = vld [vmem:[#allocation4 + $0x8d0] sm:$0xff]  ;;  %v3433_v57 = vpack.c.bf16 %v341_v49, %v332_v48  ;;  %v359_v61 = vld [vmem:[#allocation4 + $0x8b8] sm:$0xff] }
  0x77   :  { %v3435_v59 = vpack.c.bf16 %v360_v54, %v351_v53  ;;  %v350_v60 = vld [vmem:[#allocation4 + $0x870] sm:$0xff]  ;;  %v352_v62 = vld [vmem:[#allocation4 + $0x880] sm:$0xff]  ;;  %v3513_v63 = vpack.c.bf16 %v362_v56, %v353_v55  ;;  %v361_v0 = vld [vmem:[#allocation4 + $0x8c8] sm:$0xff] }
  0x78   :  { %v369_v1 = vld [vmem:[#allocation4 + $0x908] sm:$0xff]  ;;  %v378_v2 = vld [vmem:[#allocation4 + $0x950] sm:$0xff]  ;;  %v371_v3 = vld [vmem:[#allocation4 + $0x918] sm:$0xff]  ;;  %v3437_v5 = vpack.c.bf16 %v359_v61, %v350_v60 }
  0x79   :  { %3418 = vmatpush1.bf16.msra.mxu0 %v3417_v6  ;;  %3496 = vmatpush1.bf16.msra.mxu1 %v3495_v8  ;;  %v380_v4 = vld [vmem:[#allocation4 + $0x960] sm:$0xff]  ;;  %v3515_v6 = vpack.c.bf16 %v361_v0, %v352_v62  ;;  %v3439_v7 = vpack.c.bf16 %v378_v2, %v369_v1  ;;  %v370_v10 = vld [vmem:[#allocation4 + $0x910] sm:$0xff]  ;;  %v379_v12 = vld [vmem:[#allocation4 + $0x958] sm:$0xff] }
  0x7a   :  { %3420 = vmatprep.subr.bf16.mxu0 %v3419_v9  ;;  %3498 = vmatprep.subr.bf16.mxu1 %v3497_v13  ;;  %v368_v8 = vld [vmem:[#allocation4 + $0x900] sm:$0xff]  ;;  %v377_v9 = vld [vmem:[#allocation4 + $0x948] sm:$0xff]  ;;  %v3517_v11 = vpack.c.bf16 %v380_v4, %v371_v3  ;;  %v387_v13 = vld [vmem:[#allocation4 + $0x998] sm:$0xff] }
  0x7b   :  { %v396_v14 = vld [vmem:[#allocation4 + $0x9e0] sm:$0xff]  ;;  %v389_v15 = vld [vmem:[#allocation4 + $0x9a8] sm:$0xff]  ;;  %v398_v17 = vld [vmem:[#allocation4 + $0x9f0] sm:$0xff]  ;;  %v3441_v18 = vpack.c.bf16 %v377_v9, %v368_v8 }
  0x7c   :  { %v395_v23 = vld [vmem:[#allocation4 + $0x9d8] sm:$0xff]  ;;  %v388_v24 = vld [vmem:[#allocation4 + $0x9a0] sm:$0xff]  ;;  %v3521_v25 = vpack.c.bf16 %v398_v17, %v389_v15  ;;  %v405_v27 = vld [vmem:[#allocation4 + $0xa28] sm:$0xff] }
  0x7d   :  { %3422 = vmatpush1.bf16.msra.mxu0 %v3421_v19  ;;  %3500 = vmatpush1.bf16.msra.mxu1 %v3499_v21  ;;  %v3519_v19 = vpack.c.bf16 %v379_v12, %v370_v10  ;;  %v3443_v21 = vpack.c.bf16 %v396_v14, %v387_v13  ;;  %v414_v28 = vld [vmem:[#allocation4 + $0xa70] sm:$0xf]  ;;  %v407_v29 = vld [vmem:[#allocation4 + $0xa38] sm:$0xff]  ;;  %v416_v30 = vld [vmem:[#allocation4 + $0xa80] sm:$0xf] }
  0x7e   :  { %3424 = vmatprep.subr.bf16.mxu0 %v3423_v22  ;;  %3502 = vmatprep.subr.bf16.mxu1 %v3501_v26  ;;  %v386_v22 = vld [vmem:[#allocation4 + $0x990] sm:$0xff]  ;;  %v397_v26 = vld [vmem:[#allocation4 + $0x9e8] sm:$0xff]  ;;  %vm4587_vm3 = vmpackc.low %vm475_vm1, %vm4461_vm2 }
  0x7f   :  { %v3445_v31 = vpack.c.bf16 %v395_v23, %v386_v22  ;;  %v404_v35 = vld [vmem:[#allocation4 + $0xa20] sm:$0xff]  ;;  %v413_v36 = vld [vmem:[#allocation4 + $0xa68] sm:$0xf]  ;;  %v406_v37 = vld [vmem:[#allocation4 + $0xa30] sm:$0xff] }
  0x80   :  { %v415_v39 = vld [vmem:[#allocation4 + $0xa78] sm:$0xf]  ;;  %v85_v41 = vld [vmem:[#allocation4 + $0x28] sm:$0xff]  ;;  %v94_v42 = vld [vmem:[#allocation4 + $0x70] sm:$0xff] }
  0x81   :  { %3426 = vmatpush1.bf16.msra.mxu0 %v3425_v32  ;;  %3504 = vmatpush1.bf16.msra.mxu1 %v3503_v33  ;;  %v3523_v33 = vpack.c.bf16 %v397_v26, %v388_v24  ;;  %v87_v43 = vld [vmem:[#allocation4 + $0x38] sm:$0xff]  ;;  %v3531_v48 = vpack.c.bf16 %v94_v42, %v85_v41  ;;  %v84_v49 = vld [vmem:[#allocation4 + $0x20] sm:$0xff]  ;;  %v93_v50 = vld [vmem:[#allocation4 + $0x68] sm:$0xff] }
  0x82   :  { %3428 = vmatprep.subr.bf16.mxu0 %v3427_v34  ;;  %3506 = vmatprep.subr.bf16.mxu1 %v3505_v38  ;;  %v3447_v34 = vpack.c.bf16 %v414_v28, %v405_v27  ;;  %v3525_v38 = vpack.c.bf16 %v416_v30, %v407_v29  ;;  %v95_v53 = vld [vmem:[#allocation4 + $0x78] sm:$0xff]  ;;  %v112_v55 = vld [vmem:[#allocation4 + $0x100] sm:$0xff]  ;;  %v105_v56 = vld [vmem:[#allocation4 + $0xc8] sm:$0xff] }
  0x83   :  { %v103_v54 = vld [vmem:[#allocation4 + $0xb8] sm:$0xff]  ;;  %v102_v61 = vld [vmem:[#allocation4 + $0xb0] sm:$0xff]  ;;  %v113_v1 = vld [vmem:[#allocation4 + $0x108] sm:$0xff] }
  0x84   :  { %v3535_v60 = vpack.c.bf16 %v112_v55, %v103_v54  ;;  %v111_v62 = vld [vmem:[#allocation4 + $0xf8] sm:$0xff]  ;;  %v121_v2 = vld [vmem:[#allocation4 + $0x148] sm:$0xff]  ;;  %v130_v3 = vld [vmem:[#allocation4 + $0x190] sm:$0xff] }
  0x85   :  { %3430 = vmatpush1.bf16.msra.mxu0 %v3429_v45  ;;  %3508 = vmatpush1.bf16.msra.mxu1 %v3507_v46  ;;  %v96_v45 = vld [vmem:[#allocation4 + $0x80] sm:$0xff]  ;;  %v3450_v46 = vpack.c.bf16 %v413_v36, %v404_v35  ;;  %v123_v4 = vld [vmem:[#allocation4 + $0x158] sm:$0xff]  ;;  %v3539_v8 = vpack.c.bf16 %v130_v3, %v121_v2  ;;  %v129_v10 = vld [vmem:[#allocation4 + $0x188] sm:$0xff] }
  0x86   :  { %3432 = vmatprep.subr.bf16.mxu0 %v3431_v47  ;;  %3510 = vmatprep.subr.bf16.mxu1 %v3509_v51  ;;  %v3528_v47 = vpack.c.bf16 %v415_v39, %v406_v37  ;;  %v86_v51 = vld [vmem:[#allocation4 + $0x30] sm:$0xff]  ;;  %v3609_v52 = vpack.c.bf16 %v96_v45, %v87_v43  ;;  %v120_v9 = vld [vmem:[#allocation4 + $0x140] sm:$0xff]  ;;  %v131_v13 = vld [vmem:[#allocation4 + $0x198] sm:$0xff] }
  0x87   :  { %v139_v14 = vld [vmem:[#allocation4 + $0x1d8] sm:$0xff]  ;;  %v148_v15 = vld [vmem:[#allocation4 + $0x220] sm:$0xff]  ;;  %v141_v17 = vld [vmem:[#allocation4 + $0x1e8] sm:$0xff] }
  0x88   :  { %v3543_v22 = vpack.c.bf16 %v148_v15, %v139_v14  ;;  %v138_v23 = vld [vmem:[#allocation4 + $0x1d0] sm:$0xff]  ;;  %v147_v24 = vld [vmem:[#allocation4 + $0x218] sm:$0xff]  ;;  %v149_v27 = vld [vmem:[#allocation4 + $0x228] sm:$0xff] }
  0x89   :  { %3434 = vmatpush1.bf16.msra.mxu0 %v3433_v57  ;;  %3512 = vmatpush1.bf16.msra.mxu1 %v3511_v58  ;;  %v114_v57 = vld [vmem:[#allocation4 + $0x110] sm:$0xff]  ;;  %v3533_v58 = vpack.c.bf16 %v93_v50, %v84_v49  ;;  %v157_v28 = vld [vmem:[#allocation4 + $0x268] sm:$0xff]  ;;  %v159_v30 = vld [vmem:[#allocation4 + $0x278] sm:$0xff] }
  0x8a   :  { %3436 = vmatprep.subr.bf16.mxu0 %v3435_v59  ;;  %3514 = vmatprep.subr.bf16.mxu1 %v3513_v63  ;;  %v3611_v59 = vpack.c.bf16 %v95_v53, %v86_v51  ;;  %v104_v63 = vld [vmem:[#allocation4 + $0xc0] sm:$0xff]  ;;  %v3613_v0 = vpack.c.bf16 %v114_v57, %v105_v56  ;;  %v166_v29 = vld [vmem:[#allocation4 + $0x2b0] sm:$0xff]  ;;  %v165_v37 = vld [vmem:[#allocation4 + $0x2a8] sm:$0xff] }
  0x8b   :  { %v3547_v35 = vpack.c.bf16 %v166_v29, %v157_v28  ;;  %v156_v36 = vld [vmem:[#allocation4 + $0x260] sm:$0xff]  ;;  %v167_v41 = vld [vmem:[#allocation4 + $0x2b8] sm:$0xff]  ;;  %v177_v45 = vld [vmem:[#allocation4 + $0x308] sm:$0xff] }
  0x8c   :  { %v175_v42 = vld [vmem:[#allocation4 + $0x2f8] sm:$0xff]  ;;  %v184_v43 = vld [vmem:[#allocation4 + $0x340] sm:$0xff]  ;;  %v174_v50 = vld [vmem:[#allocation4 + $0x2f0] sm:$0xff] }
  0x8d   :  { %3438 = vmatpush1.bf16.msra.mxu0 %v3437_v5  ;;  %3516 = vmatpush1.bf16.msra.mxu1 %v3515_v6  ;;  %v132_v5 = vld [vmem:[#allocation4 + $0x1a0] sm:$0xff]  ;;  %v3537_v6 = vpack.c.bf16 %v111_v62, %v102_v61  ;;  %v3551_v49 = vpack.c.bf16 %v184_v43, %v175_v42  ;;  %v183_v51 = vld [vmem:[#allocation4 + $0x338] sm:$0xff]  ;;  %v185_v54 = vld [vmem:[#allocation4 + $0x348] sm:$0xff] }
  0x8e   :  { %3440 = vmatprep.subr.bf16.mxu0 %v3439_v7  ;;  %3518 = vmatprep.subr.bf16.mxu1 %v3517_v11  ;;  %v3615_v7 = vpack.c.bf16 %v113_v1, %v104_v63  ;;  %v122_v11 = vld [vmem:[#allocation4 + $0x150] sm:$0xff]  ;;  %v3617_v12 = vpack.c.bf16 %v132_v5, %v123_v4  ;;  %v193_v55 = vld [vmem:[#allocation4 + $0x388] sm:$0xff]  ;;  %v195_v57 = vld [vmem:[#allocation4 + $0x398] sm:$0xff] }
  0x8f   :  { %v202_v56 = vld [vmem:[#allocation4 + $0x3d0] sm:$0xff]  ;;  %v192_v62 = vld [vmem:[#allocation4 + $0x380] sm:$0xff]  ;;  %v201_v63 = vld [vmem:[#allocation4 + $0x3c8] sm:$0xff] }
  0x90   :  { %568 = vmatmul.mubr.f32.vlgmr.msra.gmra.mrb[0].mxu0 %v4574_v20  ;;  %710 = vmatmul.mubr.f32.vlgmr.msra.gmra.mrb[0].mxu1 %v4574_v20  ;;  %v3555_v61 = vpack.c.bf16 %v202_v56, %v193_v55  ;;  %v203_v2 = vld [vmem:[#allocation4 + $0x3d8] sm:$0xff]  ;;  %v220_v4 = vld [vmem:[#allocation4 + $0x460] sm:$0xff]  ;;  %v213_v5 = vld [vmem:[#allocation4 + $0x428] sm:$0xff] }
  0x91   :  { %3442 = vmatpush1.bf16.msra.mxu0 %v3441_v18  ;;  %3520 = vmatpush1.bf16.msra.mxu1 %v3519_v19  ;;  %v150_v18 = vld [vmem:[#allocation4 + $0x230] sm:$0xff]  ;;  %v3541_v19 = vpack.c.bf16 %v129_v10, %v120_v9  ;;  %v211_v3 = vld [vmem:[#allocation4 + $0x418] sm:$0xff]  ;;  %v221_v14 = vld [vmem:[#allocation4 + $0x468] sm:$0xff] }
  0x92   :  { %3444 = vmatprep.subr.bf16.mxu0 %v3443_v21  ;;  %3522 = vmatprep.subr.bf16.mxu1 %v3521_v25  ;;  %v3619_v21 = vpack.c.bf16 %v131_v13, %v122_v11  ;;  %v140_v25 = vld [vmem:[#allocation4 + $0x1e0] sm:$0xff]  ;;  %v3621_v26 = vpack.c.bf16 %v150_v18, %v141_v17  ;;  %v3559_v9 = vpack.c.bf16 %v220_v4, %v211_v3  ;;  %v210_v10 = vld [vmem:[#allocation4 + $0x410] sm:$0xff]  ;;  %v219_v11 = vld [vmem:[#allocation4 + $0x458] sm:$0xff] }
  0x93   :  { %638 = vmatprep.mubr.f32.mxu0 %v4462_v40  ;;  %780 = vmatprep.mubr.f32.mxu1 %v4462_v40  ;;  %v229_v15 = vld [vmem:[#allocation4 + $0x4a8] sm:$0xff]  ;;  %v238_v17 = vld [vmem:[#allocation4 + $0x4f0] sm:$0xff]  ;;  %v231_v18 = vld [vmem:[#allocation4 + $0x4b8] sm:$0xff] }
  0x94   :  { %v239_v28 = vld [vmem:[#allocation4 + $0x4f8] sm:$0xff]  ;;  %v257_v42 = vld [vmem:[#allocation4 + $0x588] sm:$0xff] }
  0x95   :  { %3446 = vmatpush1.bf16.msra.mxu0 %v3445_v31  ;;  %3524 = vmatpush1.bf16.msra.mxu1 %v3523_v33  ;;  %v168_v31 = vld [vmem:[#allocation4 + $0x2c0] sm:$0xff]  ;;  %v3545_v33 = vpack.c.bf16 %v147_v24, %v138_v23  ;;  %v3563_v23 = vpack.c.bf16 %v238_v17, %v229_v15  ;;  %v247_v29 = vld [vmem:[#allocation4 + $0x538] sm:$0xff]  ;;  %v265_v43 = vld [vmem:[#allocation4 + $0x5c8] sm:$0xff] }
  0x96   :  { %3449 = vmatprep.subr.msk.bf16.mxu0 %vm4587_vm3, %v3447_v34  ;;  %3527 = vmatprep.subr.msk.bf16.mxu1 %vm4587_vm3, %v3525_v38  ;;  %v3623_v34 = vpack.c.bf16 %v149_v27, %v140_v25  ;;  %v158_v38 = vld [vmem:[#allocation4 + $0x270] sm:$0xff]  ;;  %v3625_v39 = vpack.c.bf16 %v168_v31, %v159_v30  ;;  %v228_v24 = vld [vmem:[#allocation4 + $0x4a0] sm:$0xff]  ;;  %v237_v25 = vld [vmem:[#allocation4 + $0x4e8] sm:$0xff] }
  0x97   :  { %v256_v30 = vld [vmem:[#allocation4 + $0x580] sm:$0xff]  ;;  %v249_v31 = vld [vmem:[#allocation4 + $0x548] sm:$0xff]  ;;  %v275_v55 = vld [vmem:[#allocation4 + $0x618] sm:$0xff] }
  0x98   :  { %v283_v56 = vld [vmem:[#allocation4 + $0x658] sm:$0xff]  ;;  %v293_v3 = vld [vmem:[#allocation4 + $0x6a8] sm:$0xff] }
  0x99   :  { %3452 = vmatpush1.bf16.msk.msra.mxu0 %vm4587_vm3, %v3450_v46  ;;  %3530 = vmatpush1.bf16.msk.msra.mxu1 %vm4587_vm3, %v3528_v47  ;;  %v186_v46 = vld [vmem:[#allocation4 + $0x350] sm:$0xff]  ;;  %v3549_v47 = vpack.c.bf16 %v165_v37, %v156_v36  ;;  %v3567_v36 = vpack.c.bf16 %v256_v30, %v247_v29  ;;  %v301_v4 = vld [vmem:[#allocation4 + $0x6e8] sm:$0xff]  ;;  %v311_v15 = vld [vmem:[#allocation4 + $0x738] sm:$0xff] }
  0x9a   :  { %3532 = vmatprep.subr.bf16.mxu0 %v3531_v48  ;;  %3610 = vmatprep.subr.bf16.mxu1 %v3609_v52  ;;  %v3627_v48 = vpack.c.bf16 %v167_v41, %v158_v38  ;;  %v176_v52 = vld [vmem:[#allocation4 + $0x300] sm:$0xff]  ;;  %v3629_v53 = vpack.c.bf16 %v186_v46, %v177_v45  ;;  %v246_v37 = vld [vmem:[#allocation4 + $0x530] sm:$0xff]  ;;  %v255_v38 = vld [vmem:[#allocation4 + $0x578] sm:$0xff] }
  0x9b   :  { %v274_v45 = vld [vmem:[#allocation4 + $0x610] sm:$0xff]  ;;  %v267_v46 = vld [vmem:[#allocation4 + $0x5d8] sm:$0xff]  ;;  %v329_v29 = vld [vmem:[#allocation4 + $0x7c8] sm:$0xff] }
  0x9c   :  { %3123 = vmatmul.mubr.msk.f32.vlgmr.msra.gmra.mrb[0].mxu0 %vm471_vm0, %v4580_v44  ;;  %3126 = vmatmul.mubr.msk.f32.vlgmr.msra.gmra.mrb[0].mxu1 %vm471_vm0, %v4580_v44  ;;  %v319_v17 = vld [vmem:[#allocation4 + $0x778] sm:$0xff]  ;;  %v337_v30 = vld [vmem:[#allocation4 + $0x808] sm:$0xff] }
  0x9d   :  { %3534 = vmatpush1.bf16.msra.mxu0 %v3533_v58  ;;  %3612 = vmatpush1.bf16.msra.mxu1 %v3611_v59  ;;  %v204_v58 = vld [vmem:[#allocation4 + $0x3e0] sm:$0xff]  ;;  %v3553_v59 = vpack.c.bf16 %v183_v51, %v174_v50  ;;  %v3571_v50 = vpack.c.bf16 %v274_v45, %v265_v43  ;;  %v347_v43 = vld [vmem:[#allocation4 + $0x858] sm:$0xff] }
  0x9e   :  { %3536 = vmatprep.subr.bf16.mxu0 %v3535_v60  ;;  %3614 = vmatprep.subr.bf16.mxu1 %v3613_v0  ;;  %v3631_v60 = vpack.c.bf16 %v185_v54, %v176_v52  ;;  %v194_v0 = vld [vmem:[#allocation4 + $0x390] sm:$0xff]  ;;  %v3633_v1 = vpack.c.bf16 %v204_v58, %v195_v57  ;;  %v264_v51 = vld [vmem:[#allocation4 + $0x5c0] sm:$0xff]  ;;  %v273_v52 = vld [vmem:[#allocation4 + $0x608] sm:$0xff] }
  0x9f   :  { %851 = vmatprep.mubr.f32.mxu0 %v4566_v16  ;;  %993 = vmatprep.mubr.f32.mxu1 %v4566_v16  ;;  %v292_v57 = vld [vmem:[#allocation4 + $0x6a0] sm:$0xff]  ;;  %v285_v58 = vld [vmem:[#allocation4 + $0x668] sm:$0xff]  ;;  %v355_v45 = vld [vmem:[#allocation4 + $0x898] sm:$0xff] }
  0xa1   :  { %3538 = vmatpush1.bf16.msra.mxu0 %v3537_v6  ;;  %3616 = vmatpush1.bf16.msra.mxu1 %v3615_v7  ;;  %v222_v6 = vld [vmem:[#allocation4 + $0x470] sm:$0xff]  ;;  %v3557_v7 = vpack.c.bf16 %v201_v63, %v192_v62  ;;  %v3575_v62 = vpack.c.bf16 %v292_v57, %v283_v56  ;;  %v365_v56 = vld [vmem:[#allocation4 + $0x8e8] sm:$0xff] }
  0xa2   :  { %3540 = vmatprep.subr.bf16.mxu0 %v3539_v8  ;;  %3618 = vmatprep.subr.bf16.mxu1 %v3617_v12  ;;  %v3635_v8 = vpack.c.bf16 %v203_v2, %v194_v0  ;;  %v212_v12 = vld [vmem:[#allocation4 + $0x420] sm:$0xff]  ;;  %v3637_v13 = vpack.c.bf16 %v222_v6, %v213_v5  ;;  %v282_v63 = vld [vmem:[#allocation4 + $0x650] sm:$0xff]  ;;  %v291_v0 = vld [vmem:[#allocation4 + $0x698] sm:$0xff] }
  0xa3   :  { %v310_v5 = vld [vmem:[#allocation4 + $0x730] sm:$0xff]  ;;  %v303_v6 = vld [vmem:[#allocation4 + $0x6f8] sm:$0xff]  ;;  %v373_v57 = vld [vmem:[#allocation4 + $0x928] sm:$0xff] }
  0xa5   :  { %3542 = vmatpush1.bf16.msra.mxu0 %v3541_v19  ;;  %3620 = vmatpush1.bf16.msra.mxu1 %v3619_v21  ;;  %v240_v19 = vld [vmem:[#allocation4 + $0x500] sm:$0xff]  ;;  %v3561_v21 = vpack.c.bf16 %v219_v11, %v210_v10  ;;  %v3579_v10 = vpack.c.bf16 %v310_v5, %v301_v4  ;;  %v383_v4 = vld [vmem:[#allocation4 + $0x978] sm:$0xff] }
  0xa6   :  { %3544 = vmatprep.subr.bf16.mxu0 %v3543_v22  ;;  %3622 = vmatprep.subr.bf16.mxu1 %v3621_v26  ;;  %v3639_v22 = vpack.c.bf16 %v221_v14, %v212_v12  ;;  %v230_v26 = vld [vmem:[#allocation4 + $0x4b0] sm:$0xff]  ;;  %v3641_v27 = vpack.c.bf16 %v240_v19, %v231_v18  ;;  %v300_v11 = vld [vmem:[#allocation4 + $0x6e0] sm:$0xff]  ;;  %v309_v12 = vld [vmem:[#allocation4 + $0x728] sm:$0xff] }
  0xa7   :  { %v328_v18 = vld [vmem:[#allocation4 + $0x7c0] sm:$0xff]  ;;  %v321_v19 = vld [vmem:[#allocation4 + $0x788] sm:$0xff]  ;;  %v391_v5 = vld [vmem:[#allocation4 + $0x9b8] sm:$0xff] }
  0xa9   :  { %3546 = vmatpush1.bf16.msra.mxu0 %v3545_v33  ;;  %3624 = vmatpush1.bf16.msra.mxu1 %v3623_v34  ;;  %v258_v33 = vld [vmem:[#allocation4 + $0x590] sm:$0xff]  ;;  %v3565_v34 = vpack.c.bf16 %v237_v25, %v228_v24  ;;  %v3583_v24 = vpack.c.bf16 %v328_v18, %v319_v17  ;;  %v401_v17 = vld [vmem:[#allocation4 + $0xa08] sm:$0xff] }
  0xaa   :  { %3548 = vmatprep.subr.bf16.mxu0 %v3547_v35  ;;  %3626 = vmatprep.subr.bf16.mxu1 %v3625_v39  ;;  %v3643_v35 = vpack.c.bf16 %v239_v28, %v230_v26  ;;  %v248_v39 = vld [vmem:[#allocation4 + $0x540] sm:$0xff]  ;;  %v3645_v41 = vpack.c.bf16 %v258_v33, %v249_v31  ;;  %v318_v25 = vld [vmem:[#allocation4 + $0x770] sm:$0xff]  ;;  %v327_v26 = vld [vmem:[#allocation4 + $0x7b8] sm:$0xff] }
  0xab   :  { %v346_v31 = vld [vmem:[#allocation4 + $0x850] sm:$0xff]  ;;  %v339_v33 = vld [vmem:[#allocation4 + $0x818] sm:$0xff]  ;;  %v409_v18 = vld [vmem:[#allocation4 + $0xa48] sm:$0xff] }
  0xad   :  { %3550 = vmatpush1.bf16.msra.mxu0 %v3549_v47  ;;  %3628 = vmatpush1.bf16.msra.mxu1 %v3627_v48  ;;  %v276_v47 = vld [vmem:[#allocation4 + $0x620] sm:$0xff]  ;;  %v3569_v48 = vpack.c.bf16 %v255_v38, %v246_v37  ;;  %v3587_v37 = vpack.c.bf16 %v346_v31, %v337_v30  ;;  %v419_v30 = vld [vmem:[#allocation4 + $0xa98] sm:$0xf] }
  0xae   :  { %3552 = vmatprep.subr.bf16.mxu0 %v3551_v49  ;;  %3630 = vmatprep.subr.bf16.mxu1 %v3629_v53  ;;  %v3647_v49 = vpack.c.bf16 %v257_v42, %v248_v39  ;;  %v266_v53 = vld [vmem:[#allocation4 + $0x5d0] sm:$0xff]  ;;  %v3649_v54 = vpack.c.bf16 %v276_v47, %v267_v46  ;;  %v336_v38 = vld [vmem:[#allocation4 + $0x800] sm:$0xff]  ;;  %v345_v39 = vld [vmem:[#allocation4 + $0x848] sm:$0xff] }
  0xaf   :  { %v364_v46 = vld [vmem:[#allocation4 + $0x8e0] sm:$0xff]  ;;  %v357_v47 = vld [vmem:[#allocation4 + $0x8a8] sm:$0xff] }
  0xb0   :  { %v232_v31 = vld [vmem:[#allocation4 + $0x4c0] sm:$0xff] }
  0xb1   :  { %3554 = vmatpush1.bf16.msra.mxu0 %v3553_v59  ;;  %3632 = vmatpush1.bf16.msra.mxu1 %v3631_v60  ;;  %v294_v59 = vld [vmem:[#allocation4 + $0x6b0] sm:$0xff]  ;;  %v3573_v60 = vpack.c.bf16 %v273_v52, %v264_v51  ;;  %v3591_v51 = vpack.c.bf16 %v364_v46, %v355_v45 }
  0xb2   :  { %3556 = vmatprep.subr.bf16.mxu0 %v3555_v61  ;;  %3634 = vmatprep.subr.bf16.mxu1 %v3633_v1  ;;  %v3651_v61 = vpack.c.bf16 %v275_v55, %v266_v53  ;;  %v284_v1 = vld [vmem:[#allocation4 + $0x660] sm:$0xff]  ;;  %v3653_v2 = vpack.c.bf16 %v294_v59, %v285_v58  ;;  %v354_v52 = vld [vmem:[#allocation4 + $0x890] sm:$0xff]  ;;  %v363_v53 = vld [vmem:[#allocation4 + $0x8d8] sm:$0xff] }
  0xb3   :  { %v382_v58 = vld [vmem:[#allocation4 + $0x970] sm:$0xff]  ;;  %v375_v59 = vld [vmem:[#allocation4 + $0x938] sm:$0xff] }
  0xb4   :  { %v106_v46 = vld [vmem:[#allocation4 + $0xd0] sm:$0xff] }
  0xb5   :  { %3558 = vmatpush1.bf16.msra.mxu0 %v3557_v7  ;;  %3636 = vmatpush1.bf16.msra.mxu1 %v3635_v8  ;;  %v312_v7 = vld [vmem:[#allocation4 + $0x740] sm:$0xff]  ;;  %v3577_v8 = vpack.c.bf16 %v291_v0, %v282_v63  ;;  %v3595_v63 = vpack.c.bf16 %v382_v58, %v373_v57  ;;  %v133_v57 = vld [vmem:[#allocation4 + $0x1a8] sm:$0xff]  ;;  %v286_v58 = vld [vmem:[#allocation4 + $0x670] sm:$0xff] }
  0xb6   :  { %3560 = vmatprep.subr.bf16.mxu0 %v3559_v9  ;;  %3638 = vmatprep.subr.bf16.mxu1 %v3637_v13  ;;  %v3655_v9 = vpack.c.bf16 %v293_v3, %v284_v1  ;;  %v302_v13 = vld [vmem:[#allocation4 + $0x6f0] sm:$0xff]  ;;  %v3657_v14 = vpack.c.bf16 %v312_v7, %v303_v6  ;;  %v372_v0 = vld [vmem:[#allocation4 + $0x920] sm:$0xff]  ;;  %v381_v1 = vld [vmem:[#allocation4 + $0x968] sm:$0xff] }
  0xb7   :  { %v400_v6 = vld [vmem:[#allocation4 + $0xa00] sm:$0xff]  ;;  %v393_v7 = vld [vmem:[#allocation4 + $0x9c8] sm:$0xff] }
  0xb9   :  { %3562 = vmatpush1.bf16.msra.mxu0 %v3561_v21  ;;  %3640 = vmatpush1.bf16.msra.mxu1 %v3639_v22  ;;  %v330_v21 = vld [vmem:[#allocation4 + $0x7d0] sm:$0xff]  ;;  %v3581_v22 = vpack.c.bf16 %v309_v12, %v300_v11  ;;  %v3599_v11 = vpack.c.bf16 %v400_v6, %v391_v5  ;;  %v313_v5 = vld [vmem:[#allocation4 + $0x748] sm:$0xff] }
  0xba   :  { %3564 = vmatprep.subr.bf16.mxu0 %v3563_v23  ;;  %3642 = vmatprep.subr.bf16.mxu1 %v3641_v27  ;;  %v3659_v23 = vpack.c.bf16 %v311_v15, %v302_v13  ;;  %v320_v27 = vld [vmem:[#allocation4 + $0x780] sm:$0xff]  ;;  %v3661_v28 = vpack.c.bf16 %v330_v21, %v321_v19  ;;  %v390_v12 = vld [vmem:[#allocation4 + $0x9b0] sm:$0xff]  ;;  %v399_v13 = vld [vmem:[#allocation4 + $0x9f8] sm:$0xff] }
  0xbb   :  { %v418_v19 = vld [vmem:[#allocation4 + $0xa90] sm:$0xf]  ;;  %v411_v21 = vld [vmem:[#allocation4 + $0xa58] sm:$0xff] }
  0xbd   :  { %3566 = vmatpush1.bf16.msra.mxu0 %v3565_v34  ;;  %3644 = vmatpush1.bf16.msra.mxu1 %v3643_v35  ;;  %v348_v34 = vld [vmem:[#allocation4 + $0x860] sm:$0xff]  ;;  %v3585_v35 = vpack.c.bf16 %v327_v26, %v318_v25  ;;  %v3603_v25 = vpack.c.bf16 %v418_v19, %v409_v18 }
  0xbe   :  { %3568 = vmatprep.subr.bf16.mxu0 %v3567_v36  ;;  %3646 = vmatprep.subr.bf16.mxu1 %v3645_v41  ;;  %v3663_v36 = vpack.c.bf16 %v329_v29, %v320_v27  ;;  %v338_v41 = vld [vmem:[#allocation4 + $0x810] sm:$0xff]  ;;  %v3665_v42 = vpack.c.bf16 %v348_v34, %v339_v33  ;;  %v408_v26 = vld [vmem:[#allocation4 + $0xa40] sm:$0xff]  ;;  %v417_v27 = vld [vmem:[#allocation4 + $0xa88] sm:$0xf] }
  0xbf   :  { %v241_v33 = vld [vmem:[#allocation4 + $0x508] sm:$0xff]  ;;  %v3606_v34 = vpack.c.bf16 %v417_v27, %v408_v26  ;;  %v196_v19 = vld [vmem:[#allocation4 + $0x3a0] sm:$0xff]  ;;  %v223_v26 = vld [vmem:[#allocation4 + $0x478] sm:$0xff] }
  0xc1   :  { %3570 = vmatpush1.bf16.msra.mxu0 %v3569_v48  ;;  %3648 = vmatpush1.bf16.msra.mxu1 %v3647_v49  ;;  %v366_v48 = vld [vmem:[#allocation4 + $0x8f0] sm:$0xff]  ;;  %v3589_v49 = vpack.c.bf16 %v345_v39, %v336_v38  ;;  %v259_v39 = vld [vmem:[#allocation4 + $0x598] sm:$0xff] }
  0xc2   :  { %3572 = vmatprep.subr.bf16.mxu0 %v3571_v50  ;;  %3650 = vmatprep.subr.bf16.mxu1 %v3649_v54  ;;  %v3667_v50 = vpack.c.bf16 %v347_v43, %v338_v41  ;;  %v356_v54 = vld [vmem:[#allocation4 + $0x8a0] sm:$0xff]  ;;  %v3669_v55 = vpack.c.bf16 %v366_v48, %v357_v47  ;;  %v250_v38 = vld [vmem:[#allocation4 + $0x550] sm:$0xff]  ;;  %v115_v47 = vld [vmem:[#allocation4 + $0x118] sm:$0xff] }
  0xc3   :  { %v376_v41 = vld [vmem:[#allocation4 + $0x940] sm:$0xff]  ;;  %v3691_v45 = vpack.c.bf16 %v259_v39, %v250_v38 }
  0xc4   :  { %v268_v48 = vld [vmem:[#allocation4 + $0x5e0] sm:$0xff] }
  0xc5   :  { %3574 = vmatpush1.bf16.msra.mxu0 %v3573_v60  ;;  %3652 = vmatpush1.bf16.msra.mxu1 %v3651_v61  ;;  %v384_v60 = vld [vmem:[#allocation4 + $0x980] sm:$0xff]  ;;  %v3593_v61 = vpack.c.bf16 %v363_v53, %v354_v52  ;;  %v394_v52 = vld [vmem:[#allocation4 + $0x9d0] sm:$0xff]  ;;  %v403_v53 = vld [vmem:[#allocation4 + $0xa18] sm:$0xff] }
  0xc6   :  { %3576 = vmatprep.subr.bf16.mxu0 %v3575_v62  ;;  %3654 = vmatprep.subr.bf16.mxu1 %v3653_v2  ;;  %v3671_v62 = vpack.c.bf16 %v365_v56, %v356_v54  ;;  %v374_v2 = vld [vmem:[#allocation4 + $0x930] sm:$0xff]  ;;  %v3673_v3 = vpack.c.bf16 %v384_v60, %v375_v59  ;;  %v3693_v54 = vpack.c.bf16 %v115_v47, %v106_v46  ;;  %v124_v56 = vld [vmem:[#allocation4 + $0x160] sm:$0xff]  ;;  %v295_v60 = vld [vmem:[#allocation4 + $0x6b8] sm:$0xff] }
  0xc7   :  { %v3723_v59 = vpack.c.bf16 %v403_v53, %v394_v52 }
  0xc9   :  { %3578 = vmatpush1.bf16.msra.mxu0 %v3577_v8  ;;  %3656 = vmatpush1.bf16.msra.mxu1 %v3655_v9  ;;  %v402_v8 = vld [vmem:[#allocation4 + $0xa10] sm:$0xff]  ;;  %v3597_v9 = vpack.c.bf16 %v381_v1, %v372_v0  ;;  %v3699_v0 = vpack.c.bf16 %v295_v60, %v286_v58 }
  0xca   :  { %3580 = vmatprep.subr.bf16.mxu0 %v3579_v10  ;;  %3658 = vmatprep.subr.bf16.mxu1 %v3657_v14  ;;  %v3675_v10 = vpack.c.bf16 %v383_v4, %v374_v2  ;;  %v392_v14 = vld [vmem:[#allocation4 + $0x9c0] sm:$0xff]  ;;  %v3677_v15 = vpack.c.bf16 %v402_v8, %v393_v7  ;;  %v142_v1 = vld [vmem:[#allocation4 + $0x1f0] sm:$0xff]  ;;  %v151_v2 = vld [vmem:[#allocation4 + $0x238] sm:$0xff] }
  0xcb   :  { %v304_v4 = vld [vmem:[#allocation4 + $0x700] sm:$0xff]  ;;  %v3701_v6 = vpack.c.bf16 %v151_v2, %v142_v1  ;;  %v169_v8 = vld [vmem:[#allocation4 + $0x2c8] sm:$0xff] }
  0xcc   :  { %v160_v7 = vld [vmem:[#allocation4 + $0x280] sm:$0xff] }
  0xcd   :  { %3582 = vmatpush1.bf16.msra.mxu0 %v3581_v22  ;;  %3660 = vmatpush1.bf16.msra.mxu1 %v3659_v23  ;;  %v420_v22 = vld [vmem:[#allocation4 + $0xaa0] sm:$0xf]  ;;  %v3601_v23 = vpack.c.bf16 %v399_v13, %v390_v12  ;;  %v178_v13 = vld [vmem:[#allocation4 + $0x310] sm:$0xff] }
  0xce   :  { %3584 = vmatprep.subr.bf16.mxu0 %v3583_v24  ;;  %3662 = vmatprep.subr.bf16.mxu1 %v3661_v28  ;;  %v3679_v24 = vpack.c.bf16 %v401_v17, %v392_v14  ;;  %v410_v28 = vld [vmem:[#allocation4 + $0xa50] sm:$0xff]  ;;  %v3681_v29 = vpack.c.bf16 %v420_v22, %v411_v21  ;;  %v187_v14 = vld [vmem:[#allocation4 + $0x358] sm:$0xff]  ;;  %v349_v17 = vld [vmem:[#allocation4 + $0x868] sm:$0xff] }
  0xcf   :  { %v3709_v18 = vpack.c.bf16 %v187_v14, %v178_v13  ;;  %v205_v21 = vld [vmem:[#allocation4 + $0x3e8] sm:$0xff]  ;;  %v358_v22 = vld [vmem:[#allocation4 + $0x8b0] sm:$0xff] }
  0xd1   :  { %3586 = vmatpush1.bf16.msra.mxu0 %v3585_v35  ;;  %3664 = vmatpush1.bf16.msra.mxu1 %v3663_v36  ;;  %v3687_v35 = vpack.c.bf16 %v241_v33, %v232_v31  ;;  %v88_v36 = vld [vmem:[#allocation4 + $0x40] sm:$0xff]  ;;  %v422_v33 = vld [vmem:[#allocation7] sm:$0xff] }
  0xd2   :  { %3588 = vmatprep.subr.bf16.mxu0 %v3587_v37  ;;  %3666 = vmatprep.subr.bf16.mxu1 %v3665_v42  ;;  %v97_v37 = vld [vmem:[#allocation4 + $0x88] sm:$0xff] }
  0xd3   :  { %v385_v42 = vld [vmem:[#allocation4 + $0x988] sm:$0xff]  ;;  %v3689_v43 = vpack.c.bf16 %v97_v37, %v88_v36 }
  0xd5   :  { %3590 = vmatpush1.bf16.msra.mxu0 %v3589_v49  ;;  %3668 = vmatpush1.bf16.msra.mxu1 %v3667_v50  ;;  %v3720_v49 = vpack.c.bf16 %v385_v42, %v376_v41  ;;  %v277_v50 = vld [vmem:[#allocation4 + $0x628] sm:$0xff] }
  0xd6   :  { %3592 = vmatprep.subr.bf16.mxu0 %v3591_v51  ;;  %3670 = vmatprep.subr.bf16.mxu1 %v3669_v55  ;;  %v4463_v51 = vmov 0.0|0.0   ;;  %v3695_v55 = vpack.c.bf16 %v277_v50, %v268_v48 }
  0xd9   :  { %3594 = vmatpush1.bf16.msra.mxu0 %v3593_v61  ;;  %3672 = vmatpush1.bf16.msra.mxu1 %v3671_v62  ;;  %v412_v61 = vld [vmem:[#allocation4 + $0xa60] sm:$0xff]  ;;  %v421_v62 = vld [vmem:[#allocation4 + $0xaa8] sm:$0xf] }
  0xda   :  { %3596 = vmatprep.subr.bf16.mxu0 %v3595_v63  ;;  %3674 = vmatprep.subr.bf16.mxu1 %v3673_v3  ;;  %v3697_v63 = vpack.c.bf16 %v133_v57, %v124_v56  ;;  %v3726_v3 = vpack.c.bf16 %v421_v62, %v412_v61 }
  0xdc   :  { %852 = vmatmul.mubr.f32.vlgmr.msra.gmra.mrb[2].mxu0 %v4574_v20  ;;  %994 = vmatmul.mubr.f32.vlgmr.msra.gmra.mrb[2].mxu1 %v4574_v20  ;;  %v3684_v20 = vpack.c.bf16 %v419_v30, %v410_v28  ;;  %v4336_v28 = vld [vmem:[#allocation2] sm:$0xff] }
  0xdd   :  { %3598 = vmatpush1.bf16.msra.mxu0 %v3597_v9  ;;  %3676 = vmatpush1.bf16.msra.mxu1 %v3675_v10  ;;  %v322_v9 = vld [vmem:[#allocation4 + $0x790] sm:$0xff]  ;;  %v331_v10 = vld [vmem:[#allocation4 + $0x7d8] sm:$0xff] }
  0xde   :  { %3600 = vmatprep.subr.bf16.mxu0 %v3599_v11  ;;  %3678 = vmatprep.subr.bf16.mxu1 %v3677_v15  ;;  %v3705_v11 = vpack.c.bf16 %v169_v8, %v160_v7  ;;  %v3707_v12 = vpack.c.bf16 %v331_v10, %v322_v9  ;;  %v340_v15 = vld [vmem:[#allocation4 + $0x820] sm:$0xff] }
  0xdf   :  { %922 = vmatprep.mubr.f32.mxu0 %v4462_v40  ;;  %1064 = vmatprep.mubr.f32.mxu1 %v4462_v40  ;;  %v3711_v32 = vpack.c.bf16 %v349_v17, %v340_v15 }
  0xe1   :  { %3602 = vmatpush1.bf16.msra.mxu0 %v3601_v23  ;;  %3680 = vmatpush1.bf16.msra.mxu1 %v3679_v24  ;;  %v367_v23 = vld [vmem:[#allocation4 + $0x8f8] sm:$0xff]  ;;  %v3713_v24 = vpack.c.bf16 %v205_v21, %v196_v19 }
  0xe2   :  { %3605 = vmatprep.subr.msk.bf16.mxu0 %vm4587_vm3, %v3603_v25  ;;  %3683 = vmatprep.subr.msk.bf16.mxu1 %vm4587_vm3, %v3681_v29  ;;  %v214_v25 = vld [vmem:[#allocation4 + $0x430] sm:$0xff]  ;;  %v426_v29 = vlaneseq }
  0xe3   :  { %v3717_v27 = vpack.c.bf16 %v223_v26, %v214_v25 }
  0xe4   :  { %v4631_v30 = vshrl.u32 %v426_v29, 7 }
  0xe5   :  { %3608 = vmatpush1.bf16.msk.msra.mxu0 %vm4587_vm3, %v3606_v34  ;;  %3686 = vmatpush1.bf16.msk.msra.mxu1 %vm4587_vm3, %v3684_v20 }
  0xe6   :  { %3688 = vmatprep.subr.bf16.mxu0 %v3687_v35  ;;  %3719 = vmatprep.subr.bf16.mxu1 %v4463_v51  ;;  %v428_v31 = vsub.s32 0, %v4631_v30  ;;  %v440_v41 = vsub.s32 3, %v4631_v30  ;;  %v436_v50 = vsub.s32 2, %v4631_v30  ;;  %v444_v58 = vsub.s32 4, %v4631_v30 }
  0xe7   :  { %v452_v60 = vsub.s32 6, %v4631_v30  ;;  %v448_v61 = vsub.s32 5, %v4631_v30 }
  0xe8   :  { %3129 = vmatmul.mubr.msk.f32.vlgmr.msra.gmra.mrb[2].mxu0 %vm471_vm0, %v4580_v44  ;;  %3132 = vmatmul.mubr.msk.f32.vlgmr.msra.gmra.mrb[2].mxu1 %vm471_vm0, %v4580_v44  ;;  %v429_v34 = vrot.slane %v422_v33, %v428_v31  ;;  %v441_v42 = vrot.slane %v422_v33, %v440_v41  ;;  %v437_v52 = vrot.slane %v422_v33, %v436_v50 }
  0xe9   :  { %3690 = vmatpush3.bf16.msra.mxu0 %v3689_v43  ;;  %3721 = vmatpush3.bf16.msra.mxu1 %v3720_v49  ;;  %v445_v1 = vrot.slane %v422_v33, %v444_v58 }
  0xea   :  { %3692 = vmatprep.subr.bf16.mxu0 %v3691_v45  ;;  %3722 = vmatprep.subr.bf16.mxu1 %v4463_v51 }
  0xeb   :  { %1135 = vmatprep.mubr.f32.mxu0 %v4566_v16  ;;  %3311 = vmatprep.mubr.msk.f32.mxu1 %vm4464_vm4, %v4462_v40  ;;  %v3703_v16 = vpack.c.bf16 %v313_v5, %v304_v4  ;;  %v449_v4 = vrot.slane %v422_v33, %v448_v61 }
  0xed   :  { %3694 = vmatpush3.bf16.msra.mxu0 %v3693_v54  ;;  %3724 = vmatpush3.bf16.msra.mxu1 %v3723_v59 }
  0xee   :  { %3696 = vmatprep.subr.bf16.mxu0 %v3695_v55  ;;  %3725 = vmatprep.subr.bf16.mxu1 %v4463_v51  ;;  %v432_v51 = vsub.s32 1, %v4631_v30 }
  0xf0   :  { %v433_v53 = vrot.slane %v422_v33, %v432_v51 }
  0xf1   :  { %3698 = vmatpush3.bf16.msra.mxu0 %v3697_v63  ;;  %3728 = vmatpush3.bf16.msk.msra.mxu1 %vm4587_vm3, %v3726_v3  ;;  %v456_v63 = vsub.s32 7, %v4631_v30  ;;  %v453_v3 = vrot.slane %v422_v33, %v452_v60  ;;  %v1269_v60 = vld [vmem:[%s6108_s3 + $0x20] sm:$0xff] }
  0xf2   :  { %3700 = vmatprep.subr.bf16.mxu0 %v3699_v0 }
  0xf3   :  { %v457_v5 = vrot.slane %v422_v33, %v456_v63  ;;  %v1270_v63 = vld [vmem:[%s6108_s3 + $0x28] sm:$0xff] }
  0xf4   :  { %3312 = vmatmul.mubr.msk.f32.vlgmr.msra.gmra.mrb[4].mxu1 %vm471_vm0, %v4580_v44  ;;  %v3715_v44 = vpack.c.bf16 %v367_v23, %v358_v22 }
  0xf5   :  { %3702 = vmatpush3.bf16.msra.mxu0 %v3701_v6  ;;  %1552 = vmatprep.mubr.f32.mxu1 %v4462_v40 }
  0xf6   :  { %3704 = vmatprep.subr.bf16.mxu0 %v3703_v16 }
  0xf9   :  { %3706 = vmatpush3.bf16.msra.mxu0 %v3705_v11 }
  0xfa   :  { %3708 = vmatprep.subr.bf16.mxu0 %v3707_v12 }
  0xfd   :  { %3710 = vmatpush3.bf16.msra.mxu0 %v3709_v18 }
  0xfe   :  { %3712 = vmatprep.subr.bf16.mxu0 %v3711_v32 }
 0x101   :  { %3714 = vmatpush3.bf16.msra.mxu0 %v3713_v24 }
 0x102   :  { %3716 = vmatprep.subr.bf16.mxu0 %v3715_v44 }
 0x105   :  { %3718 = vmatpush3.bf16.msra.mxu0 %v3717_v27 }
 0x108   :  { %1136 = vmatmul.mubr.f32.vlgmr.msra.gmra.mrb[4].mxu0 %v4336_v28 }
 0x109   :  { %1510 = vmatprep.mubr.f32.mxu0 %v4462_v40 }
 0x16f   :  { %v640_v20 = vpop.f32.mrb[0].mxu0  ;;  %v782_v36 = vpop.f32.mrb[0].mxu1 }
 0x170   :  { %v3739_v35 = vadd.f32 %v640_v20, %v429_v34  ;;  %v642_v37 = vpop.f32.mrb[1].mxu0  ;;  %v784_v38 = vpop.f32.mrb[1].mxu1  ;;  %v3741_v54 = vadd.f32 %v782_v36, %v437_v52  ;;  %v1304_v20 = vld [vmem:[#allocation2 + $0x8] sm:$0xff]  ;;  %v1303_v36 = vld [vmem:[#allocation2] sm:$0xff] }
 0x171   :  { %v3742_v43 = vadd.f32 %v784_v38, %v441_v42  ;;  %v3740_v55 = vadd.f32 %v642_v37, %v433_v53  ;;  %v4662_v52 = vld [vmem:[%s6108_s3 + $0x40] sm:$0xff]  ;;  %v1266_v53 = vld [vmem:[%s6108_s3 + $0x8] sm:$0xff] }
 0x172   :  { %v3135_v39 = vmul.f32 -1.442695, %v3739_v35  ;;  %v3137_v56 = vmul.f32 -1.442695, %v3741_v54  ;;  %v4675_v54 = vld [vmem:[%s6108_s3 + $0x48] sm:$0xff] }
 0x173   :  { %v3136_v57 = vmul.f32 -1.442695, %v3740_v55  ;;  %v1267_v55 = vld [vmem:[%s6108_s3 + $0x10] sm:$0xff] }
 0x174   :  { %3768 = vpow2.f32 %v3135_v39  ;;  %v3120_v39 = vld [vmem:[#allocation7 + $0x8] ss:$0 sm:$0xff] }
 0x175   :  { %3770 = vtanh.f32 %v3742_v43 }
 0x17e   :  { %v3769_v45 = vpop.eup %3768 }
 0x17f   :  { %v1220_v46 = vadd.f32 1.0, %v3769_v45  ;;  %v3771_v47 = vpop.eup %3770 }
 0x181   :  { %3772 = vrcp.f32 %v1220_v46  ;;  %v4650_v46 = vld [vmem:[%s6108_s3 + $0x38] sm:$0xff] }
 0x182   :  { %3774 = vpow2.f32 %v3137_v56  ;;  %v4688_v56 = vld [vmem:[%s6108_s3 + $0x50] sm:$0xff] }
 0x183   :  { %3776 = vpow2.f32 %v3136_v57  ;;  %v1268_v57 = vld [vmem:[%s6108_s3 + $0x18] sm:$0xff] }
 0x18b   :  { %v3773_v48 = vpop.eup %3772 }
 0x18c   :  { %v1250_v49 = vmul.f32 %v3773_v48, %v3771_v47  ;;  %v3775_v59 = vpop.eup %3774  ;;  %v1265_v47 = vld [vmem:[%s6108_s3] sm:$0xff] }
 0x18d   :  { %v3777_v62 = vpop.eup %3776  ;;  %v1222_v0 = vadd.f32 1.0, %v3775_v59  ;;  %v4701_v59 = vld [vmem:[%s6108_s3 + $0x58] sm:$0xff] }
 0x18e   :  { %v1221_v2 = vadd.f32 1.0, %v3777_v62  ;;  %v1277_v62 = vld [vmem:[%s6108_s3 + $0x60] sm:$0xff] }
 0x18f   :  { %3778 = vrcp.f32 %v1222_v0  ;;  %v1278_v0 = vld [vmem:[%s6108_s3 + $0x68] sm:$0xff] }
 0x190   :  { %3780 = vrcp.f32 %v1221_v2 }
 0x199   :  { %v3779_v15 = vpop.eup %3778 }
 0x19a   :  { %v3781_v17 = vpop.eup %3780 }
 0x1bb   :  { %v924_v6 = vpop.f32.mrb[2].mxu0  ;;  %v1066_v7 = vpop.f32.mrb[2].mxu1 }
 0x1bc   :  { %v3743_v16 = vadd.f32 %v924_v6, %v445_v1  ;;  %v926_v8 = vpop.f32.mrb[3].mxu0  ;;  %v3745_v9 = vadd.f32 %v1066_v7, %v453_v3  ;;  %v1068_v11 = vpop.f32.mrb[3].mxu1  ;;  %v1271_v1 = vld [vmem:[%s6108_s3 + $0x30] sm:$0xff]  ;;  %v1280_v6 = vld [vmem:[%s6108_s3 + $0x78] sm:$0xff] }
 0x1bd   :  { %v3744_v10 = vadd.f32 %v926_v8, %v449_v4  ;;  %v3746_v12 = vadd.f32 %v1068_v11, %v457_v5  ;;  %v1279_v3 = vld [vmem:[%s6108_s3 + $0x70] sm:$0xff] }
 0x1be   :  { %3782 = vtanh.f32 %v3743_v16  ;;  %v3138_v13 = vmul.f32 -1.442695, %v3745_v9  ;;  %v1281_v16 = vld [vmem:[%s6108_s3 + $0x80] sm:$0xff]  ;;  %v1305_v7 = vld [vmem:[#allocation2 + $0x10] sm:$0xff] }
 0x1bf   :  { %3784 = vtanh.f32 %v3744_v10  ;;  %v3139_v14 = vmul.f32 -1.442695, %v3746_v12  ;;  %v1282_v10 = vld [vmem:[%s6108_s3 + $0x88] sm:$0xff]  ;;  %v1283_v11 = vld [vmem:[%s6108_s3 + $0x90] sm:$0xff]  ;;  %v1284_v12 = vld [vmem:[%s6108_s3 + $0x98] sm:$0xff] }
 0x1c0   :  { %3786 = vpow2.f32 %v3138_v13  ;;  %v1285_v13 = vld [vmem:[%s6108_s3 + $0xa0] sm:$0xff] }
 0x1c1   :  { %3788 = vpow2.f32 %v3139_v14  ;;  %v1286_v14 = vld [vmem:[%s6108_s3 + $0xa8] sm:$0xff] }
 0x1c2   :  { %3790 = vtanh.f32 %v1250_v49 }
 0x1c7   :  { %v1207_v32 = vpop.f32.mrb[4].mxu1 }
 0x1c8   :  { %v3783_v18 = vpop.eup %3782  ;;  %v3313_v22 = vpop.f32.mrb[5].mxu1 }
 0x1c9   :  { %v3785_v19 = vpop.eup %3784  ;;  %v1251_v21 = vmul.f32 %v3783_v18, %v3781_v17  ;;  %v1288_v17 = vld [vmem:[%s6108_s3 + $0xb8] sm:$0xff]  ;;  %v1289_v18 = vld [vmem:[%s6108_s3 + $0xc0] sm:$0xff] }
 0x1ca   :  { %v1252_v23 = vmul.f32 %v3785_v19, %v3779_v15  ;;  %v3787_v24 = vpop.eup %3786  ;;  %v1287_v15 = vld [vmem:[%s6108_s3 + $0xb0] sm:$0xff]  ;;  %v1293_v22 = vld [vmem:[%s6108_s3 + $0xe0] sm:$0xff] }
 0x1cb   :  { %v3789_v44 = vpop.eup %3788  ;;  %v1241_v25 = vadd.f32 1.0, %v3787_v24  ;;  %3792 = vtanh.f32 %v1251_v21  ;;  %v1291_v19 = vld [vmem:[%s6108_s3 + $0xd0] sm:$0xff]  ;;  %v1292_v21 = vld [vmem:[%s6108_s3 + $0xd8] sm:$0xff] }
 0x1cc   :  { %v1242_v26 = vadd.f32 1.0, %v3789_v44  ;;  %v3791_v27 = vpop.eup %3790  ;;  %v1295_v24 = vld [vmem:[%s6108_s3 + $0xf0] sm:$0xff]  ;;  %v1296_v44 = vld [vmem:[%s6108_s3 + $0xf8] sm:$0xff] }
 0x1cd   :  { %3794 = vrcp.f32 %v1241_v25  ;;  %v1297_v25 = vld [vmem:[%s6108_s3 + $0x100] sm:$0xff] }
 0x1ce   :  { %3796 = vrcp.f32 %v1242_v26  ;;  %v1298_v26 = vld [vmem:[%s6108_s3 + $0x108] sm:$0xff] }
 0x1d5   :  { %v3793_v28 = vpop.eup %3792 }
 0x1d7   :  { %v3795_v29 = vpop.eup %3794 }
 0x1d8   :  { %v3797_v33 = vpop.eup %3796  ;;  %v1256_v34 = vmul.f32 %v3795_v29, %v3791_v27  ;;  %v1299_v27 = vld [vmem:[%s6108_s3 + $0x110] sm:$0xff]  ;;  %v1301_v29 = vld [vmem:[%s6108_s3 + $0x120] sm:$0xff] }
 0x1d9   :  { %v1257_v35 = vmul.f32 %v3797_v33, %v3793_v28  ;;  %v1300_v28 = vld [vmem:[%s6108_s3 + $0x118] sm:$0xff]  ;;  %v1302_v33 = vld [vmem:[%s6108_s3 + $0x128] sm:$0xf] }
 0x1da   :  { %v3731_v43 = vpack.c.bf16 %v1256_v34, %v1303_v36  ;;  %v1310_v34 = vld [vmem:[#allocation9] sm:$0x7]  ;;  %v1313_v36 = vld [vmem:[#allocation10] sm:$0x7] }
 0x1db   :  { %v3249_v37 = vpop.f32.mrb[4].mxu0  ;;  %v3729_v41 = vpack.c.bf16 %v1257_v35, %v1304_v20  ;;  %v1311_v20 = vstv %s6111_s6 }
 0x1dc   :  { %v3250_v38 = vpop.f32.mrb[5].mxu0  ;;  %v1312_v35 = vmul.f32 %v1311_v20, %v1310_v34 }
 0x1dd   :  { %v3251_v42 = vadd.f32 %v3250_v38, %v3249_v37  ;;  %3730 = vmatprep.subr.bf16.mxu0 %v3729_v41  ;;  %3737 = vmatprep.subr.bf16.mxu1 %v3729_v41 }
 0x1de   :  { %3732 = vmatpush1.bf16.msra.mxu0 %v3731_v43  ;;  %3738 = vmatpush1.bf16.msra.mxu1 %v3731_v43  ;;  %v4897_v37 = vadd.f32 %v1313_v36, %v1312_v35 }
 0x1df   :  { %v1138_v45 = vadd.f32 %v3251_v42, %v3120_v39 }
 0x1e0   :  { %v4902_v43 = vrot.slane %v4897_v37, %v428_v31 }
 0x1e1   :  { %v1208_v48 = vadd.f32 %v1207_v32, %v1138_v45  ;;  %3148 = vmatmul.mubr.msk.f32.vlgmr.msra.gmra.mrb[6].mxu1 %vm1331_vm5, %v4650_v46  ;;  %3141 = vmatmul.mubr.msk.f32.vlgmr.msra.gmra.mrb[6].mxu0 %vm1331_vm5, %v1265_v47  ;;  %v1290_v32 = vld [vmem:[%s6108_s3 + $0xc8] sm:$0xff] }
 0x1e2   :  { %1558 = vmatprep.mubr.f32.mxu1 %v4462_v40  ;;  %1516 = vmatprep.mubr.f32.mxu0 %v4462_v40 }
 0x1e3   :  { %v3140_v49 = vmul.f32 -1.442695, %v1208_v48 }
 0x1e5   :  { %3798 = vpow2.f32 %v3140_v49  ;;  %3149 = vmatmul.mubr.msk.f32.gmra.mrb[8].mxu1 %vm1331_vm5, %v4662_v52  ;;  %3142 = vmatmul.mubr.msk.f32.gmra.mrb[8].mxu0 %vm1331_vm5, %v1266_v53 }
 0x1e6   :  { %1564 = vmatprep.mubr.f32.mxu1 %v4462_v40  ;;  %1522 = vmatprep.mubr.f32.mxu0 %v4462_v40  ;;  %3800 = vtanh.f32 %v1252_v23  ;;  %v1294_v23 = vld [vmem:[%s6108_s3 + $0xe8] sm:$0xff]  ;;  %s4465_s3 = smov [#allocation12]  }
 0x1e7   :  { %s3106_s6 = sshll.u32 %s4465_s3, 4  ;;  %s3107_s6 = int_to_ptr.vmem [resolvable:$true] %s3106_s6 }
 0x1e8   :  { %s4425_s5 = scalar_lea.vmem %s3107_s6, 14592  ;;  %p4430_p5 = scmp.lt.s32.totalorder %s3107_s6, %s3107_s6 }
 0x1e9   :  { %3150 = vmatmul.mubr.msk.f32.gmra.mrb[10].mxu1 %vm1331_vm5, %v4675_v54  ;;  %3143 = vmatmul.mubr.msk.f32.gmra.mrb[10].mxu0 %vm1331_vm5, %v1267_v55  ;;  %p4426_p4 = scmp.ne.s32.totalorder %s3107_s6, %s4425_s5  ;;  %p4431_p6 = scmp.lt.s32.totalorder %s4425_s5, %s4425_s5 }
 0x1ea   :  { %1570 = vmatprep.mubr.f32.mxu1 %v4462_v40  ;;  %1528 = vmatprep.mubr.f32.mxu0 %v4462_v40 }
 0x1eb   :  { %p4432_p7 = por %p4431_p6, %p4430_p5 }
 0x1ed   :  { %3151 = vmatmul.mubr.msk.f32.gmra.mrb[12].mxu1 %vm1331_vm5, %v4688_v56  ;;  %3144 = vmatmul.mubr.msk.f32.gmra.mrb[12].mxu0 %vm1331_vm5, %v1268_v57  ;;  %p4433_p8 = pnand %p4432_p7, %p4426_p4 }
 0x1ee   :  { %1576 = vmatprep.mubr.f32.mxu1 %v4462_v40  ;;  %1534 = vmatprep.mubr.f32.mxu0 %v4462_v40 }
 0x1ef   :  { %v3799_v58 = vpop.eup %3798 }
 0x1f0   :  { %v1243_v61 = vadd.f32 1.0, %v3799_v58  ;;  %v3801_v2 = vpop.eup %3800 }
 0x1f1   :  { %3152 = vmatmul.mubr.msk.f32.gmra.mrb[14].mxu1 %vm1331_vm5, %v4701_v59  ;;  %3145 = vmatmul.mubr.msk.f32.gmra.mrb[14].mxu0 %vm1331_vm5, %v1269_v60 }
 0x1f2   :  { %3802 = vrcp.f32 %v1243_v61  ;;  %1582 = vmatprep.mubr.f32.mxu1 %v4462_v40  ;;  %1540 = vmatprep.mubr.f32.mxu0 %v4462_v40 }
 0x1f5   :  { %3153 = vmatmul.mubr.msk.f32.gmra.mrb[16].mxu1 %vm1331_vm5, %v1277_v62  ;;  %3146 = vmatmul.mubr.msk.f32.gmra.mrb[16].mxu0 %vm1331_vm5, %v1270_v63 }
 0x1f6   :  { %1588 = vmatprep.mubr.f32.mxu1 %v4462_v40  ;;  %1546 = vmatprep.mubr.f32.mxu0 %v4462_v40 }
 0x1f9   :  { %3154 = vmatmul.mubr.msk.f32.gmra.mrb[18].mxu1 %vm1331_vm5, %v1278_v0  ;;  %3147 = vmatmul.mubr.msk.f32.gmra.mrb[18].mxu0 %vm1331_vm5, %v1271_v1 }
 0x1fa   :  { %1594 = vmatprep.mubr.f32.mxu1 %v4462_v40  ;;  %3318 = vmatprep.mubr.msk.f32.mxu0 %vm1331_vm5, %v1265_v47 }
 0x1fc   :  { %v3803_v4 = vpop.eup %3802 }
 0x1fd   :  { %v1258_v5 = vmul.f32 %v3803_v4, %v3801_v2  ;;  %3155 = vmatmul.mubr.msk.f32.gmra.mrb[20].mxu1 %vm1331_vm5, %v1279_v3 }
 0x1fe   :  { %1600 = vmatprep.mubr.f32.mxu1 %v4462_v40 }
 0x1ff   :  { %1264 = vst.msk [vmem:[#allocation2 + $0x28] sm:$0xff] %vm471_vm0, %v1258_v5 }
 0x201   :  { %3156 = vmatmul.mubr.msk.f32.gmra.mrb[22].mxu1 %vm1331_vm5, %v1280_v6 }
 0x202   :  { %1606 = vmatprep.mubr.f32.mxu1 %v4462_v40 }
 0x205   :  { %3157 = vmatmul.mubr.msk.f32.gmra.mrb[24].mxu1 %vm1331_vm5, %v1281_v16 }
 0x206   :  { %v1308_v8 = vld [vmem:[#allocation2 + $0x28] sm:$0xff]  ;;  %1612 = vmatprep.mubr.f32.mxu1 %v4462_v40 }
 0x207   :  { %v3733_v9 = vpack.c.bf16 %v1308_v8, %v1305_v7 }
 0x209   :  { %3734 = vmatprep.subr.bf16.mxu0 %v3733_v9  ;;  %3158 = vmatmul.mubr.msk.f32.gmra.mrb[26].mxu1 %vm1331_vm5, %v1282_v10 }
 0x20a   :  { %3736 = vmatpush3.bf16.msra.mxu0 %v3733_v9  ;;  %1618 = vmatprep.mubr.f32.mxu1 %v4462_v40 }
 0x20d   :  { %3319 = vmatmul.mubr.msk.f32.vlgmr.msra.gmra.mrb[20].mxu0 %vm1331_vm5, %v1266_v53  ;;  %3159 = vmatmul.mubr.msk.f32.gmra.mrb[28].mxu1 %vm1331_vm5, %v1283_v11 }
 0x20e   :  { %3321 = vmatprep.mubr.msk.f32.mxu0 %vm1331_vm5, %v1267_v55  ;;  %1624 = vmatprep.mubr.f32.mxu1 %v4462_v40 }
 0x211   :  { %3322 = vmatmul.mubr.msk.f32.gmra.mrb[22].mxu0 %vm1331_vm5, %v1268_v57  ;;  %3160 = vmatmul.mubr.msk.f32.gmra.mrb[30].mxu1 %vm1331_vm5, %v1284_v12 }
 0x212   :  { %3324 = vmatprep.mubr.msk.f32.mxu0 %vm1331_vm5, %v1269_v60  ;;  %1630 = vmatprep.mubr.f32.mxu1 %v4462_v40 }
 0x215   :  { %3325 = vmatmul.mubr.msk.f32.gmra.mrb[24].mxu0 %vm1331_vm5, %v1270_v63  ;;  %3161 = vmatmul.mubr.msk.f32.gmra.mrb[32].mxu1 %vm1331_vm5, %v1285_v13 }
 0x216   :  { %3327 = vmatprep.mubr.msk.f32.mxu0 %vm1331_vm5, %v1271_v1  ;;  %1636 = vmatprep.mubr.f32.mxu1 %v4462_v40 }
 0x219   :  { %3328 = vmatmul.mubr.msk.f32.gmra.mrb[26].mxu0 %vm1331_vm5, %v4650_v46  ;;  %3162 = vmatmul.mubr.msk.f32.gmra.mrb[34].mxu1 %vm1331_vm5, %v1286_v14 }
 0x21a   :  { %3330 = vmatprep.mubr.msk.f32.mxu0 %vm1331_vm5, %v4662_v52  ;;  %1642 = vmatprep.mubr.f32.mxu1 %v4462_v40 }
 0x21d   :  { %3331 = vmatmul.mubr.msk.f32.gmra.mrb[28].mxu0 %vm1331_vm5, %v4675_v54  ;;  %3163 = vmatmul.mubr.msk.f32.gmra.mrb[36].mxu1 %vm1331_vm5, %v1287_v15 }
 0x21e   :  { %3333 = vmatprep.mubr.msk.f32.mxu0 %vm1331_vm5, %v4688_v56  ;;  %1648 = vmatprep.mubr.f32.mxu1 %v4462_v40 }
 0x221   :  { %3334 = vmatmul.mubr.msk.f32.gmra.mrb[30].mxu0 %vm1331_vm5, %v4701_v59  ;;  %3164 = vmatmul.mubr.msk.f32.gmra.mrb[38].mxu1 %vm1331_vm5, %v1288_v17 }
 0x222   :  { %3336 = vmatprep.mubr.msk.f32.mxu0 %vm1331_vm5, %v1277_v62  ;;  %1654 = vmatprep.mubr.f32.mxu1 %v4462_v40 }
 0x225   :  { %3337 = vmatmul.mubr.msk.f32.gmra.mrb[32].mxu0 %vm1331_vm5, %v1278_v0  ;;  %3165 = vmatmul.mubr.msk.f32.gmra.mrb[40].mxu1 %vm1331_vm5, %v1289_v18 }
 0x226   :  { %3339 = vmatprep.mubr.msk.f32.mxu0 %vm1331_vm5, %v1279_v3  ;;  %1660 = vmatprep.mubr.f32.mxu1 %v4462_v40 }
 0x229   :  { %3340 = vmatmul.mubr.msk.f32.gmra.mrb[34].mxu0 %vm1331_vm5, %v1280_v6  ;;  %3166 = vmatmul.mubr.msk.f32.gmra.mrb[42].mxu1 %vm1331_vm5, %v1290_v32 }
 0x22a   :  { %3342 = vmatprep.mubr.msk.f32.mxu0 %vm1331_vm5, %v1281_v16  ;;  %1666 = vmatprep.mubr.f32.mxu1 %v4462_v40 }
 0x22d   :  { %3343 = vmatmul.mubr.msk.f32.gmra.mrb[36].mxu0 %vm1331_vm5, %v1282_v10  ;;  %3167 = vmatmul.mubr.msk.f32.gmra.mrb[44].mxu1 %vm1331_vm5, %v1291_v19 }
 0x22e   :  { %3345 = vmatprep.mubr.msk.f32.mxu0 %vm1331_vm5, %v1283_v11  ;;  %1672 = vmatprep.mubr.f32.mxu1 %v4462_v40 }
 0x231   :  { %3346 = vmatmul.mubr.msk.f32.gmra.mrb[38].mxu0 %vm1331_vm5, %v1284_v12  ;;  %3168 = vmatmul.mubr.msk.f32.gmra.mrb[46].mxu1 %vm1331_vm5, %v1292_v21 }
 0x232   :  { %3348 = vmatprep.mubr.msk.f32.mxu0 %vm1331_vm5, %v1285_v13  ;;  %1678 = vmatprep.mubr.f32.mxu1 %v4462_v40 }
 0x235   :  { %3349 = vmatmul.mubr.msk.f32.gmra.mrb[40].mxu0 %vm1331_vm5, %v1286_v14  ;;  %3169 = vmatmul.mubr.msk.f32.gmra.mrb[48].mxu1 %vm1331_vm5, %v1293_v22 }
 0x236   :  { %3351 = vmatprep.mubr.msk.f32.mxu0 %vm1331_vm5, %v1287_v15  ;;  %1684 = vmatprep.mubr.f32.mxu1 %v4462_v40 }
 0x239   :  { %3352 = vmatmul.mubr.msk.f32.gmra.mrb[42].mxu0 %vm1331_vm5, %v1288_v17  ;;  %3170 = vmatmul.mubr.msk.f32.gmra.mrb[50].mxu1 %vm1331_vm5, %v1294_v23 }
 0x23a   :  { %3354 = vmatprep.mubr.msk.f32.mxu0 %vm1331_vm5, %v1289_v18  ;;  %1690 = vmatprep.mubr.f32.mxu1 %v4462_v40 }
 0x23d   :  { %3355 = vmatmul.mubr.msk.f32.gmra.mrb[44].mxu0 %vm1331_vm5, %v1290_v32  ;;  %3171 = vmatmul.mubr.msk.f32.gmra.mrb[52].mxu1 %vm1331_vm5, %v1295_v24 }
 0x23e   :  { %3357 = vmatprep.mubr.msk.f32.mxu0 %vm1331_vm5, %v1291_v19  ;;  %1696 = vmatprep.mubr.f32.mxu1 %v4462_v40 }
 0x241   :  { %3358 = vmatmul.mubr.msk.f32.gmra.mrb[46].mxu0 %vm1331_vm5, %v1292_v21  ;;  %3172 = vmatmul.mubr.msk.f32.gmra.mrb[54].mxu1 %vm1331_vm5, %v1296_v44 }
 0x242   :  { %3360 = vmatprep.mubr.msk.f32.mxu0 %vm1331_vm5, %v1293_v22  ;;  %1702 = vmatprep.mubr.f32.mxu1 %v4462_v40 }
 0x245   :  { %3361 = vmatmul.mubr.msk.f32.gmra.mrb[48].mxu0 %vm1331_vm5, %v1294_v23  ;;  %3173 = vmatmul.mubr.msk.f32.gmra.mrb[56].mxu1 %vm1331_vm5, %v1297_v25 }
 0x246   :  { %3363 = vmatprep.mubr.msk.f32.mxu0 %vm1331_vm5, %v1295_v24  ;;  %1708 = vmatprep.mubr.f32.mxu1 %v4462_v40 }
 0x249   :  { %3364 = vmatmul.mubr.msk.f32.gmra.mrb[50].mxu0 %vm1331_vm5, %v1296_v44  ;;  %3174 = vmatmul.mubr.msk.f32.gmra.mrb[58].mxu1 %vm1331_vm5, %v1298_v26 }
 0x24a   :  { %3366 = vmatprep.mubr.msk.f32.mxu0 %vm1331_vm5, %v1297_v25  ;;  %1714 = vmatprep.mubr.f32.mxu1 %v4462_v40 }
 0x24d   :  { %3367 = vmatmul.mubr.msk.f32.gmra.mrb[52].mxu0 %vm1331_vm5, %v1298_v26  ;;  %3175 = vmatmul.mubr.msk.f32.gmra.mrb[60].mxu1 %vm1331_vm5, %v1299_v27 }
 0x24e   :  { %3369 = vmatprep.mubr.msk.f32.mxu0 %vm1331_vm5, %v1299_v27  ;;  %1720 = vmatprep.mubr.f32.mxu1 %v4462_v40 }
 0x251   :  { %3370 = vmatmul.mubr.msk.f32.gmra.mrb[54].mxu0 %vm1331_vm5, %v1300_v28  ;;  %3176 = vmatmul.mubr.msk.f32.gmra.mrb[62].mxu1 %vm1331_vm5, %v1300_v28 }
 0x252   :  { %3372 = vmatprep.mubr.msk.f32.mxu0 %vm1331_vm5, %v1301_v29  ;;  %1726 = vmatprep.mubr.f32.mxu1 %v4462_v40 }
 0x255   :  { %3373 = vmatmul.mubr.msk.f32.gmra.mrb[56].mxu0 %vm1331_vm5, %v1302_v33  ;;  %3177 = vmatmul.mubr.msk.f32.gmra.mrb[64].mxu1 %vm1331_vm5, %v1301_v29 }
 0x256   :  { %1732 = vmatprep.mubr.f32.mxu1 %v4462_v40  ;;  %v4907_v40 = vrot.slane %v4897_v37, %v432_v51 }
 0x259   :  { %3178 = vmatmul.mubr.msk.f32.gmra.mrb[66].mxu1 %vm1331_vm5, %v1302_v33 }
 0x2b4   :  { %v1554_v38 = vpop.f32.mrb[6].mxu1  ;;  %v1512_v39 = vpop.f32.mrb[6].mxu0 }
 0x2b5   :  { %v1556_v41 = vpop.f32.mrb[7].mxu1  ;;  %v1514_v42 = vpop.f32.mrb[7].mxu0  ;;  %v1555_v49 = vadd.f32 %v1554_v38, %v4902_v43  ;;  %v1513_v54 = vadd.f32 %v1512_v39, %v4902_v43 }
 0x2b6   :  { %v1557_v52 = vadd.f32 %v1556_v41, %v4907_v40  ;;  %v1515_v31 = vadd.f32 %v1514_v42, %v4907_v40 }
 0x2b7   :  { %3804 = vtanh.f32 %v1555_v49 }
 0x2b8   :  { %v1560_v45 = vpop.f32.mrb[8].mxu1  ;;  %v1518_v46 = vpop.f32.mrb[8].mxu0  ;;  %3806 = vtanh.f32 %v1557_v52 }
 0x2b9   :  { %v1562_v47 = vpop.f32.mrb[9].mxu1  ;;  %v1520_v48 = vpop.f32.mrb[9].mxu0  ;;  %v1561_v51 = vadd.f32 %v1560_v45, %v4902_v43  ;;  %3808 = vtanh.f32 %v1513_v54  ;;  %v1519_v60 = vadd.f32 %v1518_v46, %v4902_v43 }
 0x2ba   :  { %v1563_v58 = vadd.f32 %v1562_v47, %v4907_v40  ;;  %3810 = vtanh.f32 %v1515_v31  ;;  %v1521_v63 = vadd.f32 %v1520_v48, %v4907_v40 }
 0x2bb   :  { %3812 = vtanh.f32 %v1561_v51 }
 0x2bc   :  { %v1566_v53 = vpop.f32.mrb[10].mxu1  ;;  %v1524_v55 = vpop.f32.mrb[10].mxu0  ;;  %3814 = vtanh.f32 %v1563_v58 }
 0x2bd   :  { %v1568_v56 = vpop.f32.mrb[11].mxu1  ;;  %v1526_v57 = vpop.f32.mrb[11].mxu0  ;;  %v1567_v1 = vadd.f32 %v1566_v53, %v4902_v43  ;;  %3816 = vtanh.f32 %v1519_v60  ;;  %v1525_v4 = vadd.f32 %v1524_v55, %v4902_v43 }
 0x2be   :  { %v1569_v2 = vadd.f32 %v1568_v56, %v4907_v40  ;;  %3818 = vtanh.f32 %v1521_v63  ;;  %v1527_v16 = vadd.f32 %v1526_v57, %v4907_v40 }
 0x2bf   :  { %3820 = vtanh.f32 %v1567_v1 }
 0x2c0   :  { %v1572_v59 = vpop.f32.mrb[12].mxu1  ;;  %v1530_v61 = vpop.f32.mrb[12].mxu0  ;;  %3822 = vtanh.f32 %v1569_v2 }
 0x2c1   :  { %v1574_v62 = vpop.f32.mrb[13].mxu1  ;;  %v1532_v0 = vpop.f32.mrb[13].mxu0  ;;  %v1573_v8 = vadd.f32 %v1572_v59, %v4902_v43  ;;  %3824 = vtanh.f32 %v1525_v4  ;;  %v1531_v11 = vadd.f32 %v1530_v61, %v4902_v43 }
 0x2c2   :  { %v1575_v9 = vadd.f32 %v1574_v62, %v4907_v40  ;;  %v4923_v10 = vpop.eup %3804  ;;  %3826 = vtanh.f32 %v1527_v16  ;;  %v1533_v15 = vadd.f32 %v1532_v0, %v4907_v40  ;;  %v4988_v16 = vrot.slane %v4897_v37, %v436_v50 }
 0x2c3   :  { %6247 = vst [vmem:[#allocation17_spill] sm:$0xff] %v4923_v10  ;;  %v4926_v14 = vpop.eup %3806  ;;  %3828 = vtanh.f32 %v1573_v8 }
 0x2c4   :  { %v1578_v3 = vpop.f32.mrb[14].mxu1  ;;  %v1536_v5 = vpop.f32.mrb[14].mxu0  ;;  %6248 = vst [vmem:[#allocation18_spill] sm:$0xff] %v4926_v14  ;;  %3830 = vtanh.f32 %v1575_v9 }
 0x2c5   :  { %v1580_v6 = vpop.f32.mrb[15].mxu1  ;;  %v1538_v7 = vpop.f32.mrb[15].mxu0  ;;  %v1579_v19 = vadd.f32 %v1578_v3, %v4902_v43  ;;  %3832 = vtanh.f32 %v1531_v11  ;;  %v1537_v24 = vadd.f32 %v1536_v5, %v4902_v43 }
 0x2c6   :  { %v4929_v32 = vpop.eup %3808  ;;  %v1581_v22 = vadd.f32 %v1580_v6, %v4907_v40  ;;  %3834 = vtanh.f32 %v1533_v15  ;;  %v1539_v27 = vadd.f32 %v1538_v7, %v4907_v40 }
 0x2c7   :  { %v4932_v21 = vpop.eup %3810  ;;  %3836 = vtanh.f32 %v1579_v19 }
 0x2c8   :  { %v1584_v12 = vpop.f32.mrb[16].mxu1  ;;  %v1542_v13 = vpop.f32.mrb[16].mxu0  ;;  %3838 = vtanh.f32 %v1581_v22 }
 0x2c9   :  { %v1586_v17 = vpop.f32.mrb[17].mxu1  ;;  %v1544_v18 = vpop.f32.mrb[17].mxu0  ;;  %v1585_v34 = vadd.f32 %v1584_v12, %v4902_v43  ;;  %3840 = vtanh.f32 %v1537_v24  ;;  %v1543_v38 = vadd.f32 %v1542_v13, %v4902_v43 }
 0x2ca   :  { %v4935_v23 = vpop.eup %3812  ;;  %v1587_v35 = vadd.f32 %v1586_v17, %v4907_v40  ;;  %3842 = vtanh.f32 %v1539_v27  ;;  %v1545_v42 = vadd.f32 %v1544_v18, %v4907_v40 }
 0x2cb   :  { %v4938_v26 = vpop.eup %3814  ;;  %3844 = vtanh.f32 %v1585_v34 }
 0x2cc   :  { %v1590_v44 = vpop.f32.mrb[18].mxu1  ;;  %v1548_v25 = vpop.f32.mrb[18].mxu0  ;;  %6249 = vst [vmem:[#allocation19_spill] sm:$0xff] %v4938_v26  ;;  %3846 = vtanh.f32 %v1587_v35 }
 0x2cd   :  { %v1592_v28 = vpop.f32.mrb[19].mxu1  ;;  %v1550_v29 = vpop.f32.mrb[19].mxu0  ;;  %v1591_v47 = vadd.f32 %v1590_v44, %v4902_v43  ;;  %v1549_v49 = vadd.f32 %v1548_v25, %v4902_v43 }
 0x2ce   :  { %v4941_v33 = vpop.eup %3816  ;;  %3848 = vtanh.f32 %v1543_v38  ;;  %v1593_v53 = vadd.f32 %v1592_v28, %v4907_v40  ;;  %v1551_v56 = vadd.f32 %v1550_v29, %v4907_v40 }
 0x2cf   :  { %v4944_v20 = vpop.eup %3818  ;;  %3850 = vtanh.f32 %v1545_v42 }
 0x2d0   :  { %v4947_v36 = vpop.eup %3820  ;;  %v1596_v39 = vpop.f32.mrb[20].mxu1  ;;  %3852 = vtanh.f32 %v1591_v47 }
 0x2d1   :  { %6250 = vst [vmem:[#allocation20_spill] sm:$0xff] %v4947_v36  ;;  %v4950_v41 = vpop.eup %3822  ;;  %v1598_v45 = vpop.f32.mrb[21].mxu1  ;;  %v1597_v51 = vadd.f32 %v1596_v39, %v4902_v43  ;;  %3854 = vtanh.f32 %v1549_v49 }
 0x2d2   :  { %6251 = vst [vmem:[#allocation21_spill] sm:$0xff] %v4950_v41  ;;  %v4953_v46 = vpop.eup %3824  ;;  %v1599_v59 = vadd.f32 %v1598_v45, %v4907_v40  ;;  %3856 = vtanh.f32 %v1593_v53 }
 0x2d3   :  { %v4956_v48 = vpop.eup %3826  ;;  %3858 = vtanh.f32 %v1551_v56 }
 0x2d4   :  { %v4959_v52 = vpop.eup %3828  ;;  %v1602_v54 = vpop.f32.mrb[22].mxu1  ;;  %3860 = vtanh.f32 %v1597_v51 }
 0x2d5   :  { %v4962_v55 = vpop.eup %3830  ;;  %v1604_v31 = vpop.f32.mrb[23].mxu1  ;;  %v1603_v61 = vadd.f32 %v1602_v54, %v4902_v43  ;;  %3862 = vtanh.f32 %v1599_v59 }
 0x2d6   :  { %6252 = vst [vmem:[#allocation22_spill] sm:$0xff] %v4962_v55  ;;  %v4965_v57 = vpop.eup %3832  ;;  %v1605_v0 = vadd.f32 %v1604_v31, %v4907_v40 }
 0x2d7   :  { %v4968_v58 = vpop.eup %3834  ;;  %3864 = vtanh.f32 %v1603_v61 }
 0x2d8   :  { %v4971_v60 = vpop.eup %3836  ;;  %v1608_v62 = vpop.f32.mrb[24].mxu1  ;;  %3866 = vtanh.f32 %v1605_v0 }
 0x2d9   :  { %6253 = vst [vmem:[#allocation23_spill] sm:$0xff] %v4971_v60  ;;  %v4974_v63 = vpop.eup %3838  ;;  %v1610_v1 = vpop.f32.mrb[25].mxu1  ;;  %v1609_v3 = vadd.f32 %v1608_v62, %v4902_v43 }
 0x2da   :  { %6254 = vst [vmem:[#allocation24_spill] sm:$0xff] %v4974_v63  ;;  %v4977_v2 = vpop.eup %3840  ;;  %v1611_v5 = vadd.f32 %v1610_v1, %v4907_v40 }
 0x2db   :  { %v4980_v4 = vpop.eup %3842  ;;  %3868 = vtanh.f32 %v1609_v3 }
 0x2dc   :  { %v4983_v6 = vpop.eup %3844  ;;  %v1614_v7 = vpop.f32.mrb[26].mxu1  ;;  %3870 = vtanh.f32 %v1611_v5 }
 0x2dd   :  { %v4990_v8 = vpop.eup %3846  ;;  %v1615_v9 = vadd.f32 %v1614_v7, %v4902_v43  ;;  %v1616_v11 = vpop.f32.mrb[27].mxu1 }
 0x2de   :  { %6255 = vst [vmem:[#allocation25_spill] sm:$0xff] %v4990_v8  ;;  %v4993_v12 = vpop.eup %3848  ;;  %v1617_v13 = vadd.f32 %v1616_v11, %v4907_v40 }
 0x2df   :  { %6256 = vst [vmem:[#allocation26_spill] sm:$0xff] %v4993_v12  ;;  %v4996_v15 = vpop.eup %3850  ;;  %3872 = vtanh.f32 %v1615_v9 }
 0x2e0   :  { %6257 = vst [vmem:[#allocation27_spill] sm:$0xff] %v4996_v15  ;;  %v3320_v17 = vpop.f32.mrb[20].mxu0  ;;  %v4998_v30 = vpop.eup %3852  ;;  %3874 = vtanh.f32 %v1617_v13 }
 0x2e1   :  { %6258 = vst [vmem:[#allocation28_spill] sm:$0xff] %v4998_v30  ;;  %v1811_v50 = vadd.f32 %v3320_v17, %v4988_v16  ;;  %v1805_v37 = vpop.f32.mrb[21].mxu0  ;;  %v1620_v18 = vpop.f32.mrb[28].mxu1 }
 0x2e2   :  { %v5001_v19 = vpop.eup %3854  ;;  %v1806_v22 = vadd.f32 %v1805_v37, %v4988_v16  ;;  %v1621_v24 = vadd.f32 %v1620_v18, %v4902_v43  ;;  %v1622_v44 = vpop.f32.mrb[29].mxu1  ;;  %v2113_v18 = vmax.f32 %v4941_v33, %v4944_v20 }
 0x2e3   :  { %v5005_v25 = vpop.eup %3856  ;;  %3876 = vtanh.f32 %v1811_v50  ;;  %v1623_v27 = vadd.f32 %v1622_v44, %v4907_v40 }
 0x2e4   :  { %6259 = vst [vmem:[#allocation29_spill] sm:$0xff] %v5005_v25  ;;  %v5008_v28 = vpop.eup %3858  ;;  %3878 = vtanh.f32 %v1806_v22  ;;  %v3323_v29 = vpop.f32.mrb[22].mxu0  ;;  %v2108_v22 = vmax.f32 %v4929_v32, %v4932_v21 }
 0x2e5   :  { %6260 = vst [vmem:[#allocation30_spill] sm:$0xff] %v5008_v28  ;;  %v5010_v34 = vpop.eup %3860  ;;  %v1821_v35 = vadd.f32 %v3323_v29, %v4988_v16  ;;  %v1815_v38 = vpop.f32.mrb[23].mxu0  ;;  %3880 = vtanh.f32 %v1621_v24 }
 0x2e6   :  { %v1626_v39 = vpop.f32.mrb[30].mxu1  ;;  %v5013_v42 = vpop.eup %3862  ;;  %v1816_v45 = vadd.f32 %v1815_v38, %v4988_v16  ;;  %3882 = vtanh.f32 %v1623_v27 }
 0x2e7   :  { %6261 = vst [vmem:[#allocation31_spill] sm:$0xff] %v5013_v42  ;;  %v1627_v47 = vadd.f32 %v1626_v39, %v4902_v43  ;;  %v1628_v49 = vpop.f32.mrb[31].mxu1  ;;  %v5017_v53 = vpop.eup %3864  ;;  %3884 = vtanh.f32 %v1821_v35 }
 0x2e8   :  { %6262 = vst [vmem:[#allocation32_spill] sm:$0xff] %v5017_v53  ;;  %v1629_v54 = vadd.f32 %v1628_v49, %v4907_v40  ;;  %v5020_v56 = vpop.eup %3866  ;;  %3886 = vtanh.f32 %v1816_v45  ;;  %v3326_v31 = vpop.f32.mrb[24].mxu0 }
 0x2e9   :  { %6263 = vst [vmem:[#allocation33_spill] sm:$0xff] %v5020_v56  ;;  %v5022_v51 = vpop.eup %3868  ;;  %v1831_v59 = vadd.f32 %v3326_v31, %v4988_v16  ;;  %v1825_v61 = vpop.f32.mrb[25].mxu0  ;;  %3888 = vtanh.f32 %v1627_v47 }
 0x2ea   :  { %v1632_v62 = vpop.f32.mrb[32].mxu1  ;;  %v5025_v0 = vpop.eup %3870  ;;  %v1826_v1 = vadd.f32 %v1825_v61, %v4988_v16  ;;  %3890 = vtanh.f32 %v1629_v54 }
 0x2eb   :  { %6264 = vst [vmem:[#allocation34_spill] sm:$0xff] %v5025_v0  ;;  %v1633_v3 = vadd.f32 %v1632_v62, %v4902_v43  ;;  %v1634_v5 = vpop.f32.mrb[33].mxu1  ;;  %v5029_v7 = vpop.eup %3872  ;;  %3892 = vtanh.f32 %v1831_v59 }
 0x2ec   :  { %6265 = vst [vmem:[#allocation35_spill] sm:$0xff] %v5029_v7  ;;  %v1635_v9 = vadd.f32 %v1634_v5, %v4907_v40  ;;  %v5032_v11 = vpop.eup %3874  ;;  %3894 = vtanh.f32 %v1826_v1  ;;  %v3329_v13 = vpop.f32.mrb[26].mxu0  ;;  %v2123_v5 = vmax.f32 %v4965_v57, %v4968_v58 }
 0x2ed   :  { %6266 = vst [vmem:[#allocation36_spill] sm:$0xff] %v5032_v11  ;;  %v5034_v17 = vpop.eup %3876  ;;  %v1841_v50 = vadd.f32 %v3329_v13, %v4988_v16  ;;  %v1835_v37 = vpop.f32.mrb[27].mxu0  ;;  %3896 = vtanh.f32 %v1633_v3  ;;  %v2118_v3 = vmax.f32 %v4953_v46, %v4956_v48 }
 0x2ee   :  { %v1638_v24 = vpop.f32.mrb[34].mxu1  ;;  %v5041_v44 = vpop.eup %3878  ;;  %v1836_v27 = vadd.f32 %v1835_v37, %v4988_v16  ;;  %v2114_v29 = vsel %vm471_vm0, %v5034_v17, -inf  ;;  %3898 = vtanh.f32 %v1635_v9 }
 0x2ef   :  { %v1639_v35 = vadd.f32 %v1638_v24, %v4902_v43  ;;  %v1640_v38 = vpop.f32.mrb[35].mxu1  ;;  %v5047_v39 = vpop.eup %3880  ;;  %3900 = vtanh.f32 %v1841_v50  ;;  %v2115_v45 = vmax.f32 %v2113_v18, %v2114_v29  ;;  %v2109_v47 = vsel %vm471_vm0, %v5041_v44, -inf }
 0x2f0   :  { %v1641_v49 = vadd.f32 %v1640_v38, %v4907_v40  ;;  %v5052_v54 = vpop.eup %3882  ;;  %3902 = vtanh.f32 %v1836_v27  ;;  %v3332_v31 = vpop.f32.mrb[28].mxu0  ;;  %v2110_v59 = vmax.f32 %v2108_v22, %v2109_v47 }
 0x2f1   :  { %6267 = vst [vmem:[#allocation37_spill] sm:$0xff] %v5052_v54  ;;  %v5054_v61 = vpop.eup %3884  ;;  %v1851_v62 = vadd.f32 %v3332_v31, %v4988_v16  ;;  %v1845_v1 = vpop.f32.mrb[29].mxu0  ;;  %2116 = vmax.xlane.f32.xlu1 %v2115_v45  ;;  %3904 = vtanh.f32 %v1639_v35 }
 0x2f2   :  { %v1644_v9 = vpop.f32.mrb[36].mxu1  ;;  %v5061_v13 = vpop.eup %3886  ;;  %v1846_v50 = vadd.f32 %v1845_v1, %v4988_v16  ;;  %2111 = vmax.xlane.f32.xlu0 %v2110_v59  ;;  %v2124_v37 = vsel %vm471_vm0, %v5054_v61, -inf  ;;  %3906 = vtanh.f32 %v1641_v49  ;;  %v2128_v1 = vmax.f32 %v4977_v2, %v4980_v4 }
 0x2f3   :  { %v1645_v18 = vadd.f32 %v1644_v9, %v4902_v43  ;;  %v1646_v22 = vpop.f32.mrb[37].mxu1  ;;  %v5067_v24 = vpop.eup %3888  ;;  %3908 = vtanh.f32 %v1851_v62  ;;  %v2119_v27 = vsel %vm471_vm0, %v5061_v13, -inf  ;;  %v2125_v29 = vmax.f32 %v2123_v5, %v2124_v37 }
 0x2f4   :  { %6268 = vst [vmem:[#allocation38_spill] sm:$0xff] %v5067_v24  ;;  %v1647_v35 = vadd.f32 %v1646_v22, %v4907_v40  ;;  %v5072_v38 = vpop.eup %3890  ;;  %3910 = vtanh.f32 %v1846_v50  ;;  %v3335_v45 = vpop.f32.mrb[30].mxu0  ;;  %v2120_v47 = vmax.f32 %v2118_v3, %v2119_v27  ;;  %v2133_v62 = vmax.f32 %v4993_v12, %v4996_v15 }
 0x2f5   :  { %6269 = vst [vmem:[#allocation39_spill] sm:$0xff] %v5072_v38  ;;  %v5074_v31 = vpop.eup %3892  ;;  %v1861_v49 = vadd.f32 %v3335_v45, %v4988_v16  ;;  %v1855_v59 = vpop.f32.mrb[31].mxu0  ;;  %3912 = vtanh.f32 %v1645_v18 }
 0x2f6   :  { %6270 = vst [vmem:[#allocation40_spill] sm:$0xff] %v5074_v31  ;;  %v1650_v5 = vpop.f32.mrb[38].mxu1  ;;  %v5081_v9 = vpop.eup %3894  ;;  %v1856_v37 = vadd.f32 %v1855_v59, %v4988_v16  ;;  %2121 = vmax.xlane.f32.xlu1 %v2120_v47  ;;  %2126 = vmax.xlane.f32.xlu0 %v2125_v29  ;;  %v2134_v3 = vsel %vm471_vm0, %v5074_v31, -inf  ;;  %3914 = vtanh.f32 %v1647_v35  ;;  %v2138_v31 = vmax.f32 %v5001_v19, %v5008_v28 }
 0x2f7   :  { %v1651_v50 = vadd.f32 %v1650_v5, %v4902_v43  ;;  %v1652_v22 = vpop.f32.mrb[39].mxu1  ;;  %v5087_v27 = vpop.eup %3896  ;;  %3916 = vtanh.f32 %v1861_v49  ;;  %v2129_v18 = vsel %vm471_vm0, %v5081_v9, -inf  ;;  %v2135_v45 = vmax.f32 %v2133_v62, %v2134_v3 }
 0x2f8   :  { %v1653_v15 = vadd.f32 %v1652_v22, %v4907_v40  ;;  %v5092_v12 = vpop.eup %3898  ;;  %3918 = vtanh.f32 %v1856_v37  ;;  %v3338_v29 = vpop.f32.mrb[32].mxu0  ;;  %v2130_v47 = vmax.f32 %v2128_v1, %v2129_v18  ;;  %v2143_v49 = vmax.f32 %v4923_v10, %v4926_v14 }
 0x2f9   :  { %6271 = vst [vmem:[#allocation41_spill] sm:$0xff] %v5092_v12  ;;  %v5094_v59 = vpop.eup %3900  ;;  %v1871_v35 = vadd.f32 %v3338_v29, %v4988_v16  ;;  %v1865_v5 = vpop.f32.mrb[33].mxu0  ;;  %3920 = vtanh.f32 %v1651_v50 }
 0x2fa   :  { %6272 = vst [vmem:[#allocation42_spill] sm:$0xff] %v5094_v59  ;;  %v1656_v62 = vpop.f32.mrb[40].mxu1  ;;  %v5101_v3 = vpop.eup %3902  ;;  %v1866_v22 = vadd.f32 %v1865_v5, %v4988_v16  ;;  %2131 = vmax.xlane.f32.xlu1 %v2130_v47  ;;  %2136 = vmax.xlane.f32.xlu0 %v2135_v45  ;;  %v2144_v1 = vsel %vm471_vm0, %v5094_v59, -inf  ;;  %3922 = vtanh.f32 %v1653_v15  ;;  %v2148_v59 = vmax.f32 %v4935_v23, %v4938_v26 }
 0x2fb   :  { %v1657_v37 = vadd.f32 %v1656_v62, %v4902_v43  ;;  %v1658_v18 = vpop.f32.mrb[41].mxu1  ;;  %v5107_v29 = vpop.eup %3904  ;;  %3924 = vtanh.f32 %v1871_v35  ;;  %v2139_v50 = vsel %vm471_vm0, %v5101_v3, -inf  ;;  %v2145_v14 = vmax.f32 %v2143_v49, %v2144_v1 }
 0x2fc   :  { %6273 = vst [vmem:[#allocation43_spill] sm:$0xff] %v5107_v29  ;;  %v1659_v10 = vadd.f32 %v1658_v18, %v4907_v40  ;;  %v5112_v28 = vpop.eup %3906  ;;  %3926 = vtanh.f32 %v1866_v22  ;;  %v3341_v45 = vpop.f32.mrb[34].mxu0  ;;  %v2140_v47 = vmax.f32 %v2138_v31, %v2139_v50  ;;  %v2153_v35 = vmax.f32 %v4947_v36, %v4950_v41 }
 0x2fd   :  { %6274 = vst [vmem:[#allocation44_spill] sm:$0xff] %v5112_v28  ;;  %v5114_v5 = vpop.eup %3908  ;;  %v1881_v15 = vadd.f32 %v3341_v45, %v4988_v16  ;;  %v1875_v62 = vpop.f32.mrb[35].mxu0  ;;  %3928 = vtanh.f32 %v1657_v37 }
 0x2fe   :  { %6275 = vst [vmem:[#allocation45_spill] sm:$0xff] %v5114_v5  ;;  %v1662_v49 = vpop.f32.mrb[42].mxu1  ;;  %v5121_v1 = vpop.eup %3910  ;;  %v1876_v18 = vadd.f32 %v1875_v62, %v4988_v16  ;;  %2141 = vmax.xlane.f32.xlu1 %v2140_v47  ;;  %2146 = vmax.xlane.f32.xlu0 %v2145_v14  ;;  %v2154_v31 = vsel %vm471_vm0, %v5114_v5, -inf  ;;  %3930 = vtanh.f32 %v1659_v10  ;;  %v2158_v5 = vmax.f32 %v4959_v52, %v4962_v55 }
 0x2ff   :  { %v1663_v22 = vadd.f32 %v1662_v49, %v4902_v43  ;;  %v1664_v50 = vpop.f32.mrb[43].mxu1  ;;  %v5127_v45 = vpop.eup %3912  ;;  %3932 = vtanh.f32 %v1881_v15  ;;  %v2149_v37 = vsel %vm471_vm0, %v5121_v1, -inf  ;;  %v2155_v41 = vmax.f32 %v2153_v35, %v2154_v31 }
 0x300   :  { %v1665_v36 = vadd.f32 %v1664_v50, %v4907_v40  ;;  %v5132_v26 = vpop.eup %3914  ;;  %3934 = vtanh.f32 %v1876_v18  ;;  %v3344_v14 = vpop.f32.mrb[36].mxu0  ;;  %v2150_v47 = vmax.f32 %v2148_v59, %v2149_v37  ;;  %v2163_v15 = vmax.f32 %v4971_v60, %v4974_v63 }
 0x301   :  { %6276 = vst [vmem:[#allocation46_spill] sm:$0xff] %v5132_v26  ;;  %v5134_v62 = vpop.eup %3916  ;;  %v1891_v10 = vadd.f32 %v3344_v14, %v4988_v16  ;;  %v1885_v49 = vpop.f32.mrb[37].mxu0  ;;  %3936 = vtanh.f32 %v1663_v22 }
 0x302   :  { %6277 = vst [vmem:[#allocation47_spill] sm:$0xff] %v5134_v62  ;;  %v1668_v35 = vpop.f32.mrb[44].mxu1  ;;  %v5141_v31 = vpop.eup %3918  ;;  %v1886_v50 = vadd.f32 %v1885_v49, %v4988_v16  ;;  %2151 = vmax.xlane.f32.xlu1 %v2150_v47  ;;  %2156 = vmax.xlane.f32.xlu0 %v2155_v41  ;;  %v2164_v59 = vsel %vm471_vm0, %v5134_v62, -inf  ;;  %3938 = vtanh.f32 %v1665_v36  ;;  %v2168_v62 = vmax.f32 %v4983_v6, %v4990_v8 }
 0x303   :  { %v1669_v18 = vadd.f32 %v1668_v35, %v4902_v43  ;;  %v1670_v37 = vpop.f32.mrb[45].mxu1  ;;  %v5147_v14 = vpop.eup %3920  ;;  %3940 = vtanh.f32 %v1891_v10  ;;  %v2159_v22 = vsel %vm471_vm0, %v5141_v31, -inf  ;;  %v2165_v63 = vmax.f32 %v2163_v15, %v2164_v59 }
 0x304   :  { %6278 = vst [vmem:[#allocation48_spill] sm:$0xff] %v5147_v14  ;;  %v1671_v60 = vadd.f32 %v1670_v37, %v4907_v40  ;;  %v5152_v55 = vpop.eup %3922  ;;  %3942 = vtanh.f32 %v1886_v50  ;;  %v3347_v41 = vpop.f32.mrb[38].mxu0  ;;  %v2160_v47 = vmax.f32 %v2158_v5, %v2159_v22  ;;  %v2173_v10 = vmax.f32 %v4998_v30, %v5005_v25 }
 0x305   :  { %6279 = vst [vmem:[#allocation49_spill] sm:$0xff] %v5152_v55  ;;  %v5154_v49 = vpop.eup %3924  ;;  %v1901_v36 = vadd.f32 %v3347_v41, %v4988_v16  ;;  %v1895_v35 = vpop.f32.mrb[39].mxu0  ;;  %3944 = vtanh.f32 %v1669_v18 }
 0x306   :  { %6280 = vst [vmem:[#allocation50_spill] sm:$0xff] %v5154_v49  ;;  %v1674_v15 = vpop.f32.mrb[46].mxu1  ;;  %v5161_v59 = vpop.eup %3926  ;;  %v1896_v37 = vadd.f32 %v1895_v35, %v4988_v16  ;;  %2161 = vmax.xlane.f32.xlu1 %v2160_v47  ;;  %2166 = vmax.xlane.f32.xlu0 %v2165_v63  ;;  %v2174_v5 = vsel %vm471_vm0, %v5154_v49, -inf  ;;  %3946 = vtanh.f32 %v1671_v60  ;;  %v2178_v49 = vmax.f32 %v5010_v34, %v5013_v42 }
 0x307   :  { %v1675_v50 = vadd.f32 %v1674_v15, %v4902_v43  ;;  %v1676_v22 = vpop.f32.mrb[47].mxu1  ;;  %v5167_v41 = vpop.eup %3928  ;;  %3948 = vtanh.f32 %v1901_v36  ;;  %v2169_v18 = vsel %vm471_vm0, %v5161_v59, -inf  ;;  %v2175_v25 = vmax.f32 %v2173_v10, %v2174_v5 }
 0x308   :  { %v1677_v30 = vadd.f32 %v1676_v22, %v4907_v40  ;;  %v5172_v8 = vpop.eup %3930  ;;  %3950 = vtanh.f32 %v1896_v37  ;;  %v3350_v63 = vpop.f32.mrb[40].mxu0  ;;  %v2170_v47 = vmax.f32 %v2168_v62, %v2169_v18  ;;  %v2183_v36 = vmax.f32 %v5017_v53, %v5020_v56 }
 0x309   :  { %6281 = vst [vmem:[#allocation51_spill] sm:$0xff] %v5172_v8  ;;  %v5174_v35 = vpop.eup %3932  ;;  %v1911_v60 = vadd.f32 %v3350_v63, %v4988_v16  ;;  %v1905_v15 = vpop.f32.mrb[41].mxu0  ;;  %3952 = vtanh.f32 %v1675_v50 }
 0x30a   :  { %6282 = vst [vmem:[#allocation52_spill] sm:$0xff] %v5174_v35  ;;  %v1680_v10 = vpop.f32.mrb[48].mxu1  ;;  %v5181_v5 = vpop.eup %3934  ;;  %v1906_v22 = vadd.f32 %v1905_v15, %v4988_v16  ;;  %2171 = vmax.xlane.f32.xlu1 %v2170_v47  ;;  %2176 = vmax.xlane.f32.xlu0 %v2175_v25  ;;  %v2184_v62 = vsel %vm471_vm0, %v5174_v35, -inf  ;;  %3954 = vtanh.f32 %v1677_v30  ;;  %v2188_v35 = vmax.f32 %v5022_v51, %v5025_v0 }
 0x30b   :  { %v1681_v37 = vadd.f32 %v1680_v10, %v4902_v43  ;;  %v1682_v18 = vpop.f32.mrb[49].mxu1  ;;  %v5187_v63 = vpop.eup %3936  ;;  %3956 = vtanh.f32 %v1911_v60  ;;  %v2179_v50 = vsel %vm471_vm0, %v5181_v5, -inf  ;;  %v2185_v56 = vmax.f32 %v2183_v36, %v2184_v62 }
 0x30c   :  { %6283 = vst [vmem:[#allocation53_spill] sm:$0xff] %v5187_v63  ;;  %v1683_v53 = vadd.f32 %v1682_v18, %v4907_v40  ;;  %v5192_v42 = vpop.eup %3938  ;;  %3958 = vtanh.f32 %v1906_v22  ;;  %v3353_v25 = vpop.f32.mrb[42].mxu0  ;;  %v2180_v47 = vmax.f32 %v2178_v49, %v2179_v50  ;;  %v2193_v60 = vmax.f32 %v5029_v7, %v5032_v11 }
 0x30d   :  { %6284 = vst [vmem:[#allocation54_spill] sm:$0xff] %v5192_v42  ;;  %v5194_v15 = vpop.eup %3940  ;;  %v1921_v30 = vadd.f32 %v3353_v25, %v4988_v16  ;;  %v1915_v10 = vpop.f32.mrb[43].mxu0  ;;  %3960 = vtanh.f32 %v1681_v37 }
 0x30e   :  { %6285 = vst [vmem:[#allocation55_spill] sm:$0xff] %v5194_v15  ;;  %v1686_v36 = vpop.f32.mrb[50].mxu1  ;;  %v5201_v62 = vpop.eup %3942  ;;  %v1916_v18 = vadd.f32 %v1915_v10, %v4988_v16  ;;  %2181 = vmax.xlane.f32.xlu1 %v2180_v47  ;;  %2186 = vmax.xlane.f32.xlu0 %v2185_v56  ;;  %v2194_v49 = vsel %vm471_vm0, %v5194_v15, -inf  ;;  %3962 = vtanh.f32 %v1683_v53  ;;  %v2198_v15 = vmax.f32 %v5047_v39, %v5052_v54 }
 0x30f   :  { %v1687_v22 = vadd.f32 %v1686_v36, %v4902_v43  ;;  %v1688_v50 = vpop.f32.mrb[51].mxu1  ;;  %v5207_v25 = vpop.eup %3944  ;;  %3964 = vtanh.f32 %v1921_v30  ;;  %v2189_v37 = vsel %vm471_vm0, %v5201_v62, -inf  ;;  %v2195_v11 = vmax.f32 %v2193_v60, %v2194_v49 }
 0x310   :  { %v1689_v7 = vadd.f32 %v1688_v50, %v4907_v40  ;;  %v5212_v0 = vpop.eup %3946  ;;  %3966 = vtanh.f32 %v1916_v18  ;;  %v3356_v56 = vpop.f32.mrb[44].mxu0  ;;  %v2190_v47 = vmax.f32 %v2188_v35, %v2189_v37  ;;  %v2203_v30 = vmax.f32 %v5067_v24, %v5072_v38 }
 0x311   :  { %6286 = vst [vmem:[#allocation56_spill] sm:$0xff] %v5212_v0  ;;  %v5214_v10 = vpop.eup %3948  ;;  %v1931_v53 = vadd.f32 %v3356_v56, %v4988_v16  ;;  %v1925_v36 = vpop.f32.mrb[45].mxu0  ;;  %3968 = vtanh.f32 %v1687_v22 }
 0x312   :  { %6287 = vst [vmem:[#allocation57_spill] sm:$0xff] %v5214_v10  ;;  %v1692_v60 = vpop.f32.mrb[52].mxu1  ;;  %v5221_v49 = vpop.eup %3950  ;;  %v1926_v50 = vadd.f32 %v1925_v36, %v4988_v16  ;;  %2191 = vmax.xlane.f32.xlu1 %v2190_v47  ;;  %2196 = vmax.xlane.f32.xlu0 %v2195_v11  ;;  %v2204_v35 = vsel %vm471_vm0, %v5214_v10, -inf  ;;  %3970 = vtanh.f32 %v1689_v7  ;;  %v2213_v10 = vmax.f32 %v5107_v29, %v5112_v28 }
 0x313   :  { %v1693_v18 = vadd.f32 %v1692_v60, %v4902_v43  ;;  %v1694_v37 = vpop.f32.mrb[53].mxu1  ;;  %v5227_v56 = vpop.eup %3952  ;;  %3972 = vtanh.f32 %v1931_v53  ;;  %v2199_v22 = vsel %vm471_vm0, %v5221_v49, -inf  ;;  %v2205_v38 = vmax.f32 %v2203_v30, %v2204_v35 }
 0x314   :  { %6288 = vst [vmem:[#allocation58_spill] sm:$0xff] %v5227_v56  ;;  %v1695_v24 = vadd.f32 %v1694_v37, %v4907_v40  ;;  %v5232_v54 = vpop.eup %3954  ;;  %3974 = vtanh.f32 %v1926_v50  ;;  %v3359_v11 = vpop.f32.mrb[46].mxu0  ;;  %v2200_v47 = vmax.f32 %v2198_v15, %v2199_v22  ;;  %v2208_v53 = vmax.f32 %v5087_v27, %v5092_v12 }
 0x315   :  { %6289 = vst [vmem:[#allocation59_spill] sm:$0xff] %v5232_v54  ;;  %v5234_v36 = vpop.eup %3956  ;;  %v1941_v7 = vadd.f32 %v3359_v11, %v4988_v16  ;;  %v1935_v60 = vpop.f32.mrb[47].mxu0  ;;  %3976 = vtanh.f32 %v1693_v18 }
 0x316   :  { %6290 = vst [vmem:[#allocation60_spill] sm:$0xff] %v5234_v36  ;;  %v1698_v30 = vpop.f32.mrb[54].mxu1  ;;  %v5241_v35 = vpop.eup %3958  ;;  %v1936_v37 = vadd.f32 %v1935_v60, %v4988_v16  ;;  %2201 = vmax.xlane.f32.xlu1 %v2200_v47  ;;  %2206 = vmax.xlane.f32.xlu0 %v2205_v38  ;;  %v2214_v15 = vsel %vm471_vm0, %v5234_v36, -inf  ;;  %3978 = vtanh.f32 %v1695_v24  ;;  %v2223_v36 = vmax.f32 %v5147_v14, %v5152_v55 }
 0x317   :  { %v1699_v50 = vadd.f32 %v1698_v30, %v4902_v43  ;;  %v1700_v18 = vpop.f32.mrb[55].mxu1  ;;  %v5247_v22 = vpop.eup %3960  ;;  %3980 = vtanh.f32 %v1941_v7  ;;  %v2209_v11 = vsel %vm471_vm0, %v5241_v35, -inf  ;;  %v2215_v28 = vmax.f32 %v2213_v10, %v2214_v15 }
 0x318   :  { %v1701_v29 = vadd.f32 %v1700_v18, %v4907_v40  ;;  %v5252_v12 = vpop.eup %3962  ;;  %3982 = vtanh.f32 %v1936_v37  ;;  %v3362_v38 = vpop.f32.mrb[48].mxu0  ;;  %v2210_v47 = vmax.f32 %v2208_v53, %v2209_v11  ;;  %v2218_v7 = vmax.f32 %v5127_v45, %v5132_v26 }
 0x319   :  { %6291 = vst [vmem:[#allocation61_spill] sm:$0xff] %v5252_v12  ;;  %v5254_v60 = vpop.eup %3964  ;;  %v1951_v24 = vadd.f32 %v3362_v38, %v4988_v16  ;;  %v1945_v30 = vpop.f32.mrb[49].mxu0  ;;  %3984 = vtanh.f32 %v1699_v50 }
 0x31a   :  { %6292 = vst [vmem:[#allocation62_spill] sm:$0xff] %v5254_v60  ;;  %v1704_v10 = vpop.f32.mrb[56].mxu1  ;;  %v5261_v15 = vpop.eup %3966  ;;  %v1946_v18 = vadd.f32 %v1945_v30, %v4988_v16  ;;  %2211 = vmax.xlane.f32.xlu1 %v2210_v47  ;;  %2216 = vmax.xlane.f32.xlu0 %v2215_v28  ;;  %3986 = vtanh.f32 %v1701_v29  ;;  %v2224_v53 = vsel %vm471_vm0, %v5254_v60, -inf  ;;  %v2233_v60 = vmax.f32 %v5187_v63, %v5192_v42 }
 0x31b   :  { %v1705_v37 = vadd.f32 %v1704_v10, %v4902_v43  ;;  %v1706_v50 = vpop.f32.mrb[57].mxu1  ;;  %v5267_v11 = vpop.eup %3968  ;;  %3988 = vtanh.f32 %v1951_v24  ;;  %v2219_v38 = vsel %vm471_vm0, %v5261_v15, -inf  ;;  %v2225_v55 = vmax.f32 %v2223_v36, %v2224_v53 }
 0x31c   :  { %6293 = vst [vmem:[#allocation63_spill] sm:$0xff] %v5267_v11  ;;  %v1707_v14 = vadd.f32 %v1706_v50, %v4907_v40  ;;  %v5272_v26 = vpop.eup %3970  ;;  %3990 = vtanh.f32 %v1946_v18  ;;  %v3365_v28 = vpop.f32.mrb[50].mxu0  ;;  %v2220_v29 = vmax.f32 %v2218_v7, %v2219_v38  ;;  %v2228_v24 = vmax.f32 %v5167_v41, %v5172_v8 }
 0x31d   :  { %6294 = vst [vmem:[#allocation64_spill] sm:$0xff] %v5272_v26  ;;  %v5274_v47 = vpop.eup %3972  ;;  %v1961_v30 = vadd.f32 %v3365_v28, %v4988_v16  ;;  %v1955_v10 = vpop.f32.mrb[51].mxu0  ;;  %3992 = vtanh.f32 %v1705_v37 }
 0x31e   :  { %6295 = vst [vmem:[#allocation65_spill] sm:$0xff] %v5274_v47  ;;  %v1710_v36 = vpop.f32.mrb[58].mxu1  ;;  %v5281_v53 = vpop.eup %3974  ;;  %v1956_v50 = vadd.f32 %v1955_v10, %v4988_v16  ;;  %2221 = vmax.xlane.f32.xlu1 %v2220_v29  ;;  %2226 = vmax.xlane.f32.xlu0 %v2225_v55  ;;  %3994 = vtanh.f32 %v1707_v14  ;;  %v2234_v7 = vsel %vm471_vm0, %v5274_v47, -inf  ;;  %v2243_v47 = vmax.f32 %v5227_v56, %v5232_v54 }
 0x31f   :  { %v1711_v18 = vadd.f32 %v1710_v36, %v4902_v43  ;;  %v1712_v37 = vpop.f32.mrb[59].mxu1  ;;  %v5287_v38 = vpop.eup %3976  ;;  %3996 = vtanh.f32 %v1961_v30  ;;  %v2229_v28 = vsel %vm471_vm0, %v5281_v53, -inf  ;;  %v2235_v42 = vmax.f32 %v2233_v60, %v2234_v7 }
 0x320   :  { %6296 = vst [vmem:[#allocation66_spill] sm:$0xff] %v5287_v38  ;;  %v1713_v63 = vadd.f32 %v1712_v37, %v4907_v40  ;;  %v5292_v8 = vpop.eup %3978  ;;  %3998 = vtanh.f32 %v1956_v50  ;;  %v3368_v55 = vpop.f32.mrb[52].mxu0  ;;  %v2230_v14 = vmax.f32 %v2228_v24, %v2229_v28  ;;  %v2238_v30 = vmax.f32 %v5207_v25, %v5212_v0 }
 0x321   :  { %6297 = vst [vmem:[#allocation67_spill] sm:$0xff] %v5292_v8  ;;  %v5294_v29 = vpop.eup %3980  ;;  %v1971_v10 = vadd.f32 %v3368_v55, %v4988_v16  ;;  %v1965_v36 = vpop.f32.mrb[53].mxu0  ;;  %4000 = vtanh.f32 %v1711_v18 }
 0x322   :  { %6298 = vst [vmem:[#allocation68_spill] sm:$0xff] %v5294_v29  ;;  %v1716_v60 = vpop.f32.mrb[60].mxu1  ;;  %v5301_v7 = vpop.eup %3982  ;;  %v1966_v37 = vadd.f32 %v1965_v36, %v4988_v16  ;;  %2231 = vmax.xlane.f32.xlu1 %v2230_v14  ;;  %2236 = vmax.xlane.f32.xlu0 %v2235_v42  ;;  %4002 = vtanh.f32 %v1713_v63  ;;  %v2244_v24 = vsel %vm471_vm0, %v5294_v29, -inf }
 0x323   :  { %6299 = vst [vmem:[#allocation69_spill] sm:$0xff] %v5301_v7  ;;  %v1717_v50 = vadd.f32 %v1716_v60, %v4902_v43  ;;  %v1718_v18 = vpop.f32.mrb[61].mxu1  ;;  %v5307_v28 = vpop.eup %3984  ;;  %4004 = vtanh.f32 %v1971_v10  ;;  %v2239_v55 = vsel %vm471_vm0, %v5301_v7, -inf  ;;  %v2245_v54 = vmax.f32 %v2243_v47, %v2244_v24 }
 0x324   :  { %6300 = vst [vmem:[#allocation70_spill] sm:$0xff] %v5307_v28  ;;  %v1719_v56 = vadd.f32 %v1718_v18, %v4907_v40  ;;  %v5312_v0 = vpop.eup %3986  ;;  %4006 = vtanh.f32 %v1966_v37  ;;  %v2240_v42 = vmax.f32 %v2238_v30, %v2239_v55  ;;  %v3371_v63 = vpop.f32.mrb[54].mxu0  ;;  %v2248_v60 = vmax.f32 %v5247_v22, %v5252_v12 }
 0x325   :  { %6301 = vst [vmem:[#allocation71_spill] sm:$0xff] %v5312_v0  ;;  %v5314_v14 = vpop.eup %3988  ;;  %4008 = vtanh.f32 %v1717_v50  ;;  %v1975_v36 = vpop.f32.mrb[55].mxu0  ;;  %v2253_v10 = vmax.f32 %v5267_v11, %v5272_v26 }
 0x326   :  { %6302 = vst [vmem:[#allocation72_spill] sm:$0xff] %v5314_v14  ;;  %v1722_v29 = vpop.f32.mrb[62].mxu1  ;;  %v5320_v7 = vpop.eup %3990  ;;  %2241 = vmax.xlane.f32.xlu1 %v2240_v42  ;;  %2246 = vmax.xlane.f32.xlu0 %v2245_v54  ;;  %4010 = vtanh.f32 %v1719_v56  ;;  %v1976_v47 = vadd.f32 %v1975_v36, %v4988_v16  ;;  %v2254_v30 = vsel %vm471_vm0, %v5314_v14, -inf  ;;  %v2258_v36 = vmax.f32 %v5287_v38, %v5292_v8 }
 0x327   :  { %v1723_v37 = vadd.f32 %v1722_v29, %v4902_v43  ;;  %v1724_v24 = vpop.f32.mrb[63].mxu1  ;;  %v5326_v50 = vpop.eup %3992  ;;  %v2249_v18 = vsel %vm471_vm0, %v5320_v7, -inf  ;;  %v2255_v55 = vmax.f32 %v2253_v10, %v2254_v30  ;;  %v2263_v29 = vmax.f32 %v5307_v28, %v5312_v0 }
 0x328   :  { %v5330_v26 = vpop.eup %3994  ;;  %4012 = vtanh.f32 %v1976_v47  ;;  %v2250_v42 = vmax.f32 %v2248_v60, %v2249_v18  ;;  %v3374_v54 = vpop.f32.mrb[56].mxu0 }
 0x329   :  { %v5332_v56 = vpop.eup %3996  ;;  %v1728_v14 = vpop.f32.mrb[64].mxu1  ;;  %4014 = vtanh.f32 %v1723_v37 }
 0x32a   :  { %6303 = vst [vmem:[#allocation73_spill] sm:$0xff] %v5332_v56  ;;  %v1985_v11 = vpop.f32.mrb[57].mxu0  ;;  %v5338_v12 = vpop.eup %3998  ;;  %2251 = vmax.xlane.f32.xlu1 %v2250_v42  ;;  %2256 = vmax.xlane.f32.xlu0 %v2255_v55  ;;  %v2264_v10 = vsel %vm471_vm0, %v5332_v56, -inf  ;;  %v1729_v60 = vadd.f32 %v1728_v14, %v4902_v43  ;;  %v1991_v42 = vadd.f32 %v3374_v54, %v4988_v16 }
 0x32b   :  { %6304 = vst [vmem:[#allocation74_spill] sm:$0xff] %v5338_v12  ;;  %v1730_v47 = vpop.f32.mrb[65].mxu1  ;;  %v1986_v30 = vadd.f32 %v1985_v11, %v4988_v16  ;;  %v5344_v18 = vpop.eup %4000  ;;  %v2259_v0 = vsel %vm471_vm0, %v5338_v12, -inf  ;;  %v2265_v28 = vmax.f32 %v2263_v29, %v2264_v10  ;;  %v1981_v14 = vadd.f32 %v3371_v63, %v4988_v16 }
 0x32c   :  { %v1731_v8 = vadd.f32 %v1730_v47, %v4907_v40  ;;  %v5350_v55 = vpop.eup %4002  ;;  %v2260_v37 = vmax.f32 %v2258_v36, %v2259_v0  ;;  %4016 = vtanh.f32 %v1729_v60  ;;  %v1725_v11 = vadd.f32 %v1724_v24, %v4907_v40  ;;  %v1734_v38 = vpop.f32.mrb[66].mxu1 }
 0x32d   :  { %v5352_v56 = vpop.eup %4004  ;;  %v2273_v12 = vmax.f32 %v5344_v18, %v5350_v55  ;;  %v2268_v0 = vmax.f32 %v5326_v50, %v5330_v26  ;;  %v1735_v54 = vadd.f32 %v1734_v38, %v4902_v43  ;;  %v1736_v36 = vpop.f32.mrb[67].mxu1 }
 0x32e   :  { %4018 = vtanh.f32 %v1731_v8  ;;  %v5358_v29 = vpop.eup %4006  ;;  %2261 = vmax.xlane.f32.xlu1 %v2260_v37  ;;  %2266 = vmax.xlane.f32.xlu0 %v2265_v28  ;;  %v2274_v16 = vsel %vm471_vm0, %v5352_v56, -inf  ;;  %v1737_v24 = vadd.f32 %v1736_v36, %v4907_v40 }
 0x32f   :  { %4020 = vtanh.f32 %v1986_v30  ;;  %v5365_v63 = vpop.eup %4008  ;;  %v2269_v8 = vsel %vm471_vm0, %v5358_v29, -inf  ;;  %v2275_v10 = vmax.f32 %v2273_v12, %v2274_v16 }
 0x330   :  { %4022 = vtanh.f32 %v1991_v42  ;;  %v5370_v28 = vpop.eup %4010  ;;  %v2270_v60 = vmax.f32 %v2268_v0, %v2269_v8 }
 0x331   :  { %4024 = vtanh.f32 %v1735_v54  ;;  %v2278_v43 = vmax.f32 %v5365_v63, %v5370_v28 }
 0x332   :  { %4026 = vtanh.f32 %v1737_v24  ;;  %v5372_v47 = vpop.eup %4012  ;;  %2271 = vmax.xlane.f32.xlu1 %v2270_v60  ;;  %2276 = vmax.xlane.f32.xlu0 %v2275_v10 }
 0x333   :  { %4028 = vtanh.f32 %v1725_v11  ;;  %v2279_v38 = vsel %vm471_vm0, %v5372_v47, -inf  ;;  %v5378_v30 = vpop.eup %4014 }
 0x334   :  { %4030 = vtanh.f32 %v1981_v14  ;;  %v2280_v40 = vmax.f32 %v2278_v43, %v2279_v38 }
 0x336   :  { %v5380_v12 = vpop.eup %4016  ;;  %2281 = vmax.xlane.f32.xlu1 %v2280_v40 }
 0x338   :  { %v5382_v42 = vpop.eup %4018 }
 0x339   :  { %6305 = vst [vmem:[#allocation75_spill] sm:$0xff] %v5382_v42  ;;  %v5384_v37 = vpop.eup %4020  ;;  %v2288_v11 = vmax.f32 %v5380_v12, %v5382_v42 }
 0x33a   :  { %6306 = vst [vmem:[#allocation76_spill] sm:$0xff] %v5384_v37  ;;  %v5388_v0 = vpop.eup %4022  ;;  %v2289_v14 = vsel %vm471_vm0, %v5384_v37, -inf }
 0x33b   :  { %6307 = vst [vmem:[#allocation77_spill] sm:$0xff] %v5388_v0  ;;  %v5392_v54 = vpop.eup %4024  ;;  %v2290_v36 = vmax.f32 %v2288_v11, %v2289_v14  ;;  %v2297_v60 = vsel %vm2296_vm6, %v5388_v0, -inf }
 0x33c   :  { %6308 = vst [vmem:[#allocation78_spill] sm:$0xff] %v5392_v54  ;;  %v5394_v16 = vpop.eup %4026  ;;  %v2293_v8 = vsel %vm475_vm1, %v5392_v54, -inf }
 0x33d   :  { %6309 = vst [vmem:[#allocation79_spill] sm:$0xff] %v5394_v16  ;;  %v5398_v24 = vpop.eup %4028  ;;  %2291 = vmax.xlane.f32.xlu1 %v2290_v36  ;;  %v2294_v10 = vsel %vm475_vm1, %v5394_v16, -inf }
 0x33e   :  { %6310 = vst [vmem:[#allocation80_spill] sm:$0xff] %v5398_v24  ;;  %v5404_v43 = vpop.eup %4030  ;;  %v2295_v38 = vmax.f32 %v2293_v8, %v2294_v10  ;;  %v2283_v11 = vmax.f32 %v5378_v30, %v5398_v24 }
 0x33f   :  { %6311 = vst [vmem:[#allocation81_spill] sm:$0xff] %v5404_v43  ;;  %v2284_v14 = vsel %vm471_vm0, %v5404_v43, -inf }
 0x340   :  { %v2298_v40 = vmax.f32 %v2295_v38, %v2297_v60  ;;  %v2285_v54 = vmax.f32 %v2283_v11, %v2284_v14 }
 0x342   :  { %2299 = vmax.xlane.f32.xlu0 %v2298_v40 }
 0x346   :  { %2286 = vmax.xlane.f32.xlu0 %v2285_v54 }
 0x37e   :  { %v2117_v36 = vpop.xlane.xlu1 %2116 }
 0x37f   :  { %v2304_v37 = vsub.f32 %v4941_v33, %v2117_v36  ;;  %v2305_v16 = vsub.f32 %v4944_v20, %v2117_v36  ;;  %v2306_v0 = vsub.f32 %v5034_v17, %v2117_v36  ;;  %v2112_v42 = vpop.xlane.xlu0 %2111 }
 0x380   :  { %v2301_v8 = vsub.f32 %v4929_v32, %v2112_v42  ;;  %v2302_v10 = vsub.f32 %v4932_v21, %v2112_v42  ;;  %v2303_v60 = vsub.f32 %v5041_v44, %v2112_v42 }
 0x381   :  { %v2421_v38 = vmul.f32 1.442695, %v2304_v37  ;;  %v2423_v24 = vmul.f32 1.442695, %v2305_v16  ;;  %v2425_v43 = vmul.f32 1.442695, %v2306_v0 }
 0x382   :  { %v2415_v40 = vmul.f32 1.442695, %v2301_v8  ;;  %v2417_v54 = vmul.f32 1.442695, %v2302_v10  ;;  %v2419_v11 = vmul.f32 1.442695, %v2303_v60 }
 0x383   :  { %4032 = vpow2.f32 %v2421_v38  ;;  %v2122_v14 = vpop.xlane.xlu1 %2121  ;;  %v2127_v33 = vpop.xlane.xlu0 %2126  ;;  %v6313_v60 = vld [vmem:[#allocation27_spill] sm:$0xff] }
 0x384   :  { %4034 = vpow2.f32 %v2423_v24  ;;  %v2307_v20 = vsub.f32 %v4953_v46, %v2122_v14  ;;  %v2308_v17 = vsub.f32 %v4956_v48, %v2122_v14  ;;  %v2309_v32 = vsub.f32 %v5061_v13, %v2122_v14 }
 0x385   :  { %4036 = vpow2.f32 %v2425_v43  ;;  %v2310_v21 = vsub.f32 %v4965_v57, %v2127_v33  ;;  %v2311_v44 = vsub.f32 %v4968_v58, %v2127_v33  ;;  %v2312_v0 = vsub.f32 %v5054_v61, %v2127_v33  ;;  %v6312_v43 = vld [vmem:[#allocation26_spill] sm:$0xff] }
 0x386   :  { %4038 = vpow2.f32 %v2415_v40  ;;  %v2427_v42 = vmul.f32 1.442695, %v2307_v20  ;;  %v2429_v37 = vmul.f32 1.442695, %v2308_v17  ;;  %v2431_v16 = vmul.f32 1.442695, %v2309_v32 }
 0x387   :  { %4040 = vpow2.f32 %v2417_v54  ;;  %v2433_v36 = vmul.f32 1.442695, %v2310_v21  ;;  %v2132_v24 = vpop.xlane.xlu1 %2131  ;;  %v2137_v8 = vpop.xlane.xlu0 %2136  ;;  %v2435_v57 = vmul.f32 1.442695, %v2311_v44  ;;  %v2437_v58 = vmul.f32 1.442695, %v2312_v0 }
 0x388   :  { %4042 = vpow2.f32 %v2419_v11  ;;  %v2313_v46 = vsub.f32 %v4977_v2, %v2132_v24  ;;  %v2314_v48 = vsub.f32 %v4980_v4, %v2132_v24  ;;  %v2315_v13 = vsub.f32 %v5081_v9, %v2132_v24  ;;  %v6314_v40 = vld [vmem:[#allocation40_spill] sm:$0xff]  ;;  %v6315_v20 = vld [vmem:[#allocation30_spill] sm:$0xff]  ;;  %v6316_v21 = vld [vmem:[#allocation17_spill] sm:$0xff] }
 0x389   :  { %4044 = vpow2.f32 %v2427_v42  ;;  %v2316_v10 = vsub.f32 %v6312_v43, %v2137_v8  ;;  %v2317_v38 = vsub.f32 %v6313_v60, %v2137_v8  ;;  %v2318_v54 = vsub.f32 %v6314_v40, %v2137_v8  ;;  %v6318_v0 = vld [vmem:[#allocation18_spill] sm:$0xff] }
 0x38a   :  { %4046 = vpow2.f32 %v2429_v37  ;;  %v2439_v61 = vmul.f32 1.442695, %v2313_v46  ;;  %v2441_v2 = vmul.f32 1.442695, %v2314_v48  ;;  %v2443_v33 = vmul.f32 1.442695, %v2315_v13 }
 0x38b   :  { %4048 = vpow2.f32 %v2431_v16  ;;  %v2142_v14 = vpop.xlane.xlu1 %2141  ;;  %v2147_v11 = vpop.xlane.xlu0 %2146  ;;  %v2445_v37 = vmul.f32 1.442695, %v2316_v10  ;;  %v2449_v13 = vmul.f32 1.442695, %v2318_v54 }
 0x38c   :  { %4050 = vpow2.f32 %v2433_v36  ;;  %v2319_v4 = vsub.f32 %v5001_v19, %v2142_v14  ;;  %v2320_v17 = vsub.f32 %v6315_v20, %v2142_v14  ;;  %v2321_v32 = vsub.f32 %v5101_v3, %v2142_v14  ;;  %v6319_v36 = vld [vmem:[#allocation42_spill] sm:$0xff]  ;;  %v6326_v20 = vld [vmem:[#allocation20_spill] sm:$0xff] }
 0x38d   :  { %v5429_v9 = vpop.eup %4032  ;;  %4052 = vpow2.f32 %v2435_v57  ;;  %v2322_v44 = vsub.f32 %v6316_v21, %v2147_v11  ;;  %v2323_v16 = vsub.f32 %v6318_v0, %v2147_v11  ;;  %v2324_v24 = vsub.f32 %v6319_v36, %v2147_v11 }
 0x38e   :  { %v5434_v42 = vpop.eup %4034  ;;  %4054 = vpow2.f32 %v2437_v58  ;;  %v2447_v19 = vmul.f32 1.442695, %v2317_v38  ;;  %v2451_v3 = vmul.f32 1.442695, %v2319_v4  ;;  %v2453_v58 = vmul.f32 1.442695, %v2320_v17 }
 0x38f   :  { %6317 = vst [vmem:[#allocation26_spill] sm:$0xff] %v5434_v42  ;;  %v5438_v8 = vpop.eup %4036  ;;  %4056 = vpow2.f32 %v2439_v61  ;;  %v2152_v46 = vpop.xlane.xlu1 %2151  ;;  %v2455_v10 = vmul.f32 1.442695, %v2321_v32  ;;  %v2457_v60 = vmul.f32 1.442695, %v2322_v44  ;;  %v6328_v32 = vld [vmem:[#allocation21_spill] sm:$0xff] }
 0x390   :  { %6320 = vst [vmem:[#allocation27_spill] sm:$0xff] %v5438_v8  ;;  %v5440_v48 = vpop.eup %4038  ;;  %4058 = vpow2.f32 %v2441_v2  ;;  %v2157_v57 = vpop.xlane.xlu0 %2156  ;;  %v2459_v14 = vmul.f32 1.442695, %v2323_v16  ;;  %v2461_v11 = vmul.f32 1.442695, %v2324_v24  ;;  %v2325_v61 = vsub.f32 %v4935_v23, %v2152_v46  ;;  %v6325_v2 = vld [vmem:[#allocation19_spill] sm:$0xff] }
 0x391   :  { %6321 = vst [vmem:[#allocation40_spill] sm:$0xff] %v5440_v48  ;;  %v5442_v43 = vpop.eup %4040  ;;  %4060 = vpow2.f32 %v2443_v33  ;;  %v2326_v54 = vsub.f32 %v6325_v2, %v2152_v46  ;;  %v2327_v4 = vsub.f32 %v5121_v1, %v2152_v46  ;;  %v2328_v21 = vsub.f32 %v6326_v20, %v2157_v57  ;;  %v6330_v16 = vld [vmem:[#allocation45_spill] sm:$0xff] }
 0x392   :  { %6322 = vst [vmem:[#allocation30_spill] sm:$0xff] %v5442_v43  ;;  %v5444_v40 = vpop.eup %4042  ;;  %4062 = vpow2.f32 %v2445_v37  ;;  %v2329_v44 = vsub.f32 %v6328_v32, %v2157_v57  ;;  %v2648_v37 = vadd.f32 %v5434_v42, %v5429_v9  ;;  %v2649_v23 = vsel %vm471_vm0, %v5438_v8, 0.0 }
 0x393   :  { %6323 = vst [vmem:[#allocation17_spill] sm:$0xff] %v5444_v40  ;;  %v5447_v38 = vpop.eup %4044  ;;  %4064 = vpow2.f32 %v2447_v19  ;;  %v2162_v33 = vpop.xlane.xlu1 %2161  ;;  %v2330_v36 = vsub.f32 %v6330_v16, %v2157_v57  ;;  %v2643_v24 = vadd.f32 %v5442_v43, %v5440_v48  ;;  %v2644_v20 = vsel %vm471_vm0, %v5444_v40, 0.0 }
 0x394   :  { %6324 = vst [vmem:[#allocation18_spill] sm:$0xff] %v5447_v38  ;;  %v5452_v17 = vpop.eup %4046  ;;  %4066 = vpow2.f32 %v2449_v13  ;;  %v2331_v1 = vsub.f32 %v4959_v52, %v2162_v33  ;;  %v2650_v46 = vadd.f32 %v2649_v23, %v2648_v37  ;;  %v6331_v13 = vld [vmem:[#allocation22_spill] sm:$0xff]  ;;  %v2167_v57 = vpop.xlane.xlu0 %2166  ;;  %v2465_v52 = vmul.f32 1.442695, %v2326_v54 }
 0x395   :  { %6327 = vst [vmem:[#allocation42_spill] sm:$0xff] %v5452_v17  ;;  %v5459_v0 = vpop.eup %4048  ;;  %4068 = vpow2.f32 %v2451_v3  ;;  %v2332_v2 = vsub.f32 %v6331_v13, %v2162_v33  ;;  %v2463_v3 = vmul.f32 1.442695, %v2325_v61  ;;  %v2645_v8 = vadd.f32 %v2644_v20, %v2643_v24  ;;  %v6334_v20 = vld [vmem:[#allocation23_spill] sm:$0xff] }
 0x396   :  { %6329 = vst [vmem:[#allocation19_spill] sm:$0xff] %v5459_v0  ;;  %v5465_v19 = vpop.eup %4050  ;;  %4070 = vpow2.f32 %v2453_v58  ;;  %v2467_v43 = vmul.f32 1.442695, %v2327_v4  ;;  %v2469_v48 = vmul.f32 1.442695, %v2328_v21  ;;  %2651 = vadd.xlane.f32.xlu1 %v2650_v46  ;;  %v2333_v40 = vsub.f32 %v5141_v31, %v2162_v33  ;;  %v6335_v4 = vld [vmem:[#allocation24_spill] sm:$0xff] }
 0x397   :  { %v5470_v32 = vpop.eup %4052  ;;  %4072 = vpow2.f32 %v2455_v10  ;;  %v2172_v58 = vpop.xlane.xlu1 %2171  ;;  %v2471_v23 = vmul.f32 1.442695, %v2329_v44  ;;  %v2473_v13 = vmul.f32 1.442695, %v2330_v36  ;;  %2646 = vadd.xlane.f32.xlu0 %v2645_v8  ;;  %v2475_v61 = vmul.f32 1.442695, %v2331_v1 }
 0x398   :  { %6332 = vst [vmem:[#allocation20_spill] sm:$0xff] %v5470_v32  ;;  %v5472_v16 = vpop.eup %4054  ;;  %4074 = vpow2.f32 %v2457_v60  ;;  %v2477_v24 = vmul.f32 1.442695, %v2332_v2  ;;  %v2334_v60 = vsub.f32 %v6334_v20, %v2167_v57  ;;  %v2335_v21 = vsub.f32 %v6335_v4, %v2167_v57  ;;  %v6336_v46 = vld [vmem:[#allocation47_spill] sm:$0xff]  ;;  %v6338_v1 = vld [vmem:[#allocation25_spill] sm:$0xff] }
 0x399   :  { %6333 = vst [vmem:[#allocation21_spill] sm:$0xff] %v5472_v16  ;;  %v5474_v37 = vpop.eup %4056  ;;  %4076 = vpow2.f32 %v2459_v14  ;;  %v2336_v42 = vsub.f32 %v6336_v46, %v2167_v57  ;;  %v2337_v14 = vsub.f32 %v4983_v6, %v2172_v58  ;;  %v2653_v31 = vadd.f32 %v5452_v17, %v5447_v38 }
 0x39a   :  { %v5477_v10 = vpop.eup %4058  ;;  %4078 = vpow2.f32 %v2461_v11  ;;  %v2654_v8 = vsel %vm471_vm0, %v5459_v0, 0.0  ;;  %v2658_v11 = vadd.f32 %v5470_v32, %v5465_v19  ;;  %v2479_v36 = vmul.f32 1.442695, %v2333_v40  ;;  %v6342_v32 = vld [vmem:[#allocation29_spill] sm:$0xff] }
 0x39b   :  { %v5480_v54 = vpop.eup %4060  ;;  %4080 = vpow2.f32 %v2463_v3  ;;  %v2338_v2 = vsub.f32 %v6338_v1, %v2172_v58  ;;  %v2659_v6 = vsel %vm471_vm0, %v5472_v16, 0.0  ;;  %v2177_v3 = vpop.xlane.xlu0 %2176  ;;  %v2655_v20 = vadd.f32 %v2654_v8, %v2653_v31  ;;  %v6341_v16 = vld [vmem:[#allocation28_spill] sm:$0xff]  ;;  %v6344_v31 = vld [vmem:[#allocation50_spill] sm:$0xff] }
 0x39c   :  { %v5485_v44 = vpop.eup %4062  ;;  %4082 = vpow2.f32 %v2465_v52  ;;  %v2339_v52 = vsub.f32 %v5161_v59, %v2172_v58  ;;  %v2660_v4 = vadd.f32 %v2659_v6, %v2658_v11  ;;  %v5501_v46 = vpop.xlane.xlu1 %2181  ;;  %v2483_v40 = vmul.f32 1.442695, %v2335_v21 }
 0x39d   :  { %v5493_v33 = vpop.eup %4064  ;;  %4084 = vpow2.f32 %v2467_v43  ;;  %v2481_v43 = vmul.f32 1.442695, %v2334_v60  ;;  %v2485_v17 = vmul.f32 1.442695, %v2336_v42  ;;  %v2487_v38 = vmul.f32 1.442695, %v2337_v14  ;;  %2656 = vadd.xlane.f32.xlu0 %v2655_v20 }
 0x39e   :  { %6337 = vst [vmem:[#allocation45_spill] sm:$0xff] %v5493_v33  ;;  %v5498_v57 = vpop.eup %4066  ;;  %4086 = vpow2.f32 %v2469_v48  ;;  %2661 = vadd.xlane.f32.xlu1 %v2660_v4  ;;  %v2340_v48 = vsub.f32 %v6341_v16, %v2177_v3  ;;  %v2341_v59 = vsub.f32 %v6342_v32, %v2177_v3  ;;  %v2342_v8 = vsub.f32 %v6344_v31, %v2177_v3 }
 0x39f   :  { %v5503_v0 = vpop.eup %4068  ;;  %4088 = vpow2.f32 %v2471_v23  ;;  %v2663_v23 = vadd.f32 %v5477_v10, %v5474_v37  ;;  %v2664_v42 = vsel %vm471_vm0, %v5480_v54, 0.0  ;;  %v2343_v16 = vsub.f32 %v5010_v34, %v5501_v46  ;;  %v2187_v6 = vpop.xlane.xlu0 %2186 }
 0x3a0   :  { %6339 = vst [vmem:[#allocation22_spill] sm:$0xff] %v5503_v0  ;;  %v5505_v1 = vpop.eup %4070  ;;  %4090 = vpow2.f32 %v2473_v13  ;;  %v2489_v13 = vmul.f32 1.442695, %v2338_v2  ;;  %v2668_v32 = vadd.f32 %v5493_v33, %v5485_v44  ;;  %v2669_v11 = vsel %vm471_vm0, %v5498_v57, 0.0  ;;  %v2192_v4 = vpop.xlane.xlu1 %2191  ;;  %v6348_v33 = vld [vmem:[#allocation31_spill] sm:$0xff] }
 0x3a1   :  { %6340 = vst [vmem:[#allocation23_spill] sm:$0xff] %v5505_v1  ;;  %v5509_v58 = vpop.eup %4072  ;;  %4092 = vpow2.f32 %v2475_v61  ;;  %v2491_v61 = vmul.f32 1.442695, %v2339_v52  ;;  %v2665_v14 = vadd.f32 %v2664_v42, %v2663_v23  ;;  %v2495_v2 = vmul.f32 1.442695, %v2341_v59  ;;  %v6350_v59 = vld [vmem:[#allocation33_spill] sm:$0xff] }
 0x3a2   :  { %6343 = vst [vmem:[#allocation24_spill] sm:$0xff] %v5509_v58  ;;  %v5516_v60 = vpop.eup %4074  ;;  %4094 = vpow2.f32 %v2477_v24  ;;  %v2493_v24 = vmul.f32 1.442695, %v2340_v48  ;;  %v2670_v20 = vadd.f32 %v2669_v11, %v2668_v32  ;;  %v2497_v31 = vmul.f32 1.442695, %v2342_v8 }
 0x3a3   :  { %6345 = vst [vmem:[#allocation47_spill] sm:$0xff] %v5516_v60  ;;  %v5522_v21 = vpop.eup %4076  ;;  %4096 = vpow2.f32 %v2479_v36  ;;  %v2344_v36 = vsub.f32 %v6348_v33, %v5501_v46  ;;  %v2345_v52 = vsub.f32 %v5181_v5, %v5501_v46  ;;  %2666 = vadd.xlane.f32.xlu0 %v2665_v14  ;;  %v2499_v42 = vmul.f32 1.442695, %v2343_v16 }
 0x3a4   :  { %6346 = vst [vmem:[#allocation25_spill] sm:$0xff] %v5522_v21  ;;  %v5526_v3 = vpop.eup %4078  ;;  %4098 = vpow2.f32 %v2481_v43  ;;  %2671 = vadd.xlane.f32.xlu1 %v2670_v20  ;;  %v6349_v43 = vld [vmem:[#allocation32_spill] sm:$0xff]  ;;  %v2347_v32 = vsub.f32 %v6350_v59, %v2187_v6  ;;  %v2349_v33 = vsub.f32 %v5022_v51, %v2192_v4  ;;  %v2673_v5 = vadd.f32 %v5505_v1, %v5503_v0  ;;  %v2197_v59 = vpop.xlane.xlu0 %2196 }
 0x3a5   :  { %6347 = vst [vmem:[#allocation28_spill] sm:$0xff] %v5526_v3  ;;  %v5528_v34 = vpop.eup %4080  ;;  %4100 = vpow2.f32 %v2483_v40  ;;  %v2346_v48 = vsub.f32 %v6349_v43, %v2187_v6  ;;  %v6352_v40 = vld [vmem:[#allocation52_spill] sm:$0xff]  ;;  %v2674_v14 = vsel %vm471_vm0, %v5509_v58, 0.0  ;;  %v2678_v20 = vadd.f32 %v5522_v21, %v5516_v60  ;;  %v5557_v0 = vpop.xlane.xlu1 %2201 }
 0x3a6   :  { %v5534_v23 = vpop.eup %4082  ;;  %4102 = vpow2.f32 %v2485_v17  ;;  %v2348_v8 = vsub.f32 %v6352_v40, %v2187_v6  ;;  %v6353_v17 = vld [vmem:[#allocation34_spill] sm:$0xff]  ;;  %v2675_v6 = vadd.f32 %v2674_v14, %v2673_v5  ;;  %v2679_v51 = vsel %vm471_vm0, %v5526_v3, 0.0  ;;  %v6360_v3 = vld [vmem:[#allocation55_spill] sm:$0xff] }
 0x3a7   :  { %v5538_v11 = vpop.eup %4084  ;;  %4104 = vpow2.f32 %v2487_v38  ;;  %v2350_v16 = vsub.f32 %v6353_v17, %v2192_v4  ;;  %v2501_v38 = vmul.f32 1.442695, %v2344_v36  ;;  %v2505_v17 = vmul.f32 1.442695, %v2346_v48 }
 0x3a8   :  { %6351 = vst [vmem:[#allocation29_spill] sm:$0xff] %v5538_v11  ;;  %v5544_v46 = vpop.eup %4086  ;;  %4106 = vpow2.f32 %v2489_v13  ;;  %v2503_v13 = vmul.f32 1.442695, %v2345_v52  ;;  %v2680_v1 = vadd.f32 %v2679_v51, %v2678_v20  ;;  %v2507_v21 = vmul.f32 1.442695, %v2347_v32  ;;  %2676 = vadd.xlane.f32.xlu0 %v2675_v6  ;;  %v6359_v20 = vld [vmem:[#allocation36_spill] sm:$0xff] }
 0x3a9   :  { %v5551_v43 = vpop.eup %4088  ;;  %4108 = vpow2.f32 %v2491_v61  ;;  %v2509_v60 = vmul.f32 1.442695, %v2348_v8  ;;  %v2351_v61 = vsub.f32 %v5201_v62, %v2192_v4  ;;  %v2511_v5 = vmul.f32 1.442695, %v2349_v33 }
 0x3aa   :  { %6354 = vst [vmem:[#allocation50_spill] sm:$0xff] %v5551_v43  ;;  %v5555_v40 = vpop.eup %4090  ;;  %4110 = vpow2.f32 %v2493_v24  ;;  %v2513_v14 = vmul.f32 1.442695, %v2350_v16  ;;  %2681 = vadd.xlane.f32.xlu1 %v2680_v1  ;;  %v6357_v24 = vld [vmem:[#allocation35_spill] sm:$0xff]  ;;  %v2353_v51 = vsub.f32 %v6359_v20, %v2197_v59  ;;  %v2683_v32 = vadd.f32 %v5534_v23, %v5528_v34  ;;  %v2207_v16 = vpop.xlane.xlu0 %2206 }
 0x3ab   :  { %6355 = vst [vmem:[#allocation31_spill] sm:$0xff] %v5555_v40  ;;  %v5559_v58 = vpop.eup %4092  ;;  %4112 = vpow2.f32 %v2495_v2  ;;  %v2352_v52 = vsub.f32 %v6357_v24, %v2197_v59  ;;  %v2354_v2 = vsub.f32 %v6360_v3, %v2197_v59  ;;  %v2355_v4 = vsub.f32 %v5047_v39, %v5557_v0  ;;  %v6364_v39 = vld [vmem:[#allocation37_spill] sm:$0xff]  ;;  %v2212_v20 = vpop.xlane.xlu1 %2211 }
 0x3ac   :  { %v5562_v36 = vpop.eup %4094  ;;  %4114 = vpow2.f32 %v2497_v31  ;;  %v2684_v1 = vsel %vm471_vm0, %v5538_v11, 0.0  ;;  %v2688_v31 = vadd.f32 %v5551_v43, %v5544_v46  ;;  %v2515_v8 = vmul.f32 1.442695, %v2351_v61 }
 0x3ad   :  { %6356 = vst [vmem:[#allocation32_spill] sm:$0xff] %v5562_v36  ;;  %v5565_v48 = vpop.eup %4096  ;;  %4116 = vpow2.f32 %v2499_v42  ;;  %v2685_v3 = vadd.f32 %v2684_v1, %v2683_v32  ;;  %v2689_v33 = vsel %vm471_vm0, %v5555_v40, 0.0  ;;  %v2356_v59 = vsub.f32 %v6364_v39, %v5557_v0  ;;  %v6366_v40 = vld [vmem:[#allocation39_spill] sm:$0xff] }
 0x3ae   :  { %6358 = vst [vmem:[#allocation33_spill] sm:$0xff] %v5565_v48  ;;  %v5571_v62 = vpop.eup %4098  ;;  %4118 = vpow2.f32 %v2501_v38  ;;  %v2517_v38 = vmul.f32 1.442695, %v2352_v52  ;;  %v2690_v24 = vadd.f32 %v2689_v33, %v2688_v31  ;;  %v2519_v43 = vmul.f32 1.442695, %v2353_v51  ;;  %v6368_v33 = vld [vmem:[#allocation57_spill] sm:$0xff] }
 0x3af   :  { %6361 = vst [vmem:[#allocation52_spill] sm:$0xff] %v5571_v62  ;;  %v5579_v42 = vpop.eup %4100  ;;  %4120 = vpow2.f32 %v2503_v13  ;;  %v2521_v13 = vmul.f32 1.442695, %v2354_v2  ;;  %v2357_v61 = vsub.f32 %v5221_v49, %v5557_v0  ;;  %2686 = vadd.xlane.f32.xlu0 %v2685_v3  ;;  %v2523_v1 = vmul.f32 1.442695, %v2355_v4 }
 0x3b0   :  { %6362 = vst [vmem:[#allocation34_spill] sm:$0xff] %v5579_v42  ;;  %v5583_v6 = vpop.eup %4102  ;;  %4122 = vpow2.f32 %v2505_v17  ;;  %2691 = vadd.xlane.f32.xlu1 %v2690_v24  ;;  %v6365_v17 = vld [vmem:[#allocation38_spill] sm:$0xff]  ;;  %v2359_v39 = vsub.f32 %v6366_v40, %v2207_v16  ;;  %v2361_v51 = vsub.f32 %v5087_v27, %v2212_v20  ;;  %v2693_v49 = vadd.f32 %v5562_v36, %v5559_v58  ;;  %v2217_v24 = vpop.xlane.xlu0 %2216 }
 0x3b1   :  { %6363 = vst [vmem:[#allocation35_spill] sm:$0xff] %v5583_v6  ;;  %v5587_v11 = vpop.eup %4104  ;;  %4124 = vpow2.f32 %v2507_v21  ;;  %v2358_v52 = vsub.f32 %v6365_v17, %v2207_v16  ;;  %v2360_v21 = vsub.f32 %v6368_v33, %v2207_v16  ;;  %v2694_v4 = vsel %vm471_vm0, %v5565_v48, 0.0  ;;  %v5614_v36 = vpop.xlane.xlu1 %2221 }
 0x3b2   :  { %v5591_v32 = vpop.eup %4106  ;;  %4126 = vpow2.f32 %v2509_v60  ;;  %v6369_v60 = vld [vmem:[#allocation41_spill] sm:$0xff]  ;;  %v2698_v40 = vadd.f32 %v5579_v42, %v5571_v62  ;;  %v2695_v16 = vadd.f32 %v2694_v4, %v2693_v49  ;;  %v2699_v27 = vsel %vm471_vm0, %v5583_v6, 0.0  ;;  %v6376_v6 = vld [vmem:[#allocation60_spill] sm:$0xff] }
 0x3b3   :  { %v5595_v31 = vpop.eup %4108  ;;  %4128 = vpow2.f32 %v2511_v5  ;;  %v2362_v2 = vsub.f32 %v6369_v60, %v2212_v20  ;;  %v2525_v5 = vmul.f32 1.442695, %v2356_v59  ;;  %v2529_v33 = vmul.f32 1.442695, %v2358_v52 }
 0x3b4   :  { %6367 = vst [vmem:[#allocation36_spill] sm:$0xff] %v5595_v31  ;;  %v5601_v0 = vpop.eup %4110  ;;  %4130 = vpow2.f32 %v2513_v14  ;;  %v2527_v14 = vmul.f32 1.442695, %v2357_v61  ;;  %v2700_v60 = vadd.f32 %v2699_v27, %v2698_v40  ;;  %v2531_v42 = vmul.f32 1.442695, %v2359_v39  ;;  %2696 = vadd.xlane.f32.xlu0 %v2695_v16  ;;  %v6375_v40 = vld [vmem:[#allocation44_spill] sm:$0xff]  ;;  %v2227_v16 = vpop.xlane.xlu0 %2226 }
 0x3b5   :  { %v5608_v3 = vpop.eup %4112  ;;  %4132 = vpow2.f32 %v2515_v8  ;;  %v2533_v62 = vmul.f32 1.442695, %v2360_v21  ;;  %v2363_v8 = vsub.f32 %v5241_v35, %v2212_v20  ;;  %v2535_v49 = vmul.f32 1.442695, %v2361_v51 }
 0x3b6   :  { %6370 = vst [vmem:[#allocation55_spill] sm:$0xff] %v5608_v3  ;;  %v5612_v17 = vpop.eup %4114  ;;  %4134 = vpow2.f32 %v2517_v38  ;;  %v2537_v4 = vmul.f32 1.442695, %v2362_v2  ;;  %2701 = vadd.xlane.f32.xlu1 %v2700_v60  ;;  %v6373_v38 = vld [vmem:[#allocation43_spill] sm:$0xff]  ;;  %v2365_v27 = vsub.f32 %v6375_v40, %v2217_v24  ;;  %v2703_v39 = vadd.f32 %v5591_v32, %v5587_v11  ;;  %v2232_v40 = vpop.xlane.xlu1 %2231 }
 0x3b7   :  { %6371 = vst [vmem:[#allocation37_spill] sm:$0xff] %v5612_v17  ;;  %v5616_v48 = vpop.eup %4116  ;;  %4136 = vpow2.f32 %v2519_v43  ;;  %v2364_v61 = vsub.f32 %v6373_v38, %v2217_v24  ;;  %v2366_v43 = vsub.f32 %v6376_v6, %v2217_v24  ;;  %v2367_v20 = vsub.f32 %v5127_v45, %v5614_v36  ;;  %v6380_v45 = vld [vmem:[#allocation46_spill] sm:$0xff] }
 0x3b8   :  { %v5619_v59 = vpop.eup %4118  ;;  %4138 = vpow2.f32 %v2521_v13  ;;  %v2704_v13 = vsel %vm471_vm0, %v5595_v31, 0.0  ;;  %v2708_v21 = vadd.f32 %v5608_v3, %v5601_v0  ;;  %v2539_v51 = vmul.f32 1.442695, %v2363_v8 }
 0x3b9   :  { %6372 = vst [vmem:[#allocation38_spill] sm:$0xff] %v5619_v59  ;;  %v5622_v52 = vpop.eup %4120  ;;  %4140 = vpow2.f32 %v2523_v1  ;;  %v2705_v6 = vadd.f32 %v2704_v13, %v2703_v39  ;;  %v2709_v2 = vsel %vm471_vm0, %v5612_v17, 0.0  ;;  %v2368_v60 = vsub.f32 %v6380_v45, %v5614_v36  ;;  %v6382_v17 = vld [vmem:[#allocation49_spill] sm:$0xff] }
 0x3ba   :  { %6374 = vst [vmem:[#allocation39_spill] sm:$0xff] %v5622_v52  ;;  %v5628_v35 = vpop.eup %4122  ;;  %4142 = vpow2.f32 %v2525_v5  ;;  %v2541_v5 = vmul.f32 1.442695, %v2364_v61  ;;  %v2710_v38 = vadd.f32 %v2709_v2, %v2708_v21  ;;  %v2543_v3 = vmul.f32 1.442695, %v2365_v27  ;;  %v6384_v2 = vld [vmem:[#allocation62_spill] sm:$0xff] }
 0x3bb   :  { %6377 = vst [vmem:[#allocation57_spill] sm:$0xff] %v5628_v35  ;;  %v5636_v1 = vpop.eup %4124  ;;  %4144 = vpow2.f32 %v2527_v14  ;;  %v2545_v14 = vmul.f32 1.442695, %v2366_v43  ;;  %v2369_v8 = vsub.f32 %v5261_v15, %v5614_v36  ;;  %2706 = vadd.xlane.f32.xlu0 %v2705_v6  ;;  %v2547_v13 = vmul.f32 1.442695, %v2367_v20 }
 0x3bc   :  { %6378 = vst [vmem:[#allocation41_spill] sm:$0xff] %v5636_v1  ;;  %v5640_v24 = vpop.eup %4126  ;;  %4146 = vpow2.f32 %v2529_v33  ;;  %2711 = vadd.xlane.f32.xlu1 %v2710_v38  ;;  %v6381_v33 = vld [vmem:[#allocation48_spill] sm:$0xff]  ;;  %v2371_v45 = vsub.f32 %v6382_v17, %v2227_v16  ;;  %v2373_v27 = vsub.f32 %v5167_v41, %v2232_v40  ;;  %v2713_v15 = vadd.f32 %v5619_v59, %v5616_v48  ;;  %v2237_v38 = vpop.xlane.xlu0 %2236 }
 0x3bd   :  { %6379 = vst [vmem:[#allocation43_spill] sm:$0xff] %v5640_v24  ;;  %v5644_v31 = vpop.eup %4128  ;;  %4148 = vpow2.f32 %v2531_v42  ;;  %v2370_v61 = vsub.f32 %v6381_v33, %v2227_v16  ;;  %v2372_v42 = vsub.f32 %v6384_v2, %v2227_v16  ;;  %v2714_v20 = vsel %vm471_vm0, %v5622_v52, 0.0  ;;  %v5671_v59 = vpop.xlane.xlu1 %2241 }
 0x3be   :  { %v5648_v39 = vpop.eup %4130  ;;  %4150 = vpow2.f32 %v2533_v62  ;;  %v6386_v62 = vld [vmem:[#allocation51_spill] sm:$0xff]  ;;  %v2718_v17 = vadd.f32 %v5636_v1, %v5628_v35  ;;  %v2715_v16 = vadd.f32 %v2714_v20, %v2713_v15  ;;  %v2719_v41 = vsel %vm471_vm0, %v5640_v24, 0.0  ;;  %v6393_v24 = vld [vmem:[#allocation65_spill] sm:$0xff] }
 0x3bf   :  { %v5652_v21 = vpop.eup %4132  ;;  %4152 = vpow2.f32 %v2535_v49  ;;  %v2374_v43 = vsub.f32 %v6386_v62, %v2232_v40  ;;  %v2549_v49 = vmul.f32 1.442695, %v2368_v60  ;;  %v2553_v2 = vmul.f32 1.442695, %v2370_v61 }
 0x3c0   :  { %6383 = vst [vmem:[#allocation44_spill] sm:$0xff] %v5652_v21  ;;  %v5658_v36 = vpop.eup %4134  ;;  %4154 = vpow2.f32 %v2537_v4  ;;  %v2551_v4 = vmul.f32 1.442695, %v2369_v8  ;;  %v2720_v62 = vadd.f32 %v2719_v41, %v2718_v17  ;;  %v2555_v1 = vmul.f32 1.442695, %v2371_v45  ;;  %2716 = vadd.xlane.f32.xlu0 %v2715_v16  ;;  %v6392_v17 = vld [vmem:[#allocation54_spill] sm:$0xff]  ;;  %v2247_v16 = vpop.xlane.xlu0 %2246 }
 0x3c1   :  { %6385 = vst [vmem:[#allocation60_spill] sm:$0xff] %v5658_v36  ;;  %v5665_v6 = vpop.eup %4136  ;;  %4156 = vpow2.f32 %v2539_v51  ;;  %v2557_v35 = vmul.f32 1.442695, %v2372_v42  ;;  %v2375_v51 = vsub.f32 %v5281_v53, %v2232_v40  ;;  %v2559_v15 = vmul.f32 1.442695, %v2373_v27 }
 0x3c2   :  { %6387 = vst [vmem:[#allocation46_spill] sm:$0xff] %v5665_v6  ;;  %v5669_v33 = vpop.eup %4138  ;;  %4158 = vpow2.f32 %v2541_v5  ;;  %v2561_v20 = vmul.f32 1.442695, %v2374_v43  ;;  %2721 = vadd.xlane.f32.xlu1 %v2720_v62  ;;  %v6390_v5 = vld [vmem:[#allocation53_spill] sm:$0xff]  ;;  %v2377_v41 = vsub.f32 %v6392_v17, %v2237_v38  ;;  %v2723_v45 = vadd.f32 %v5648_v39, %v5644_v31  ;;  %v2252_v17 = vpop.xlane.xlu1 %2251 }
 0x3c3   :  { %6388 = vst [vmem:[#allocation48_spill] sm:$0xff] %v5669_v33  ;;  %v5673_v52 = vpop.eup %4140  ;;  %4160 = vpow2.f32 %v2543_v3  ;;  %v2376_v8 = vsub.f32 %v6390_v5, %v2237_v38  ;;  %v2378_v3 = vsub.f32 %v6393_v24, %v2237_v38  ;;  %v2379_v40 = vsub.f32 %v5207_v25, %v5671_v59  ;;  %v6397_v25 = vld [vmem:[#allocation56_spill] sm:$0xff] }
 0x3c4   :  { %v5676_v60 = vpop.eup %4142  ;;  %4162 = vpow2.f32 %v2545_v14  ;;  %v2724_v14 = vsel %vm471_vm0, %v5652_v21, 0.0  ;;  %v2728_v42 = vadd.f32 %v5665_v6, %v5658_v36  ;;  %v2563_v27 = vmul.f32 1.442695, %v2375_v51  ;;  %v6398_v51 = vld [vmem:[#allocation69_spill] sm:$0xff]  ;;  %v6400_v36 = vld [vmem:[#allocation59_spill] sm:$0xff] }
 0x3c5   :  { %6389 = vst [vmem:[#allocation49_spill] sm:$0xff] %v5676_v60  ;;  %v5679_v61 = vpop.eup %4144  ;;  %4164 = vpow2.f32 %v2547_v13  ;;  %v2725_v24 = vadd.f32 %v2724_v14, %v2723_v45  ;;  %v2729_v43 = vsel %vm471_vm0, %v5669_v33, 0.0  ;;  %v2380_v62 = vsub.f32 %v6397_v25, %v5671_v59 }
 0x3c6   :  { %6391 = vst [vmem:[#allocation62_spill] sm:$0xff] %v5679_v61  ;;  %v5685_v53 = vpop.eup %4146  ;;  %4166 = vpow2.f32 %v2549_v49  ;;  %v2565_v49 = vmul.f32 1.442695, %v2376_v8  ;;  %v2730_v5 = vadd.f32 %v2729_v43, %v2728_v42  ;;  %v2567_v6 = vmul.f32 1.442695, %v2377_v41  ;;  %v6401_v43 = vld [vmem:[#allocation68_spill] sm:$0xff] }
 0x3c7   :  { %6394 = vst [vmem:[#allocation51_spill] sm:$0xff] %v5685_v53  ;;  %v5693_v13 = vpop.eup %4148  ;;  %4168 = vpow2.f32 %v2551_v4  ;;  %v2569_v4 = vmul.f32 1.442695, %v2378_v3  ;;  %v2381_v45 = vsub.f32 %v6398_v51, %v5671_v59  ;;  %2726 = vadd.xlane.f32.xlu0 %v2725_v24  ;;  %v2571_v33 = vmul.f32 1.442695, %v2379_v40  ;;  %v2257_v51 = vpop.xlane.xlu0 %2256 }
 0x3c8   :  { %6395 = vst [vmem:[#allocation53_spill] sm:$0xff] %v5693_v13  ;;  %v5697_v38 = vpop.eup %4150  ;;  %4170 = vpow2.f32 %v2553_v2  ;;  %2731 = vadd.xlane.f32.xlu1 %v2730_v5  ;;  %v6399_v2 = vld [vmem:[#allocation58_spill] sm:$0xff]  ;;  %v2383_v25 = vsub.f32 %v6400_v36, %v2247_v16  ;;  %v2385_v41 = vsub.f32 %v5247_v22, %v2252_v17  ;;  %v2733_v59 = vadd.f32 %v5676_v60, %v5673_v52 }
 0x3c9   :  { %6396 = vst [vmem:[#allocation54_spill] sm:$0xff] %v5697_v38  ;;  %v5701_v21 = vpop.eup %4152  ;;  %4172 = vpow2.f32 %v2555_v1  ;;  %v2382_v8 = vsub.f32 %v6399_v2, %v2247_v16  ;;  %v2384_v1 = vsub.f32 %v6401_v43, %v2247_v16  ;;  %v2734_v24 = vsel %vm471_vm0, %v5679_v61, 0.0 }
 0x3ca   :  { %v5705_v14 = vpop.eup %4154  ;;  %4174 = vpow2.f32 %v2557_v35  ;;  %v6403_v35 = vld [vmem:[#allocation61_spill] sm:$0xff]  ;;  %v2738_v36 = vadd.f32 %v5693_v13, %v5685_v53  ;;  %v2735_v22 = vadd.f32 %v2734_v24, %v2733_v59  ;;  %v2739_v16 = vsel %vm471_vm0, %v5697_v38, 0.0  ;;  %v6407_v24 = vld [vmem:[#allocation63_spill] sm:$0xff] }
 0x3cb   :  { %v5709_v42 = vpop.eup %4156  ;;  %4176 = vpow2.f32 %v2559_v15  ;;  %v2386_v40 = vsub.f32 %v6403_v35, %v2252_v17  ;;  %v2387_v15 = vsub.f32 %v5320_v7, %v2252_v17  ;;  %v2575_v43 = vmul.f32 1.442695, %v2381_v45  ;;  %v6409_v45 = vld [vmem:[#allocation64_spill] sm:$0xff] }
 0x3cc   :  { %v5715_v3 = vpop.eup %4158  ;;  %4178 = vpow2.f32 %v2561_v20  ;;  %v2573_v20 = vmul.f32 1.442695, %v2380_v62  ;;  %v2740_v35 = vadd.f32 %v2739_v16, %v2738_v36  ;;  %v2577_v13 = vmul.f32 1.442695, %v2382_v8  ;;  %2736 = vadd.xlane.f32.xlu0 %v2735_v22 }
 0x3cd   :  { %6402 = vst [vmem:[#allocation65_spill] sm:$0xff] %v5715_v3  ;;  %v5722_v5 = vpop.eup %4160  ;;  %4180 = vpow2.f32 %v2563_v27  ;;  %v2579_v53 = vmul.f32 1.442695, %v2383_v25  ;;  %v2581_v60 = vmul.f32 1.442695, %v2384_v1  ;;  %v2262_v27 = vpop.xlane.xlu1 %2261  ;;  %v2388_v38 = vsub.f32 %v6407_v24, %v2257_v51  ;;  %v6410_v25 = vld [vmem:[#allocation72_spill] sm:$0xff] }
 0x3ce   :  { %6404 = vst [vmem:[#allocation56_spill] sm:$0xff] %v5722_v5  ;;  %v5727_v2 = vpop.eup %4162  ;;  %4182 = vpow2.f32 %v2565_v49  ;;  %v2583_v17 = vmul.f32 1.442695, %v2385_v41  ;;  %v2585_v59 = vmul.f32 1.442695, %v2386_v40  ;;  %2741 = vadd.xlane.f32.xlu1 %v2740_v35  ;;  %v2389_v36 = vsub.f32 %v6409_v45, %v2257_v51 }
 0x3cf   :  { %v5729_v61 = vpop.eup %4164  ;;  %4184 = vpow2.f32 %v2567_v6  ;;  %v2587_v62 = vmul.f32 1.442695, %v2387_v15  ;;  %v2743_v6 = vadd.f32 %v5705_v14, %v5701_v21  ;;  %v2390_v1 = vsub.f32 %v6410_v25, %v2257_v51  ;;  %v6412_v51 = vld [vmem:[#allocation67_spill] sm:$0xff] }
 0x3d0   :  { %6405 = vst [vmem:[#allocation69_spill] sm:$0xff] %v5729_v61  ;;  %v5731_v7 = vpop.eup %4166  ;;  %4186 = vpow2.f32 %v2569_v4  ;;  %v2744_v4 = vsel %vm471_vm0, %v5709_v42, 0.0  ;;  %v2748_v41 = vadd.f32 %v5722_v5, %v5715_v3  ;;  %v2749_v16 = vsel %vm471_vm0, %v5727_v2, 0.0  ;;  %v2267_v3 = vpop.xlane.xlu0 %2266 }
 0x3d1   :  { %6406 = vst [vmem:[#allocation58_spill] sm:$0xff] %v5731_v7  ;;  %v5734_v49 = vpop.eup %4168  ;;  %4188 = vpow2.f32 %v2571_v33  ;;  %v6411_v33 = vld [vmem:[#allocation66_spill] sm:$0xff]  ;;  %v2745_v22 = vadd.f32 %v2744_v4, %v2743_v6  ;;  %v2392_v24 = vsub.f32 %v6412_v51, %v2262_v27  ;;  %v2591_v5 = vmul.f32 1.442695, %v2389_v36  ;;  %v5760_v4 = vpop.xlane.xlu1 %2271 }
 0x3d2   :  { %6408 = vst [vmem:[#allocation59_spill] sm:$0xff] %v5734_v49  ;;  %v5739_v8 = vpop.eup %4170  ;;  %4190 = vpow2.f32 %v2573_v20  ;;  %v2391_v15 = vsub.f32 %v6411_v33, %v2262_v27  ;;  %v2589_v20 = vmul.f32 1.442695, %v2388_v38  ;;  %v2750_v45 = vadd.f32 %v2749_v16, %v2748_v41  ;;  %v6413_v38 = vld [vmem:[#allocation74_spill] sm:$0xff] }
 0x3d3   :  { %v5746_v40 = vpop.eup %4172  ;;  %4192 = vpow2.f32 %v2575_v43  ;;  %2746 = vadd.xlane.f32.xlu0 %v2745_v22  ;;  %v2753_v43 = vadd.f32 %v5731_v7, %v5729_v61  ;;  %v2754_v6 = vsel %vm471_vm0, %v5734_v49, 0.0  ;;  %v2393_v41 = vsub.f32 %v6413_v38, %v2262_v27 }
 0x3d4   :  { %v5751_v35 = vpop.eup %4174  ;;  %4194 = vpow2.f32 %v2577_v13  ;;  %v2593_v13 = vmul.f32 1.442695, %v2390_v1  ;;  %2751 = vadd.xlane.f32.xlu1 %v2750_v45  ;;  %v2595_v22 = vmul.f32 1.442695, %v2391_v15  ;;  %v2597_v7 = vmul.f32 1.442695, %v2392_v24 }
 0x3d5   :  { %v5754_v25 = vpop.eup %4176  ;;  %4196 = vpow2.f32 %v2579_v53  ;;  %v2758_v53 = vadd.f32 %v5746_v40, %v5739_v8  ;;  %v2755_v16 = vadd.f32 %v2754_v6, %v2753_v43  ;;  %v2759_v51 = vsel %vm471_vm0, %v5751_v35, 0.0  ;;  %v6416_v45 = vld [vmem:[#allocation71_spill] sm:$0xff]  ;;  %v6417_v24 = vld [vmem:[#allocation73_spill] sm:$0xff] }
 0x3d6   :  { %v5762_v33 = vpop.eup %4178  ;;  %4198 = vpow2.f32 %v2581_v60  ;;  %v6415_v60 = vld [vmem:[#allocation70_spill] sm:$0xff]  ;;  %v2395_v38 = vsub.f32 %v6416_v45, %v2267_v3  ;;  %v2396_v6 = vsub.f32 %v6417_v24, %v2267_v3  ;;  %v2277_v45 = vpop.xlane.xlu0 %2276 }
 0x3d7   :  { %v5767_v36 = vpop.eup %4180  ;;  %4200 = vpow2.f32 %v2583_v17  ;;  %v2394_v1 = vsub.f32 %v6415_v60, %v2267_v3  ;;  %v2760_v61 = vadd.f32 %v2759_v51, %v2758_v53  ;;  %2756 = vadd.xlane.f32.xlu0 %v2755_v16  ;;  %v2763_v17 = vadd.f32 %v5762_v33, %v5754_v25 }
 0x3d8   :  { %6414 = vst [vmem:[#allocation68_spill] sm:$0xff] %v5767_v36  ;;  %v5771_v49 = vpop.eup %4182  ;;  %4202 = vpow2.f32 %v2585_v59  ;;  %v2764_v15 = vsel %vm471_vm0, %v5767_v36, 0.0  ;;  %v2599_v59 = vmul.f32 1.442695, %v2393_v41  ;;  %v2397_v16 = vsub.f32 %v5326_v50, %v5760_v4  ;;  %v5792_v36 = vpop.xlane.xlu1 %2281 }
 0x3d9   :  { %v5774_v27 = vpop.eup %4184  ;;  %4204 = vpow2.f32 %v2587_v62  ;;  %2761 = vadd.xlane.f32.xlu1 %v2760_v61  ;;  %v2765_v51 = vadd.f32 %v2764_v15, %v2763_v17  ;;  %v2601_v61 = vmul.f32 1.442695, %v2394_v1  ;;  %v2398_v3 = vsub.f32 %v5330_v26, %v5760_v4 }
 0x3da   :  { %v5781_v43 = vpop.eup %4186  ;;  %4206 = vpow2.f32 %v2589_v20  ;;  %v2768_v53 = vadd.f32 %v5774_v27, %v5771_v49  ;;  %v2399_v50 = vsub.f32 %v5358_v29, %v5760_v4  ;;  %v2400_v1 = vsub.f32 %v5344_v18, %v2277_v45 }
 0x3db   :  { %v5786_v62 = vpop.eup %4188  ;;  %4208 = vpow2.f32 %v2591_v5  ;;  %v2769_v60 = vsel %vm471_vm0, %v5781_v43, 0.0  ;;  %v2603_v5 = vmul.f32 1.442695, %v2395_v38  ;;  %2766 = vadd.xlane.f32.xlu0 %v2765_v51  ;;  %v2401_v29 = vsub.f32 %v5350_v55, %v2277_v45 }
 0x3dc   :  { %v5794_v20 = vpop.eup %4190  ;;  %4210 = vpow2.f32 %v2593_v13  ;;  %v2770_v41 = vadd.f32 %v2769_v60, %v2768_v53  ;;  %v2605_v13 = vmul.f32 1.442695, %v2396_v6  ;;  %v2609_v51 = vmul.f32 1.442695, %v2398_v3 }
 0x3dd   :  { %v5798_v24 = vpop.eup %4192  ;;  %4212 = vpow2.f32 %v2595_v22  ;;  %v2773_v17 = vadd.f32 %v5794_v20, %v5786_v62  ;;  %v2607_v22 = vmul.f32 1.442695, %v2397_v16  ;;  %v2611_v60 = vmul.f32 1.442695, %v2399_v50  ;;  %v2292_v16 = vpop.xlane.xlu1 %2291 }
 0x3de   :  { %v5804_v15 = vpop.eup %4194  ;;  %4214 = vpow2.f32 %v2597_v7  ;;  %2771 = vadd.xlane.f32.xlu1 %v2770_v41  ;;  %v2774_v26 = vsel %vm471_vm0, %v5798_v24, 0.0  ;;  %v2402_v7 = vsub.f32 %v5352_v56, %v2277_v45  ;;  %v2403_v55 = vsub.f32 %v5365_v63, %v5792_v36  ;;  %v5823_v41 = vpop.xlane.xlu0 %2299 }
 0x3df   :  { %v5809_v53 = vpop.eup %4196  ;;  %4216 = vpow2.f32 %v2599_v59  ;;  %v2775_v4 = vadd.f32 %v2774_v26, %v2773_v17  ;;  %v2613_v56 = vmul.f32 1.442695, %v2400_v1  ;;  %v2404_v3 = vsub.f32 %v5370_v28, %v5792_v36 }
 0x3e0   :  { %v5812_v38 = vpop.eup %4198  ;;  %4218 = vpow2.f32 %v2601_v61  ;;  %v2778_v6 = vadd.f32 %v5809_v53, %v5804_v15  ;;  %v2615_v50 = vmul.f32 1.442695, %v2401_v29  ;;  %v2405_v17 = vsub.f32 %v5372_v47, %v5792_v36 }
 0x3e1   :  { %v5817_v18 = vpop.eup %4200  ;;  %4220 = vpow2.f32 %v2603_v5  ;;  %2776 = vadd.xlane.f32.xlu0 %v2775_v4  ;;  %v2779_v59 = vsel %vm471_vm0, %v5812_v38, 0.0  ;;  %v2617_v4 = vmul.f32 1.442695, %v2402_v7  ;;  %v2409_v28 = vsub.f32 %v5380_v12, %v2292_v16  ;;  %v6423_v7 = vld [vmem:[#allocation76_spill] sm:$0xff] }
 0x3e2   :  { %v5825_v61 = vpop.eup %4202  ;;  %4222 = vpow2.f32 %v2605_v13  ;;  %v2780_v45 = vadd.f32 %v2779_v59, %v2778_v6  ;;  %v6421_v6 = vld [vmem:[#allocation75_spill] sm:$0xff]  ;;  %v2621_v59 = vmul.f32 1.442695, %v2404_v3  ;;  %v2623_v12 = vmul.f32 1.442695, %v2405_v17 }
 0x3e3   :  { %6418 = vst [vmem:[#allocation61_spill] sm:$0xff] %v5825_v61  ;;  %v5829_v5 = vpop.eup %4204  ;;  %4224 = vpow2.f32 %v2607_v22  ;;  %v2783_v63 = vadd.f32 %v5825_v61, %v5817_v18  ;;  %v2619_v22 = vmul.f32 1.442695, %v2403_v55  ;;  %v2410_v47 = vsub.f32 %v6421_v6, %v2292_v16  ;;  %v6424_v55 = vld [vmem:[#allocation78_spill] sm:$0xff] }
 0x3e4   :  { %v5835_v26 = vpop.eup %4206  ;;  %4226 = vpow2.f32 %v2609_v51  ;;  %2781 = vadd.xlane.f32.xlu1 %v2780_v45  ;;  %v2784_v13 = vsel %vm471_vm0, %v5829_v5, 0.0  ;;  %v2411_v45 = vsub.f32 %v6423_v7, %v2292_v16  ;;  %v2631_v3 = vmul.f32 1.442695, %v2409_v28 }
 0x3e5   :  { %6419 = vst [vmem:[#allocation63_spill] sm:$0xff] %v5835_v26  ;;  %v5840_v1 = vpop.eup %4208  ;;  %4228 = vpow2.f32 %v2611_v60  ;;  %v2785_v29 = vadd.f32 %v2784_v13, %v2783_v63  ;;  %v2412_v63 = vsub.f32 %v6424_v55, %v5823_v41  ;;  %v2287_v13 = vpop.xlane.xlu0 %2286  ;;  %v2633_v17 = vmul.f32 1.442695, %v2410_v47 }
 0x3e6   :  { %6420 = vst [vmem:[#allocation64_spill] sm:$0xff] %v5840_v1  ;;  %v5843_v36 = vpop.eup %4210  ;;  %4230 = vpow2.f32 %v2613_v56  ;;  %v2788_v51 = vadd.f32 %v5840_v1, %v5835_v26  ;;  %v6426_v1 = vld [vmem:[#allocation79_spill] sm:$0xff]  ;;  %v2406_v28 = vsub.f32 %v5378_v30, %v2287_v13 }
 0x3e7   :  { %6422 = vst [vmem:[#allocation72_spill] sm:$0xff] %v5843_v36  ;;  %v5848_v61 = vpop.eup %4212  ;;  %4232 = vpow2.f32 %v2615_v50  ;;  %2786 = vadd.xlane.f32.xlu0 %v2785_v29  ;;  %v2789_v60 = vsel %vm471_vm0, %v5843_v36, 0.0  ;;  %v2413_v16 = vsub.f32 %v6426_v1, %v5823_v41 }
 0x3e8   :  { %v5854_v6 = vpop.eup %4214  ;;  %4234 = vpow2.f32 %v2617_v4  ;;  %v2790_v56 = vadd.f32 %v2789_v60, %v2788_v51  ;;  %v2635_v4 = vmul.f32 1.442695, %v2411_v45  ;;  %v2637_v60 = vmul.f32 1.442695, %v2412_v63  ;;  %v6430_v63 = vld [vmem:[#allocation77_spill] sm:$0xff] }
 0x3e9   :  { %6425 = vst [vmem:[#allocation66_spill] sm:$0xff] %v5854_v6  ;;  %v5858_v7 = vpop.eup %4216  ;;  %4236 = vpow2.f32 %v2619_v22  ;;  %v2793_v50 = vadd.f32 %v5854_v6, %v5848_v61  ;;  %v6428_v22 = vld [vmem:[#allocation80_spill] sm:$0xff] }
 0x3ea   :  { %6427 = vst [vmem:[#allocation67_spill] sm:$0xff] %v5858_v7  ;;  %v5862_v29 = vpop.eup %4218  ;;  %4238 = vpow2.f32 %v2621_v59  ;;  %2791 = vadd.xlane.f32.xlu1 %v2790_v56  ;;  %v2794_v55 = vsel %vm471_vm0, %v5858_v7, 0.0  ;;  %v2407_v36 = vsub.f32 %v6428_v22, %v2287_v13  ;;  %v2639_v59 = vmul.f32 1.442695, %v2413_v16  ;;  %v6429_v56 = vld [vmem:[#allocation81_spill] sm:$0xff] }
 0x3eb   :  { %v5867_v51 = vpop.eup %4220  ;;  %4240 = vpow2.f32 %v2623_v12  ;;  %v2795_v1 = vadd.f32 %v2794_v55, %v2793_v50  ;;  %v2408_v6 = vsub.f32 %v6429_v56, %v2287_v13  ;;  %v2625_v50 = vmul.f32 1.442695, %v2406_v28 }
 0x3ec   :  { %v5870_v26 = vpop.eup %4222  ;;  %4242 = vpow2.f32 %v2631_v3  ;;  %v2798_v47 = vadd.f32 %v5867_v51, %v5862_v29  ;;  %v2414_v3 = vsub.f32 %v6430_v63, %v5823_v41  ;;  %v2627_v16 = vmul.f32 1.442695, %v2407_v36 }
 0x3ed   :  { %v5875_v7 = vpop.eup %4224  ;;  %2796 = vadd.xlane.f32.xlu0 %v2795_v1  ;;  %4244 = vpow2.f32 %v2633_v17  ;;  %v2799_v30 = vsel %vm471_vm0, %v5870_v26, 0.0 }
 0x3ee   :  { %v5879_v45 = vpop.eup %4226  ;;  %4246 = vpow2.f32 %v2635_v4  ;;  %v2800_v12 = vadd.f32 %v2799_v30, %v2798_v47  ;;  %v2629_v4 = vmul.f32 1.442695, %v2408_v6  ;;  %v2641_v28 = vmul.f32 1.442695, %v2414_v3 }
 0x3ef   :  { %v5883_v55 = vpop.eup %4228  ;;  %v2803_v13 = vadd.f32 %v5879_v45, %v5875_v7  ;;  %4248 = vpow2.f32 %v2637_v60 }
 0x3f0   :  { %v5887_v1 = vpop.eup %4230  ;;  %2801 = vadd.xlane.f32.xlu1 %v2800_v12  ;;  %v2804_v17 = vsel %vm471_vm0, %v5883_v55, 0.0  ;;  %4250 = vpow2.f32 %v2639_v59 }
 0x3f1   :  { %v5891_v22 = vpop.eup %4232  ;;  %v2805_v47 = vadd.f32 %v2804_v17, %v2803_v13  ;;  %4252 = vpow2.f32 %v2625_v50 }
 0x3f2   :  { %v5893_v41 = vpop.eup %4234  ;;  %v2808_v56 = vadd.f32 %v5891_v22, %v5887_v1  ;;  %4254 = vpow2.f32 %v2627_v16 }
 0x3f3   :  { %6431 = vst [vmem:[#allocation74_spill] sm:$0xff] %v5893_v41  ;;  %v5897_v60 = vpop.eup %4236  ;;  %2806 = vadd.xlane.f32.xlu0 %v2805_v47  ;;  %v2809_v36 = vsel %vm471_vm0, %v5893_v41, 0.0  ;;  %4256 = vpow2.f32 %v2629_v4 }
 0x3f4   :  { %6432 = vst [vmem:[#allocation70_spill] sm:$0xff] %v5897_v60  ;;  %v5901_v30 = vpop.eup %4238  ;;  %v2810_v6 = vadd.f32 %v2809_v36, %v2808_v56  ;;  %4258 = vpow2.f32 %v2641_v28 }
 0x3f5   :  { %6433 = vst [vmem:[#allocation71_spill] sm:$0xff] %v5901_v30  ;;  %v5903_v59 = vpop.eup %4240  ;;  %v2813_v12 = vadd.f32 %v5901_v30, %v5897_v60 }
 0x3f6   :  { %6434 = vst [vmem:[#allocation73_spill] sm:$0xff] %v5903_v59  ;;  %v5907_v63 = vpop.eup %4242  ;;  %2811 = vadd.xlane.f32.xlu1 %v2810_v6  ;;  %v2814_v3 = vsel %vm471_vm0, %v5903_v59, 0.0 }
 0x3f7   :  { %6435 = vst [vmem:[#allocation75_spill] sm:$0xff] %v5907_v63  ;;  %v5911_v50 = vpop.eup %4244  ;;  %v2815_v13 = vadd.f32 %v2814_v3, %v2813_v12 }
 0x3f8   :  { %6436 = vst [vmem:[#allocation76_spill] sm:$0xff] %v5911_v50  ;;  %v5913_v16 = vpop.eup %4246  ;;  %v2823_v17 = vadd.f32 %v5911_v50, %v5907_v63 }
 0x3f9   :  { %6437 = vst [vmem:[#allocation78_spill] sm:$0xff] %v5913_v16  ;;  %v5917_v4 = vpop.eup %4248  ;;  %2816 = vadd.xlane.f32.xlu0 %v2815_v13  ;;  %v2824_v47 = vsel %vm471_vm0, %v5913_v16, 0.0 }
 0x3fa   :  { %6438 = vst [vmem:[#allocation79_spill] sm:$0xff] %v5917_v4  ;;  %v5921_v56 = vpop.eup %4250  ;;  %v2825_v28 = vadd.f32 %v2824_v47, %v2823_v17  ;;  %v2828_v12 = vsel %vm475_vm1, %v5917_v4, 0.0 }
 0x3fb   :  { %6439 = vst [vmem:[#allocation80_spill] sm:$0xff] %v5921_v56  ;;  %v5923_v36 = vpop.eup %4252  ;;  %v2829_v3 = vsel %vm475_vm1, %v5921_v56, 0.0 }
 0x3fc   :  { %6440 = vst [vmem:[#allocation81_spill] sm:$0xff] %v5923_v36  ;;  %v5925_v6 = vpop.eup %4254  ;;  %v2830_v63 = vadd.f32 %v2829_v3, %v2828_v12  ;;  %v6445_v3 = vld [vmem:[#allocation27_spill] sm:$0xff] }
 0x3fd   :  { %6441 = vst [vmem:[#allocation77_spill] sm:$0xff] %v5925_v6  ;;  %2826 = vadd.xlane.f32.xlu0 %v2825_v28  ;;  %v5931_v50 = vpop.eup %4256  ;;  %v2818_v13 = vadd.f32 %v5925_v6, %v5923_v36 }
 0x3fe   :  { %6442 = vst [vmem:[#allocation82_spill] sm:$0xff] %v5931_v50  ;;  %v2819_v16 = vsel %vm471_vm0, %v5931_v50, 0.0  ;;  %v5937_v17 = vpop.eup %4258 }
 0x3ff   :  { %6443 = vst [vmem:[#allocation83_spill] sm:$0xff] %v5937_v17  ;;  %v2820_v47 = vadd.f32 %v2819_v16, %v2818_v13  ;;  %v2831_v28 = vsel %vm2296_vm6, %v5937_v17, 0.0  ;;  %v6444_v16 = vld [vmem:[#allocation26_spill] sm:$0xff] }
 0x400   :  { %v2832_v4 = vadd.f32 %v2831_v28, %v2830_v63  ;;  %v6447_v63 = vld [vmem:[#allocation30_spill] sm:$0xff]  ;;  %v6448_v28 = vld [vmem:[#allocation17_spill] sm:$0xff] }
 0x401   :  { %2821 = vadd.xlane.f32.xlu1 %v2820_v47  ;;  %v6446_v47 = vld [vmem:[#allocation40_spill] sm:$0xff] }
 0x405   :  { %2833 = vadd.xlane.f32.xlu1 %v2832_v4 }
 0x423   :  { %v2652_v59 = vpop.xlane.xlu1 %2651 }
 0x424   :  { %4260 = vrcp.f32 %v2652_v59  ;;  %v2647_v56 = vpop.xlane.xlu0 %2646 }
 0x425   :  { %4262 = vrcp.f32 %v2647_v56 }
 0x42a   :  { %v2657_v60 = vpop.xlane.xlu0 %2656 }
 0x42b   :  { %v2662_v30 = vpop.xlane.xlu1 %2661 }
 0x42c   :  { %4264 = vrcp.f32 %v2662_v30 }
 0x42d   :  { %4266 = vrcp.f32 %v2657_v60 }
 0x42e   :  { %v4261_v6 = vpop.eup %4260 }
 0x42f   :  { %v4263_v50 = vpop.eup %4262  ;;  %v2876_v36 = vmul.f32 %v4261_v6, %v5429_v9  ;;  %v2877_v12 = vmul.f32 %v4261_v6, %v6444_v16  ;;  %v2878_v13 = vmul.f32 %v4261_v6, %v6445_v3  ;;  %v6449_v16 = vld [vmem:[#allocation20_spill] sm:$0xff] }
 0x430   :  { %v2873_v17 = vmul.f32 %v4263_v50, %v6446_v47  ;;  %v2874_v4 = vmul.f32 %v4263_v50, %v6447_v63  ;;  %v2875_v59 = vmul.f32 %v4263_v50, %v6448_v28  ;;  %v2667_v41 = vpop.xlane.xlu0 %2666  ;;  %v6450_v50 = vld [vmem:[#allocation21_spill] sm:$0xff]  ;;  %v6452_v63 = vld [vmem:[#allocation42_spill] sm:$0xff] }
 0x431   :  { %2990 = vst [vmem:[#allocation12 + $0x18] sm:$0xff] %v2876_v36  ;;  %2991 = vst [vmem:[#allocation12 + $0x20] sm:$0xff] %v2877_v12  ;;  %v2672_v60 = vpop.xlane.xlu1 %2671  ;;  %4268 = vrcp.f32 %v2667_v41  ;;  %v6451_v12 = vld [vmem:[#allocation18_spill] sm:$0xff] }
 0x432   :  { %2992 = vst.msk [vmem:[#allocation12 + $0x28] sm:$0xff] %vm471_vm0, %v2878_v13  ;;  %2987 = vst [vmem:[#allocation12] sm:$0xff] %v2873_v17  ;;  %4270 = vrcp.f32 %v2672_v60  ;;  %v6453_v17 = vld [vmem:[#allocation19_spill] sm:$0xff] }
 0x433   :  { %2988 = vst [vmem:[#allocation12 + $0x8] sm:$0xff] %v2874_v4  ;;  %2989 = vst.msk [vmem:[#allocation12 + $0x10] sm:$0xff] %vm471_vm0, %v2875_v59 }
 0x435   :  { %v2677_v30 = vpop.xlane.xlu0 %2676 }
 0x436   :  { %v4265_v9 = vpop.eup %4264  ;;  %4272 = vrcp.f32 %v2677_v30 }
 0x437   :  { %v4267_v56 = vpop.eup %4266  ;;  %v2882_v6 = vmul.f32 %v4265_v9, %v5465_v19  ;;  %v2883_v3 = vmul.f32 %v4265_v9, %v6449_v16  ;;  %v2884_v47 = vmul.f32 %v4265_v9, %v6450_v50  ;;  %v2682_v36 = vpop.xlane.xlu1 %2681  ;;  %v6454_v16 = vld [vmem:[#allocation45_spill] sm:$0xff] }
 0x438   :  { %v2879_v13 = vmul.f32 %v4267_v56, %v6451_v12  ;;  %v2880_v41 = vmul.f32 %v4267_v56, %v6452_v63  ;;  %v2881_v4 = vmul.f32 %v4267_v56, %v6453_v17  ;;  %4274 = vrcp.f32 %v2682_v36  ;;  %v6457_v12 = vld [vmem:[#allocation24_spill] sm:$0xff]  ;;  %v6458_v63 = vld [vmem:[#allocation47_spill] sm:$0xff]  ;;  %v6459_v17 = vld [vmem:[#allocation25_spill] sm:$0xff] }
 0x439   :  { %2996 = vst [vmem:[#allocation12 + $0x48] sm:$0xff] %v2882_v6  ;;  %2997 = vst [vmem:[#allocation12 + $0x50] sm:$0xff] %v2883_v3 }
 0x43a   :  { %2998 = vst.msk [vmem:[#allocation12 + $0x58] sm:$0xff] %vm471_vm0, %v2884_v47  ;;  %2993 = vst [vmem:[#allocation12 + $0x30] sm:$0xff] %v2879_v13 }
 0x43b   :  { %2994 = vst [vmem:[#allocation12 + $0x38] sm:$0xff] %v2880_v41  ;;  %2995 = vst.msk [vmem:[#allocation12 + $0x40] sm:$0xff] %vm471_vm0, %v2881_v4  ;;  %v4269_v19 = vpop.eup %4268 }
 0x43c   :  { %v4271_v28 = vpop.eup %4270  ;;  %v2885_v59 = vmul.f32 %v4269_v19, %v5474_v37  ;;  %v2886_v60 = vmul.f32 %v4269_v19, %v5477_v10  ;;  %v2887_v9 = vmul.f32 %v4269_v19, %v5480_v54  ;;  %v2687_v30 = vpop.xlane.xlu0 %2686  ;;  %v6455_v54 = vld [vmem:[#allocation22_spill] sm:$0xff]  ;;  %v6460_v19 = vld [vmem:[#allocation28_spill] sm:$0xff] }
 0x43d   :  { %v2888_v56 = vmul.f32 %v4271_v28, %v5485_v44  ;;  %v2889_v6 = vmul.f32 %v4271_v28, %v6454_v16  ;;  %v2890_v3 = vmul.f32 %v4271_v28, %v5498_v57  ;;  %v2692_v50 = vpop.xlane.xlu1 %2691  ;;  %4276 = vrcp.f32 %v2687_v30  ;;  %v6456_v44 = vld [vmem:[#allocation23_spill] sm:$0xff]  ;;  %v6461_v16 = vld [vmem:[#allocation29_spill] sm:$0xff] }
 0x43e   :  { %2999 = vst [vmem:[#allocation12 + $0x60] sm:$0xff] %v2885_v59  ;;  %3000 = vst [vmem:[#allocation12 + $0x68] sm:$0xff] %v2886_v60  ;;  %4278 = vrcp.f32 %v2692_v50 }
 0x43f   :  { %3001 = vst.msk [vmem:[#allocation12 + $0x70] sm:$0xff] %vm471_vm0, %v2887_v9  ;;  %3002 = vst [vmem:[#allocation12 + $0x78] sm:$0xff] %v2888_v56 }
 0x440   :  { %3003 = vst [vmem:[#allocation12 + $0x80] sm:$0xff] %v2889_v6  ;;  %3004 = vst.msk [vmem:[#allocation12 + $0x88] sm:$0xff] %vm471_vm0, %v2890_v3  ;;  %v4273_v37 = vpop.eup %4272 }
 0x441   :  { %v2891_v47 = vmul.f32 %v4273_v37, %v6455_v54  ;;  %v2892_v36 = vmul.f32 %v4273_v37, %v6456_v44  ;;  %v2893_v13 = vmul.f32 %v4273_v37, %v6457_v12  ;;  %v2697_v57 = vpop.xlane.xlu0 %2696  ;;  %v6462_v37 = vld [vmem:[#allocation50_spill] sm:$0xff]  ;;  %v6463_v54 = vld [vmem:[#allocation31_spill] sm:$0xff] }
 0x442   :  { %v4275_v10 = vpop.eup %4274  ;;  %4280 = vrcp.f32 %v2697_v57 }
 0x443   :  { %v2894_v41 = vmul.f32 %v4275_v10, %v6458_v63  ;;  %v2895_v4 = vmul.f32 %v4275_v10, %v6459_v17  ;;  %v2896_v28 = vmul.f32 %v4275_v10, %v6460_v19  ;;  %v2702_v59 = vpop.xlane.xlu1 %2701  ;;  %3005 = vst [vmem:[#allocation12 + $0x90] sm:$0xff] %v2891_v47  ;;  %3006 = vst [vmem:[#allocation12 + $0x98] sm:$0xff] %v2892_v36 }
 0x444   :  { %3007 = vst.msk [vmem:[#allocation12 + $0xa0] sm:$0xff] %vm471_vm0, %v2893_v13  ;;  %4282 = vrcp.f32 %v2702_v59  ;;  %v6465_v13 = vld [vmem:[#allocation33_spill] sm:$0xff] }
 0x445   :  { %3008 = vst [vmem:[#allocation12 + $0xa8] sm:$0xff] %v2894_v41  ;;  %3009 = vst [vmem:[#allocation12 + $0xb0] sm:$0xff] %v2895_v4  ;;  %v6466_v41 = vld [vmem:[#allocation52_spill] sm:$0xff]  ;;  %v6467_v4 = vld [vmem:[#allocation34_spill] sm:$0xff] }
 0x446   :  { %3010 = vst.msk [vmem:[#allocation12 + $0xb8] sm:$0xff] %vm471_vm0, %v2896_v28  ;;  %v6468_v28 = vld [vmem:[#allocation35_spill] sm:$0xff] }
 0x447   :  { %v4277_v60 = vpop.eup %4276 }
 0x448   :  { %v4279_v9 = vpop.eup %4278  ;;  %v2897_v30 = vmul.f32 %v4277_v60, %v5528_v34  ;;  %v2898_v56 = vmul.f32 %v4277_v60, %v5534_v23  ;;  %v2899_v6 = vmul.f32 %v4277_v60, %v6461_v16  ;;  %v2707_v3 = vpop.xlane.xlu0 %2706  ;;  %v6469_v16 = vld [vmem:[#allocation36_spill] sm:$0xff] }
 0x449   :  { %v2900_v50 = vmul.f32 %v4279_v9, %v5544_v46  ;;  %v2901_v10 = vmul.f32 %v4279_v9, %v6462_v37  ;;  %v2902_v47 = vmul.f32 %v4279_v9, %v6463_v54  ;;  %v2712_v44 = vpop.xlane.xlu1 %2711  ;;  %4284 = vrcp.f32 %v2707_v3  ;;  %v6464_v46 = vld [vmem:[#allocation32_spill] sm:$0xff]  ;;  %v6470_v37 = vld [vmem:[#allocation55_spill] sm:$0xff]  ;;  %v6471_v54 = vld [vmem:[#allocation37_spill] sm:$0xff] }
 0x44a   :  { %3011 = vst [vmem:[#allocation12 + $0xc0] sm:$0xff] %v2897_v30  ;;  %3012 = vst [vmem:[#allocation12 + $0xc8] sm:$0xff] %v2898_v56  ;;  %4286 = vrcp.f32 %v2712_v44 }
 0x44b   :  { %3013 = vst.msk [vmem:[#allocation12 + $0xd0] sm:$0xff] %vm471_vm0, %v2899_v6  ;;  %3014 = vst [vmem:[#allocation12 + $0xd8] sm:$0xff] %v2900_v50 }
 0x44c   :  { %3015 = vst [vmem:[#allocation12 + $0xe0] sm:$0xff] %v2901_v10  ;;  %3016 = vst.msk [vmem:[#allocation12 + $0xe8] sm:$0xff] %vm471_vm0, %v2902_v47  ;;  %v4281_v34 = vpop.eup %4280 }
 0x44d   :  { %v2903_v36 = vmul.f32 %v4281_v34, %v5559_v58  ;;  %v2904_v12 = vmul.f32 %v4281_v34, %v6464_v46  ;;  %v2905_v57 = vmul.f32 %v4281_v34, %v6465_v13  ;;  %v2717_v63 = vpop.xlane.xlu0 %2716  ;;  %v6474_v13 = vld [vmem:[#allocation57_spill] sm:$0xff] }
 0x44e   :  { %v4283_v23 = vpop.eup %4282  ;;  %4288 = vrcp.f32 %v2717_v63  ;;  %v6475_v63 = vld [vmem:[#allocation41_spill] sm:$0xff] }
 0x44f   :  { %v2906_v17 = vmul.f32 %v4283_v23, %v6466_v41  ;;  %v2907_v19 = vmul.f32 %v4283_v23, %v6467_v4  ;;  %v2908_v59 = vmul.f32 %v4283_v23, %v6468_v28  ;;  %v2722_v60 = vpop.xlane.xlu1 %2721  ;;  %3017 = vst [vmem:[#allocation12 + $0xf0] sm:$0xff] %v2903_v36  ;;  %3018 = vst [vmem:[#allocation12 + $0xf8] sm:$0xff] %v2904_v12  ;;  %v6473_v36 = vld [vmem:[#allocation39_spill] sm:$0xff] }
 0x450   :  { %3019 = vst.msk [vmem:[#allocation12 + $0x100] sm:$0xff] %vm471_vm0, %v2905_v57  ;;  %4290 = vrcp.f32 %v2722_v60 }
 0x451   :  { %3020 = vst [vmem:[#allocation12 + $0x108] sm:$0xff] %v2906_v17  ;;  %3021 = vst [vmem:[#allocation12 + $0x110] sm:$0xff] %v2907_v19  ;;  %v6476_v17 = vld [vmem:[#allocation43_spill] sm:$0xff] }
 0x452   :  { %3022 = vst.msk [vmem:[#allocation12 + $0x118] sm:$0xff] %vm471_vm0, %v2908_v59 }
 0x453   :  { %v4285_v58 = vpop.eup %4284 }
 0x454   :  { %v4287_v9 = vpop.eup %4286  ;;  %v2909_v30 = vmul.f32 %v4285_v58, %v5587_v11  ;;  %v2910_v56 = vmul.f32 %v4285_v58, %v5591_v32  ;;  %v2911_v6 = vmul.f32 %v4285_v58, %v6469_v16  ;;  %v2727_v3 = vpop.xlane.xlu0 %2726  ;;  %v6477_v58 = vld [vmem:[#allocation44_spill] sm:$0xff] }
 0x455   :  { %v2912_v50 = vmul.f32 %v4287_v9, %v5601_v0  ;;  %v2913_v10 = vmul.f32 %v4287_v9, %v6470_v37  ;;  %v2914_v47 = vmul.f32 %v4287_v9, %v6471_v54  ;;  %v2732_v44 = vpop.xlane.xlu1 %2731  ;;  %4292 = vrcp.f32 %v2727_v3  ;;  %v6472_v0 = vld [vmem:[#allocation38_spill] sm:$0xff] }
 0x456   :  { %3023 = vst [vmem:[#allocation12 + $0x120] sm:$0xff] %v2909_v30  ;;  %3024 = vst [vmem:[#allocation12 + $0x128] sm:$0xff] %v2910_v56  ;;  %4294 = vrcp.f32 %v2732_v44  ;;  %v6478_v56 = vld [vmem:[#allocation60_spill] sm:$0xff] }
 0x457   :  { %3025 = vst.msk [vmem:[#allocation12 + $0x130] sm:$0xff] %vm471_vm0, %v2911_v6  ;;  %3026 = vst [vmem:[#allocation12 + $0x138] sm:$0xff] %v2912_v50  ;;  %v6479_v6 = vld [vmem:[#allocation46_spill] sm:$0xff]  ;;  %v6480_v50 = vld [vmem:[#allocation48_spill] sm:$0xff] }
 0x458   :  { %3027 = vst [vmem:[#allocation12 + $0x140] sm:$0xff] %v2913_v10  ;;  %3028 = vst.msk [vmem:[#allocation12 + $0x148] sm:$0xff] %vm471_vm0, %v2914_v47  ;;  %v4289_v11 = vpop.eup %4288 }
 0x459   :  { %v2915_v34 = vmul.f32 %v4289_v11, %v5616_v48  ;;  %v2916_v23 = vmul.f32 %v4289_v11, %v6472_v0  ;;  %v2917_v46 = vmul.f32 %v4289_v11, %v6473_v36  ;;  %v2737_v12 = vpop.xlane.xlu0 %2736  ;;  %v6481_v11 = vld [vmem:[#allocation49_spill] sm:$0xff] }
 0x45a   :  { %v4291_v32 = vpop.eup %4290  ;;  %4296 = vrcp.f32 %v2737_v12 }
 0x45b   :  { %v2918_v57 = vmul.f32 %v4291_v32, %v6474_v13  ;;  %v2919_v41 = vmul.f32 %v4291_v32, %v6475_v63  ;;  %v2920_v4 = vmul.f32 %v4291_v32, %v6476_v17  ;;  %v2742_v19 = vpop.xlane.xlu1 %2741  ;;  %3029 = vst [vmem:[#allocation12 + $0x150] sm:$0xff] %v2915_v34  ;;  %3030 = vst [vmem:[#allocation12 + $0x158] sm:$0xff] %v2916_v23  ;;  %v6482_v34 = vld [vmem:[#allocation62_spill] sm:$0xff]  ;;  %v6483_v23 = vld [vmem:[#allocation51_spill] sm:$0xff] }
 0x45c   :  { %3031 = vst.msk [vmem:[#allocation12 + $0x160] sm:$0xff] %vm471_vm0, %v2917_v46  ;;  %4298 = vrcp.f32 %v2742_v19  ;;  %v6484_v46 = vld [vmem:[#allocation53_spill] sm:$0xff]  ;;  %v6485_v13 = vld [vmem:[#allocation54_spill] sm:$0xff] }
 0x45d   :  { %3032 = vst [vmem:[#allocation12 + $0x168] sm:$0xff] %v2918_v57  ;;  %3033 = vst [vmem:[#allocation12 + $0x170] sm:$0xff] %v2919_v41 }
 0x45e   :  { %3034 = vst.msk [vmem:[#allocation12 + $0x178] sm:$0xff] %vm471_vm0, %v2920_v4 }
 0x45f   :  { %v4293_v48 = vpop.eup %4292 }
 0x460   :  { %v4295_v28 = vpop.eup %4294  ;;  %v2921_v59 = vmul.f32 %v4293_v48, %v5644_v31  ;;  %v2922_v60 = vmul.f32 %v4293_v48, %v5648_v39  ;;  %v2923_v9 = vmul.f32 %v4293_v48, %v6477_v58  ;;  %v2747_v30 = vpop.xlane.xlu0 %2746  ;;  %v6487_v58 = vld [vmem:[#allocation56_spill] sm:$0xff] }
 0x461   :  { %v2924_v16 = vmul.f32 %v4295_v28, %v6478_v56  ;;  %v2925_v3 = vmul.f32 %v4295_v28, %v6479_v6  ;;  %v2926_v37 = vmul.f32 %v4295_v28, %v6480_v50  ;;  %v2752_v10 = vpop.xlane.xlu1 %2751  ;;  %4300 = vrcp.f32 %v2747_v30  ;;  %v6489_v6 = vld [vmem:[#allocation58_spill] sm:$0xff]  ;;  %v6490_v50 = vld [vmem:[#allocation59_spill] sm:$0xff] }
 0x462   :  { %3035 = vst [vmem:[#allocation12 + $0x180] sm:$0xff] %v2921_v59  ;;  %3036 = vst [vmem:[#allocation12 + $0x188] sm:$0xff] %v2922_v60  ;;  %4302 = vrcp.f32 %v2752_v10  ;;  %v6486_v59 = vld [vmem:[#allocation65_spill] sm:$0xff] }
 0x463   :  { %3037 = vst.msk [vmem:[#allocation12 + $0x190] sm:$0xff] %vm471_vm0, %v2923_v9  ;;  %3038 = vst [vmem:[#allocation12 + $0x198] sm:$0xff] %v2924_v16 }
 0x464   :  { %3039 = vst [vmem:[#allocation12 + $0x1a0] sm:$0xff] %v2925_v3  ;;  %3040 = vst.msk [vmem:[#allocation12 + $0x1a8] sm:$0xff] %vm471_vm0, %v2926_v37  ;;  %v2757_v31 = vpop.xlane.xlu0 %2756  ;;  %v4297_v39 = vpop.eup %4296 }
 0x465   :  { %4304 = vrcp.f32 %v2757_v31  ;;  %v2927_v44 = vmul.f32 %v4297_v39, %v5673_v52  ;;  %v2928_v32 = vmul.f32 %v4297_v39, %v6481_v11  ;;  %v2929_v0 = vmul.f32 %v4297_v39, %v6482_v34  ;;  %v6491_v11 = vld [vmem:[#allocation68_spill] sm:$0xff] }
 0x466   :  { %v2762_v54 = vpop.xlane.xlu1 %2761  ;;  %v4299_v47 = vpop.eup %4298 }
 0x467   :  { %4306 = vrcp.f32 %v2762_v54  ;;  %v2930_v36 = vmul.f32 %v4299_v47, %v6483_v23  ;;  %v2931_v12 = vmul.f32 %v4299_v47, %v6484_v46  ;;  %v2932_v57 = vmul.f32 %v4299_v47, %v6485_v13  ;;  %3041 = vst [vmem:[#allocation12 + $0x1b0] sm:$0xff] %v2927_v44  ;;  %3042 = vst [vmem:[#allocation12 + $0x1b8] sm:$0xff] %v2928_v32 }
 0x468   :  { %3043 = vst.msk [vmem:[#allocation12 + $0x1c0] sm:$0xff] %vm471_vm0, %v2929_v0  ;;  %v2767_v63 = vpop.xlane.xlu0 %2766 }
 0x469   :  { %3044 = vst [vmem:[#allocation12 + $0x1c8] sm:$0xff] %v2930_v36  ;;  %3045 = vst [vmem:[#allocation12 + $0x1d0] sm:$0xff] %v2931_v12  ;;  %4308 = vrcp.f32 %v2767_v63 }
 0x46a   :  { %3046 = vst.msk [vmem:[#allocation12 + $0x1d8] sm:$0xff] %vm471_vm0, %v2932_v57 }
 0x46b   :  { %v2772_v52 = vpop.xlane.xlu1 %2771  ;;  %v4301_v41 = vpop.eup %4300 }
 0x46c   :  { %4310 = vrcp.f32 %v2772_v52  ;;  %v4303_v17 = vpop.eup %4302  ;;  %v2933_v4 = vmul.f32 %v4301_v41, %v5701_v21  ;;  %v2934_v19 = vmul.f32 %v4301_v41, %v5705_v14  ;;  %v2935_v48 = vmul.f32 %v4301_v41, %v5709_v42  ;;  %v6488_v42 = vld [vmem:[#allocation69_spill] sm:$0xff]  ;;  %v6494_v41 = vld [vmem:[#allocation64_spill] sm:$0xff] }
 0x46d   :  { %v2936_v60 = vmul.f32 %v4303_v17, %v6486_v59  ;;  %v2937_v9 = vmul.f32 %v4303_v17, %v6487_v58  ;;  %v2938_v30 = vmul.f32 %v4303_v17, %v5727_v2 }
 0x46e   :  { %v2777_v28 = vpop.xlane.xlu0 %2776  ;;  %3047 = vst [vmem:[#allocation12 + $0x1e0] sm:$0xff] %v2933_v4  ;;  %3048 = vst [vmem:[#allocation12 + $0x1e8] sm:$0xff] %v2934_v19  ;;  %v6495_v4 = vld [vmem:[#allocation72_spill] sm:$0xff] }
 0x46f   :  { %4312 = vrcp.f32 %v2777_v28  ;;  %3049 = vst.msk [vmem:[#allocation12 + $0x1f0] sm:$0xff] %vm471_vm0, %v2935_v48  ;;  %v4305_v56 = vpop.eup %4304  ;;  %3050 = vst [vmem:[#allocation12 + $0x1f8] sm:$0xff] %v2936_v60  ;;  %v6496_v28 = vld [vmem:[#allocation66_spill] sm:$0xff]  ;;  %v6497_v60 = vld [vmem:[#allocation67_spill] sm:$0xff] }
 0x470   :  { %3051 = vst [vmem:[#allocation12 + $0x200] sm:$0xff] %v2937_v9  ;;  %3052 = vst.msk [vmem:[#allocation12 + $0x208] sm:$0xff] %vm471_vm0, %v2938_v30  ;;  %v2939_v16 = vmul.f32 %v4305_v56, %v6488_v42  ;;  %v2940_v3 = vmul.f32 %v4305_v56, %v6489_v6  ;;  %v2941_v37 = vmul.f32 %v4305_v56, %v6490_v50 }
 0x471   :  { %v2782_v21 = vpop.xlane.xlu1 %2781  ;;  %v4307_v14 = vpop.eup %4306 }
 0x472   :  { %4314 = vrcp.f32 %v2782_v21  ;;  %v2942_v2 = vmul.f32 %v4307_v14, %v5739_v8  ;;  %v2943_v10 = vmul.f32 %v4307_v14, %v5746_v40  ;;  %v2944_v31 = vmul.f32 %v4307_v14, %v5751_v35  ;;  %3053 = vst [vmem:[#allocation12 + $0x210] sm:$0xff] %v2939_v16  ;;  %3054 = vst [vmem:[#allocation12 + $0x218] sm:$0xff] %v2940_v3 }
 0x473   :  { %3055 = vst.msk [vmem:[#allocation12 + $0x220] sm:$0xff] %vm471_vm0, %v2941_v37  ;;  %v4309_v54 = vpop.eup %4308 }
 0x474   :  { %v2787_v39 = vpop.xlane.xlu0 %2786  ;;  %3056 = vst [vmem:[#allocation12 + $0x228] sm:$0xff] %v2942_v2  ;;  %3057 = vst [vmem:[#allocation12 + $0x230] sm:$0xff] %v2943_v10  ;;  %v2945_v44 = vmul.f32 %v4309_v54, %v5754_v25  ;;  %v2946_v8 = vmul.f32 %v4309_v54, %v5762_v33  ;;  %v2947_v40 = vmul.f32 %v4309_v54, %v6491_v11 }
 0x475   :  { %3058 = vst.msk [vmem:[#allocation12 + $0x238] sm:$0xff] %vm471_vm0, %v2944_v31  ;;  %4316 = vrcp.f32 %v2787_v39  ;;  %v6501_v39 = vld [vmem:[#allocation73_spill] sm:$0xff] }
 0x476   :  { %v4311_v47 = vpop.eup %4310  ;;  %3059 = vst [vmem:[#allocation12 + $0x240] sm:$0xff] %v2945_v44  ;;  %3060 = vst [vmem:[#allocation12 + $0x248] sm:$0xff] %v2946_v8  ;;  %v6503_v8 = vld [vmem:[#allocation76_spill] sm:$0xff] }
 0x477   :  { %v2948_v35 = vmul.f32 %v4311_v47, %v5771_v49  ;;  %v2949_v32 = vmul.f32 %v4311_v47, %v5774_v27  ;;  %v2950_v34 = vmul.f32 %v4311_v47, %v5781_v43  ;;  %v2792_v0 = vpop.xlane.xlu1 %2791  ;;  %3061 = vst.msk [vmem:[#allocation12 + $0x250] sm:$0xff] %vm471_vm0, %v2947_v40  ;;  %v6504_v40 = vld [vmem:[#allocation78_spill] sm:$0xff] }
 0x478   :  { %4318 = vrcp.f32 %v2792_v0 }
 0x479   :  { %v4313_v23 = vpop.eup %4312  ;;  %3062 = vst [vmem:[#allocation12 + $0x258] sm:$0xff] %v2948_v35  ;;  %3063 = vst [vmem:[#allocation12 + $0x260] sm:$0xff] %v2949_v32 }
 0x47a   :  { %3064 = vst.msk [vmem:[#allocation12 + $0x268] sm:$0xff] %vm471_vm0, %v2950_v34  ;;  %v2951_v25 = vmul.f32 %v4313_v23, %v5786_v62  ;;  %v2952_v33 = vmul.f32 %v4313_v23, %v5794_v20  ;;  %v2953_v49 = vmul.f32 %v4313_v23, %v5798_v24  ;;  %v2797_v27 = vpop.xlane.xlu0 %2796  ;;  %v6492_v24 = vld [vmem:[#allocation61_spill] sm:$0xff] }
 0x47b   :  { %4320 = vrcp.f32 %v2797_v27  ;;  %v6505_v34 = vld [vmem:[#allocation81_spill] sm:$0xff] }
 0x47c   :  { %v4315_v43 = vpop.eup %4314  ;;  %3065 = vst [vmem:[#allocation12 + $0x270] sm:$0xff] %v2951_v25  ;;  %3066 = vst [vmem:[#allocation12 + $0x278] sm:$0xff] %v2952_v33  ;;  %v6506_v23 = vld [vmem:[#allocation77_spill] sm:$0xff]  ;;  %v6507_v33 = vld [vmem:[#allocation82_spill] sm:$0xff] }
 0x47d   :  { %3067 = vst.msk [vmem:[#allocation12 + $0x280] sm:$0xff] %vm471_vm0, %v2953_v49  ;;  %v2954_v36 = vmul.f32 %v4315_v43, %v5804_v15  ;;  %v2955_v46 = vmul.f32 %v4315_v43, %v5809_v53  ;;  %v2956_v12 = vmul.f32 %v4315_v43, %v5812_v38  ;;  %v2802_v13 = vpop.xlane.xlu1 %2801  ;;  %v6493_v53 = vld [vmem:[#allocation63_spill] sm:$0xff] }
 0x47e   :  { %4322 = vrcp.f32 %v2802_v13  ;;  %v6508_v43 = vld [vmem:[#allocation79_spill] sm:$0xff] }
 0x47f   :  { %v4317_v62 = vpop.eup %4316  ;;  %3068 = vst [vmem:[#allocation12 + $0x288] sm:$0xff] %v2954_v36  ;;  %3069 = vst [vmem:[#allocation12 + $0x290] sm:$0xff] %v2955_v46  ;;  %v6509_v46 = vld [vmem:[#allocation80_spill] sm:$0xff]  ;;  %v6510_v13 = vld [vmem:[#allocation83_spill] sm:$0xff] }
 0x480   :  { %3070 = vst.msk [vmem:[#allocation12 + $0x298] sm:$0xff] %vm471_vm0, %v2956_v12  ;;  %v2957_v20 = vmul.f32 %v4317_v62, %v5817_v18  ;;  %v2958_v57 = vmul.f32 %v4317_v62, %v6492_v24  ;;  %v2959_v63 = vmul.f32 %v4317_v62, %v5829_v5  ;;  %v2807_v52 = vpop.xlane.xlu0 %2806 }
 0x481   :  { %4324 = vrcp.f32 %v2807_v52 }
 0x482   :  { %v4319_v15 = vpop.eup %4318  ;;  %3071 = vst [vmem:[#allocation12 + $0x2a0] sm:$0xff] %v2957_v20  ;;  %3072 = vst [vmem:[#allocation12 + $0x2a8] sm:$0xff] %v2958_v57 }
 0x483   :  { %3073 = vst.msk [vmem:[#allocation12 + $0x2b0] sm:$0xff] %vm471_vm0, %v2959_v63  ;;  %v2960_v38 = vmul.f32 %v4319_v15, %v6493_v53  ;;  %v2961_v17 = vmul.f32 %v4319_v15, %v6494_v41  ;;  %v2962_v19 = vmul.f32 %v4319_v15, %v6495_v4  ;;  %v2812_v48 = vpop.xlane.xlu1 %2811 }
 0x484   :  { %4326 = vrcp.f32 %v2812_v48 }
 0x485   :  { %v4321_v18 = vpop.eup %4320  ;;  %3074 = vst [vmem:[#allocation12 + $0x2b8] sm:$0xff] %v2960_v38  ;;  %3075 = vst [vmem:[#allocation12 + $0x2c0] sm:$0xff] %v2961_v17 }
 0x486   :  { %3076 = vst.msk [vmem:[#allocation12 + $0x2c8] sm:$0xff] %vm471_vm0, %v2962_v19  ;;  %v2963_v5 = vmul.f32 %v4321_v18, %v5848_v61  ;;  %v2964_v59 = vmul.f32 %v4321_v18, %v6496_v28  ;;  %v2965_v58 = vmul.f32 %v4321_v18, %v6497_v60  ;;  %v2817_v9 = vpop.xlane.xlu0 %2816 }
 0x487   :  { %4328 = vrcp.f32 %v2817_v9 }
 0x488   :  { %v4323_v30 = vpop.eup %4322  ;;  %3077 = vst [vmem:[#allocation12 + $0x2d0] sm:$0xff] %v2963_v5  ;;  %3078 = vst [vmem:[#allocation12 + $0x2d8] sm:$0xff] %v2964_v59 }
 0x489   :  { %3079 = vst.msk [vmem:[#allocation12 + $0x2e0] sm:$0xff] %vm471_vm0, %v2965_v58  ;;  %v2966_v56 = vmul.f32 %v4323_v30, %v5862_v29  ;;  %v2967_v21 = vmul.f32 %v4323_v30, %v5867_v51  ;;  %v2968_v14 = vmul.f32 %v4323_v30, %v5870_v26  ;;  %v6498_v51 = vld [vmem:[#allocation74_spill] sm:$0xff] }
 0x48a   :  { %v2827_v42 = vpop.xlane.xlu0 %2826 }
 0x48b   :  { %v4325_v16 = vpop.eup %4324  ;;  %3080 = vst [vmem:[#allocation12 + $0x2e8] sm:$0xff] %v2966_v56  ;;  %3081 = vst [vmem:[#allocation12 + $0x2f0] sm:$0xff] %v2967_v21  ;;  %4330 = vrcp.f32 %v2827_v42 }
 0x48c   :  { %3082 = vst.msk [vmem:[#allocation12 + $0x2f8] sm:$0xff] %vm471_vm0, %v2968_v14  ;;  %v2969_v61 = vmul.f32 %v4325_v16, %v5875_v7  ;;  %v2970_v6 = vmul.f32 %v4325_v16, %v5879_v45  ;;  %v2971_v3 = vmul.f32 %v4325_v16, %v5883_v55  ;;  %v6499_v7 = vld [vmem:[#allocation70_spill] sm:$0xff]  ;;  %v6500_v55 = vld [vmem:[#allocation71_spill] sm:$0xff] }
 0x48e   :  { %v4327_v50 = vpop.eup %4326  ;;  %3083 = vst [vmem:[#allocation12 + $0x300] sm:$0xff] %v2969_v61  ;;  %3084 = vst [vmem:[#allocation12 + $0x308] sm:$0xff] %v2970_v6  ;;  %v2822_v2 = vpop.xlane.xlu1 %2821 }
 0x48f   :  { %3085 = vst.msk [vmem:[#allocation12 + $0x310] sm:$0xff] %vm471_vm0, %v2971_v3  ;;  %v2972_v26 = vmul.f32 %v4327_v50, %v5887_v1  ;;  %v2973_v29 = vmul.f32 %v4327_v50, %v5891_v22  ;;  %v2974_v37 = vmul.f32 %v4327_v50, %v6498_v51  ;;  %4332 = vrcp.f32 %v2822_v2  ;;  %v6502_v22 = vld [vmem:[#allocation75_spill] sm:$0xff] }
 0x491   :  { %v4329_v10 = vpop.eup %4328  ;;  %3086 = vst [vmem:[#allocation12 + $0x318] sm:$0xff] %v2972_v26  ;;  %3087 = vst [vmem:[#allocation12 + $0x320] sm:$0xff] %v2973_v29 }
 0x492   :  { %3088 = vst.msk [vmem:[#allocation12 + $0x328] sm:$0xff] %vm471_vm0, %v2974_v37  ;;  %v2975_v45 = vmul.f32 %v4329_v10, %v6499_v7  ;;  %v2976_v31 = vmul.f32 %v4329_v10, %v6500_v55  ;;  %v2977_v54 = vmul.f32 %v4329_v10, %v6501_v39  ;;  %v2834_v47 = vpop.xlane.xlu1 %2833 }
 0x493   :  { %4334 = vrcp.f32 %v2834_v47 }
 0x494   :  { %3089 = vst [vmem:[#allocation12 + $0x330] sm:$0xff] %v2975_v45  ;;  %3090 = vst [vmem:[#allocation12 + $0x338] sm:$0xff] %v2976_v31 }
 0x495   :  { %3091 = vst.msk [vmem:[#allocation12 + $0x340] sm:$0xff] %vm471_vm0, %v2977_v54  ;;  %v4331_v1 = vpop.eup %4330 }
 0x496   :  { %v2981_v44 = vmul.f32 %v4331_v1, %v6502_v22  ;;  %v2982_v11 = vmul.f32 %v4331_v1, %v6503_v8  ;;  %v2983_v35 = vmul.f32 %v4331_v1, %v6504_v40 }
 0x498   :  { %3095 = vst [vmem:[#allocation12 + $0x360] sm:$0xff] %v2981_v44  ;;  %3096 = vst [vmem:[#allocation12 + $0x368] sm:$0xff] %v2982_v11 }
 0x499   :  { %3097 = vst.msk [vmem:[#allocation12 + $0x370] sm:$0xff] %vm471_vm0, %v2983_v35  ;;  %v4333_v32 = vpop.eup %4332 }
 0x49a   :  { %v2978_v0 = vmul.f32 %v4333_v32, %v6505_v34  ;;  %v2979_v25 = vmul.f32 %v4333_v32, %v6506_v23  ;;  %v2980_v49 = vmul.f32 %v4333_v32, %v6507_v33 }
 0x49c   :  { %3092 = vst [vmem:[#allocation12 + $0x348] sm:$0xff] %v2978_v0  ;;  %3093 = vst [vmem:[#allocation12 + $0x350] sm:$0xff] %v2979_v25 }
 0x49d   :  { %3094 = vst.msk [vmem:[#allocation12 + $0x358] sm:$0xff] %vm471_vm0, %v2980_v49  ;;  %v4335_v27 = vpop.eup %4334 }
 0x49e   :  { %v2984_v36 = vmul.f32 %v4335_v27, %v6508_v43  ;;  %v2985_v12 = vmul.f32 %v4335_v27, %v6509_v46  ;;  %v2986_v62 = vmul.f32 %v4335_v27, %v6510_v13 }
 0x4a0   :  { %3098 = vst [vmem:[#allocation12 + $0x378] sm:$0xf] %v2984_v36  ;;  %3099 = vst [vmem:[#allocation12 + $0x380] sm:$0xf] %v2985_v12 }
 0x4a1   :  { %3100 = vst.msk [vmem:[#allocation12 + $0x388] sm:$0xf] %vm2296_vm6, %v2986_v62 }
 0x4a2   :  { %4436 = shalt.err (!%p4433_p8)
}
 0x4a3   :  { %s4437_s30 = scalar_lea.hbm %s6112_s7, 14592 }
 0x4a4   :  { %p4438_p9 = scmp.ne.s32.totalorder %s6112_s7, %s4437_s30  ;;  %p4441_p10 = scmp.lt.u32.totalorder %s4437_s30, %s6112_s7 }
 0x4a6   :  { %p4443_p11 = pnand %p4441_p10, %p4438_p9 }
 0x4a8   :  { %4446 = shalt.err (!%p4443_p11)
}
 0x4a9   :  { %s4466_s11 = smov 384   ;;  %s4467_s12 = smov 24  }
 0x4aa   :  { %3112 = dma.vmem_to_hbm [thread:$0]  %s3107_s6, 14592, %s6112_s7, [#allocation6], %s4466_s11, %s4466_s11, %s4467_s12  }
 0x4ab   :  { %4453 = dma.done.wait [#allocation6], 14592  }
 0x4ac   :  { %4454 = vsyncadd [#allocation6], 4294952704 }
 0x4ad   :  { %3116 = vsyncpa [#allocation5], 1 }
 0x4ae   :  { %3117 = vsyncpa [#allocation8], 1 }
 0x4af   :  { %3118 = vsyncpa [#allocation11], 1 }
 0x4b0   :  { %3119 = vsyncpa [#allocation6], 1 }

</bundles_post_ra>
